<compile_context>
chip_gen: v6e
topology: v6e:2x2x1
jax: 0.10.0
libtpu: 0.0.40
codegen_flags: <defaults>
</compile_context>

<pallas_src>
import math
from functools import partial

import numpy as np
import jax
import jax.numpy as jnp
from jax import lax
from jax.experimental import pallas as pl
from jax.experimental.pallas import tpu as pltpu

EMBED_DIM = 256
NUM_HEADS = 4
HEAD_DIM = EMBED_DIM // NUM_HEADS
DL = 4.0
SIGMA = 5.0  # unused by the optimized torch path (kfac never applied); kept for parity
MAX_DELTA_COMBOS = 8  # (kf - ki) components each take one of 2 values -> <= 8 combos


# ----------------------------------------------------------------------------- kernel
def _ewald_fused_kernel(x_ref, w_ref, r_ref, ki_ref, dk_ref, oh_ref, mask_ref, out_ref,
                        *, mm_dtype, approx_recip):
    H, D, E = NUM_HEADS, HEAD_DIM, EMBED_DIM

    # ---- fused readout: qkv = x @ w  (columns pre-permuted to [q | k | v], head-major)
    x = x_ref[0]                                   # [nb, 256]
    w = w_ref[...]                                 # [256, 768]
    qkv = jnp.dot(x.astype(w.dtype), w, preferred_element_type=jnp.float32)   # [nb, 768]
    q_all = qkv[:, 0:E]                            # [nb, 256]   col = h*HEAD_DIM + d
    kv_all = qkv[:, E:3 * E]                       # [nb, 512]   contiguous [k | v] slab

    # ---- phase angles (2*pi already folded into ki/dk host-side)
    r = r_ref[0]                                   # [nb, 3]     positions / box
    ki = ki_ref[...]                               # [3, Kp]     true k-vectors
    theta_i = r[:, 0:1] * ki[0:1, :] + r[:, 1:2] * ki[1:2, :] + r[:, 2:3] * ki[2:3, :]
    cos_i, sin_i = jnp.cos(theta_i), jnp.sin(theta_i)            # exp(-i theta_i) parts

    # forward-quirk phases via angle addition: theta_f = theta_i + theta_d,
    # theta_d built from <= 8 distinct delta combos (EUP: 2*nb*8 trig instead of 2*nb*Kp)
    dk = dk_ref[...]                               # [3, 8]      delta-combo table
    theta_d8 = r[:, 0:1] * dk[0:1, :] + r[:, 1:2] * dk[1:2, :] + r[:, 2:3] * dk[2:3, :]
    cos_d8, sin_d8 = jnp.cos(theta_d8), jnp.sin(theta_d8)        # [nb, 8]
    oh = oh_ref[...]                               # [8, Kp] one-hot combo selector (f32)
    cos_d = jnp.zeros_like(cos_i)
    sin_d = jnp.zeros_like(sin_i)
    for c in range(MAX_DELTA_COMBOS):              # VPU MAC expansion (VALU has slack)
        oc = oh[c:c + 1, :]                        # [1, Kp]
        cos_d = cos_d + oc * cos_d8[:, c:c + 1]
        sin_d = sin_d + oc * sin_d8[:, c:c + 1]
    cos_f = cos_i * cos_d - sin_i * sin_d          # padded cols -> 0 (oh row is zero)
    sin_f = sin_i * cos_d + cos_i * sin_d

    # ---- k/v potentials for ALL heads at once: 2 matmuls, 512-lane-dense outputs
    ct = (((0,), (0,)), ((), ()))                  # contract atom axis (A^T B)
    kv_m = kv_all.astype(mm_dtype)
    kv_pot_re = lax.dot_general(cos_f.astype(mm_dtype), kv_m, ct,
                                preferred_element_type=jnp.float32)       # [Kp, 512]
    kv_pot_im = lax.dot_general(sin_f.astype(mm_dtype), kv_m, ct,
                                preferred_element_type=jnp.float32)       # [Kp, 512]
    k_pot_re, v_pot_re = kv_pot_re[:, 0:E], kv_pot_re[:, E:2 * E]
    k_pot_im, v_pot_im = kv_pot_im[:, 0:E], kv_pot_im[:, E:2 * E]
    # padded rows are exact zeros here, so the sqrt sees zeros (no garbage).
    abs_kpot = jnp.sqrt(k_pot_re * k_pot_re + k_pot_im * k_pot_im)        # [Kp, 256]
    vpot_ri = jnp.concatenate([v_pot_re, v_pot_im], axis=0)               # [2Kp, 256]

    abs_q = jnp.abs(q_all)                                                # [nb, 256]
    mask = mask_ref[...]                           # [1, Kp] additive pad mask (-1e30)

    # hoisted casts (no-ops for f32; one pack pass each for bf16)
    abs_q_m = abs_q.astype(mm_dtype)
    abs_kpot_m = abs_kpot.astype(mm_dtype)
    vpot_ri_m = vpot_ri.astype(mm_dtype)

    cd = (((1,), (1,)), ((), ()))                  # contract feature axis (A B^T)
    out_heads = []
    for h in range(H):                             # 4 heads; per-head live set is small
        sl = slice(h * D, (h + 1) * D)
        # attention scores over k-vectors:  sum_d |q_h| * |k_pot_h|   (|phase| == 1)
        scores = lax.dot_general(abs_q_m[:, sl], abs_kpot_m[:, sl], cd,
                                 preferred_element_type=jnp.float32)      # [nb, Kp]
        scores = scores + mask                     # [1,Kp] sublane-broadcast add
        m = jnp.max(scores, axis=-1, keepdims=True)
        e = jnp.exp(scores - m)
        denom = jnp.sum(e, axis=-1, keepdims=True)
        if approx_recip:
            p = e * pl.reciprocal(denom, approx=True)
        else:
            p = e / denom

        # weighted values + inverse transform, real part only, fused re|im contraction:
        #   Re( sum_j p[a,j] * v_pot[j,d] * exp(-i theta_i[a,j]) )
        pc = jnp.concatenate([p * cos_i, p * sin_i], axis=-1).astype(mm_dtype)  # [nb,2Kp]
        out_h = jnp.dot(pc, vpot_ri_m[:, sl], preferred_element_type=jnp.float32)
        out_heads.append(out_h)                    # [nb, D]

    # single lane-dense [nb, 256] store (channel = head * HEAD_DIM + d)
    out_ref[0] = jnp.concatenate(out_heads, axis=-1).astype(out_ref.dtype)


def _const_spec(shape):
    """BlockSpec for a grid-invariant input; single-buffered when supported."""
    n = len(shape)
    idx = lambda b, _n=n: (0,) * _n
    try:
        return pl.BlockSpec(shape, idx, pipeline_mode=pl.Buffered(1))
    except Exception:  # older jax without pipeline_mode / Buffered
        return pl.BlockSpec(shape, idx)


def ewald_pallas(x_graphs, w_perm, r_norm, ki, dk8, onehot8, kmask, *, mm_dtype,
                 approx_recip, vmem_limit_bytes, cost_estimate):
    B, nb, E = x_graphs.shape
    Kp = ki.shape[1]
    return pl.pallas_call(
        partial(_ewald_fused_kernel, mm_dtype=mm_dtype, approx_recip=approx_recip),
        out_shape=jax.ShapeDtypeStruct((B, nb, E), jnp.float32),
        grid=(B,),
        in_specs=[
            pl.BlockSpec((1, nb, E), lambda b: (b, 0, 0)),        # x block
            _const_spec((E, 3 * E)),                              # readout weight
            pl.BlockSpec((1, nb, 3), lambda b: (b, 0, 0)),        # r / box
            _const_spec((3, Kp)),                                 # true k-vectors (*2*pi)
            _const_spec((3, MAX_DELTA_COMBOS)),                   # delta-combo table
            _const_spec((MAX_DELTA_COMBOS, Kp)),                  # one-hot combo selector
            _const_spec((1, Kp)),                                 # additive pad mask
        ],
        out_specs=pl.BlockSpec((1, nb, E), lambda b: (b, 0, 0)),
        compiler_params=pltpu.CompilerParams(
            # grid=(B,) feeds both v7x TCs when B>=2; v5e/v6e are single-TC.
            dimension_semantics=("parallel",),
            vmem_limit_bytes=vmem_limit_bytes),
        cost_estimate=cost_estimate,
    )(x_graphs, w_perm, r_norm, ki, dk8, onehot8, kmask)


# ----------------------------------------------------------------------------- host glue
def build_kvectors(box_np, dl=DL):
    """K-space masking (incl. the forward-transform index-1 quirk), 2*pi pre-folded,
    K padded to a multiple of 128 lanes.  Returns the TRUE k-vectors, the <=8-entry
    forward-quirk delta table + one-hot selector, an additive -1e30 pad mask, and K."""
    nk = [max(1, int(box_np[i] / dl)) for i in range(3)]
    twopi = 2.0 * np.pi
    k_sq_max = (twopi / dl) ** 2
    kf_int, ki_int = [], []
    for ix in range(nk[0] + 1):                       # lexicographic == torch nonzero order
        for iy in range(2 * nk[1] + 1):
            for iz in range(2 * nk[2] + 1):
                kx, ky, kz = ix, iy - nk[1], iz - nk[2]
                k_sq = twopi ** 2 * ((kx / box_np[0]) ** 2 + (ky / box_np[1]) ** 2
                                     + (kz / box_np[2]) ** 2)
                if 0.0 < k_sq <= k_sq_max:
                    # forward transform: indices shifted by -1 with negative-index wrap
                    ax = (ix - 1) % (nk[0] + 1)
                    ay = (iy - 1) % (2 * nk[1] + 1)
                    az = (iz - 1) % (2 * nk[2] + 1)
                    kf_int.append([ax, ay - nk[1], az - nk[2]])
                    ki_int.append([kx, ky, kz])
    kf_i = np.asarray(kf_int, np.int64)               # [K, 3]
    ki_i = np.asarray(ki_int, np.int64)
    K = ki_i.shape[0]
    Kp = max(128, int(np.ceil(K / 128.0)) * 128)      # lane-dense padding

    ki_p = np.zeros((3, Kp), np.float32)
    ki_p[:, :K] = ki_i.T.astype(np.float64) * twopi   # 2*pi folded in

    # forward-quirk delta combos (kf - ki): each component takes one of 2 values
    dk_i = kf_i - ki_i                                # [K, 3] integers
    combos, inv = np.unique(dk_i, axis=0, return_inverse=True)
    inv = np.asarray(inv).reshape(-1)
    C = combos.shape[0]
    assert C <= MAX_DELTA_COMBOS, f"unexpected number of delta combos: {C}"
    dk8 = np.zeros((3, MAX_DELTA_COMBOS), np.float32)
    dk8[:, :C] = combos.T.astype(np.float64) * twopi
    onehot8 = np.zeros((MAX_DELTA_COMBOS, Kp), np.float32)
    onehot8[inv, np.arange(K)] = 1.0                  # padded columns stay all-zero

    mask = np.full((1, Kp), -1e30, np.float32)
    mask[:, :K] = 0.0
    return ki_p, dk8, onehot8, mask, K


def permute_readout_weight(w_readout):
    """Permute the 768 output columns so the fused matmul yields [q|k|v], head-major.
    torch layout:  col = h*(3*HEAD_DIM) + which*HEAD_DIM + d   (which: 0=q, 1=k, 2=v)
    new layout:    col' = which*EMBED_DIM + h*HEAD_DIM + d"""
    idx = np.arange(3 * EMBED_DIM)
    which = idx // EMBED_DIM
    rem = idx % EMBED_DIM
    h = rem // HEAD_DIM
    d = rem % HEAD_DIM
    src = (h * (3 * HEAD_DIM) + which * HEAD_DIM + d).astype(np.int32)
    return w_readout[:, jnp.asarray(src)]


def _vmem_capacity_bytes():
    try:
        info = pltpu.get_tpu_info()
        cap = int(getattr(info, "vmem_capacity_bytes", 0))
        if cap > 0:
            return cap
    except Exception:
        pass
    return 64 * 2**20  # conservative (v7x per-core) fallback


def ewald_forward(x_vector, positions, batch, cell, w_readout, box_np, dl=DL,
                  use_bf16=False, approx_softmax=True):
    # TODO(synk): ragged / non-contiguous `batch` masks (torch loops over unique batches)
    # are not handled; graphs are assumed contiguous, equal-sized and to share `box_np`.
    # Non-diagonal (non-orthorhombic) cells are silently reduced to their diagonal.
    del batch
    n_total = x_vector.shape[0]
    box = jnp.diagonal(cell.reshape(-1, 3, 3), axis1=-2, axis2=-1)  # [B, 3]
    B = box.shape[0]
    nb = n_total // B

    x_graphs = x_vector.reshape(B, nb, EMBED_DIM)
    r_norm = positions.reshape(B, nb, 3) / box[:, None, :]          # [B, nb, 3]

    ki_np, dk8_np, oh_np, mask_np, _K = build_kvectors(box_np, dl)  # host-side (data-dep)
    ki = jnp.asarray(ki_np)
    dk8 = jnp.asarray(dk8_np)
    onehot8 = jnp.asarray(oh_np)
    kmask = jnp.asarray(mask_np)
    Kp = ki.shape[1]

    w_perm = permute_readout_weight(w_readout)
    # bf16 operands pay off on v5e (bf16-native MXU) and v7x; on v6e only when the
    # kernel is actually MXU-bound (large nb) -- otherwise casts just add VPU traffic.
    # f32 accumulation, trig and softmax are kept either way.
    mm_dtype = jnp.bfloat16 if use_bf16 else jnp.float32
    if use_bf16:
        w_perm = w_perm.astype(jnp.bfloat16)        # halves the resident weight + DMA

    f32 = 4
    wbytes = w_perm.size * w_perm.dtype.itemsize

    # advisory cost estimate for XLA scheduling around the custom call
    flops = 2 * B * (nb * EMBED_DIM * 3 * EMBED_DIM            # fused readout
                     + 2 * nb * Kp * 2 * EMBED_DIM             # kv potentials (re+im)
                     + NUM_HEADS * nb * Kp * HEAD_DIM          # attention scores
                     + NUM_HEADS * nb * 2 * Kp * HEAD_DIM)     # fused inverse transform
    transcendentals = B * (2 * nb * Kp                          # cos/sin(theta_i)
                           + 2 * nb * MAX_DELTA_COMBOS         # delta-combo trig
                           + NUM_HEADS * nb * Kp               # softmax exp
                           + Kp * EMBED_DIM)                   # |k_pot| sqrt
    bytes_accessed = (f32 * (x_graphs.size + r_norm.size + B * nb * EMBED_DIM)
                      + wbytes
                      + f32 * (ki.size + dk8.size + onehot8.size + kmask.size))
    cost = pl.CostEstimate(flops=int(flops), transcendentals=int(transcendentals),
                           bytes_accessed=int(bytes_accessed))

    # VMEM working set: pipelined per-graph blocks (double-buffered), invariant inputs
    # (single-buffered, counted x2 for safety), and the in-kernel temporaries.
    work_bytes = (
        f32 * (2 * nb * EMBED_DIM + 2 * nb * 3 + 2 * nb * EMBED_DIM)      # x, r, out
        + 2 * wbytes
        + 2 * f32 * (3 * Kp + 3 * MAX_DELTA_COMBOS + MAX_DELTA_COMBOS * Kp + Kp)
        + f32 * (nb * 3 * EMBED_DIM                 # qkv
                 + 10 * nb * Kp                     # trig / delta / score temporaries
                 + 2 * nb * 2 * Kp                  # per-head [p*cos | p*sin] concat
                 + 2 * Kp * 2 * EMBED_DIM           # kv_pot re/im
                 + 3 * Kp * EMBED_DIM               # |k_pot| + vpot_ri
                 + nb * EMBED_DIM))                 # output concat
    vmem_cap = _vmem_capacity_bytes()               # per-generation (v7x 64 MiB / core)
    vmem_limit = int(min(max(24 * 2**20, 2 * work_bytes), int(0.72 * vmem_cap)))

    out = ewald_pallas(x_graphs, w_perm, r_norm, ki, dk8, onehot8, kmask,
                       mm_dtype=mm_dtype, approx_recip=approx_softmax,
                       vmem_limit_bytes=vmem_limit, cost_estimate=cost)
    return out.reshape(n_total, EMBED_DIM)


# ----------------------------------------------------------------------------- main
if __name__ == "__main__":
    key = jax.random.PRNGKey(0)
    k1, k2, k3 = jax.random.split(key, 3)

    B, NB = 2, 8
    N = B * NB
    box_len = 8.0

    x_vector = jax.random.normal(k1, (N, EMBED_DIM), dtype=jnp.float32)
    positions = jax.random.uniform(k2, (N, 3), dtype=jnp.float32) * box_len
    cell = jnp.tile((jnp.eye(3, dtype=jnp.float32) * box_len)[None], (B, 1, 1))
    batch = jnp.repeat(jnp.arange(B, dtype=jnp.int32), NB)

    # deterministic readout weights (o3.Linear-style scalar linear, 1/sqrt(fan_in) scale)
    w_readout = jax.random.normal(k3, (EMBED_DIM, 3 * EMBED_DIM), dtype=jnp.float32) / jnp.sqrt(
        jnp.float32(EMBED_DIM))

    out = ewald_forward(
        x_vector, positions, batch, cell, w_readout,
        box_np=np.array([box_len, box_len, box_len], dtype=np.float64),
        use_bf16=False,        # keep f32 for reference parity; see comment in ewald_forward
        approx_softmax=True,   # pl.reciprocal(approx=True); set False for exact f32 divide
    )
    out = jax.block_until_ready(out)
    assert out.shape == (N, EMBED_DIM) and out.dtype == jnp.float32
    assert bool(jnp.all(jnp.isfinite(out)))
    print("KERNEL_OK")
</pallas_src>

<mosaic_0001>
module attributes {stable_mosaic.version = 11 : i64} {
  func.func @_ewald_fused_kernel(%arg0: i32, %arg1: memref<1x8x256xf32, #tpu.memory_space<vmem>>, %arg2: memref<256x768xf32, #tpu.memory_space<vmem>>, %arg3: memref<1x8x3xf32, #tpu.memory_space<vmem>>, %arg4: memref<3x128xf32, #tpu.memory_space<vmem>>, %arg5: memref<3x8xf32, #tpu.memory_space<vmem>>, %arg6: memref<8x128xf32, #tpu.memory_space<vmem>>, %arg7: memref<1x128xf32, #tpu.memory_space<vmem>>, %arg8: memref<1x8x256xf32, #tpu.memory_space<vmem>>) attributes {dimension_semantics = [#tpu.dimension_semantics<parallel>], iteration_bounds = array<i64: 2>, scalar_prefetch = 0 : i64, scratch_operands = 0 : i64, tpu.core_type = #tpu.core_type<tc>, window_params = [{transform_indices = @transform_0, window_bounds = array<i64: 1, 8, 256>}, {pipeline_mode = #tpu.pipeline_mode<synchronous>, transform_indices = @transform_1, window_bounds = array<i64: 256, 768>}, {transform_indices = @transform_2, window_bounds = array<i64: 1, 8, 3>}, {pipeline_mode = #tpu.pipeline_mode<synchronous>, transform_indices = @transform_3, window_bounds = array<i64: 3, 128>}, {pipeline_mode = #tpu.pipeline_mode<synchronous>, transform_indices = @transform_4, window_bounds = array<i64: 3, 8>}, {pipeline_mode = #tpu.pipeline_mode<synchronous>, transform_indices = @transform_5, window_bounds = array<i64: 8, 128>}, {pipeline_mode = #tpu.pipeline_mode<synchronous>, transform_indices = @transform_6, window_bounds = array<i64: 1, 128>}, {transform_indices = @transform_7, window_bounds = array<i64: 1, 8, 256>}]} {
    %c0 = arith.constant 0 : index
    %c0_0 = arith.constant 0 : index
    %c0_1 = arith.constant 0 : index
    %0 = vector.load %arg1[%c0, %c0_0, %c0_1] : memref<1x8x256xf32, #tpu.memory_space<vmem>>, vector<1x8x256xf32>
    %1 = vector.shape_cast %0 : vector<1x8x256xf32> to vector<8x256xf32>
    %c0_2 = arith.constant 0 : index
    %c0_3 = arith.constant 0 : index
    %2 = vector.load %arg2[%c0_2, %c0_3] : memref<256x768xf32, #tpu.memory_space<vmem>>, vector<256x768xf32>
    %cst = arith.constant dense<0.000000e+00> : vector<8x768xf32>
    %3 = tpu.matmul %1, %2, %cst {dimension_numbers = #tpu.dot_dimension_numbers<[1], [0], [0], [1], [0, 0, 1, 1], [], []>} : vector<8x256xf32>, vector<256x768xf32>, vector<8x768xf32> -> vector<8x768xf32>
    %4 = vector.extract_strided_slice %3 {offsets = [0, 0], sizes = [8, 256], strides = [1, 1]} : vector<8x768xf32> to vector<8x256xf32>
    %5 = vector.extract_strided_slice %3 {offsets = [0, 256], sizes = [8, 512], strides = [1, 1]} : vector<8x768xf32> to vector<8x512xf32>
    %c0_4 = arith.constant 0 : index
    %c0_5 = arith.constant 0 : index
    %c0_6 = arith.constant 0 : index
    %6 = vector.load %arg3[%c0_4, %c0_5, %c0_6] : memref<1x8x3xf32, #tpu.memory_space<vmem>>, vector<1x8x3xf32>
    %7 = vector.shape_cast %6 : vector<1x8x3xf32> to vector<8x3xf32>
    %c0_7 = arith.constant 0 : index
    %c0_8 = arith.constant 0 : index
    %8 = vector.load %arg4[%c0_7, %c0_8] : memref<3x128xf32, #tpu.memory_space<vmem>>, vector<3x128xf32>
    %9 = vector.extract_strided_slice %7 {offsets = [0, 0], sizes = [8, 1], strides = [1, 1]} : vector<8x3xf32> to vector<8x1xf32>
    %10 = vector.extract_strided_slice %8 {offsets = [0, 0], sizes = [1, 128], strides = [1, 1]} : vector<3x128xf32> to vector<1x128xf32>
    %11 = vector.broadcast %9 : vector<8x1xf32> to vector<8x128xf32>
    %12 = vector.broadcast %10 : vector<1x128xf32> to vector<8x128xf32>
    %13 = arith.mulf %11, %12 : vector<8x128xf32>
    %14 = vector.extract_strided_slice %7 {offsets = [0, 1], sizes = [8, 1], strides = [1, 1]} : vector<8x3xf32> to vector<8x1xf32>
    %15 = vector.extract_strided_slice %8 {offsets = [1, 0], sizes = [1, 128], strides = [1, 1]} : vector<3x128xf32> to vector<1x128xf32>
    %16 = vector.broadcast %14 : vector<8x1xf32> to vector<8x128xf32>
    %17 = vector.broadcast %15 : vector<1x128xf32> to vector<8x128xf32>
    %18 = arith.mulf %16, %17 : vector<8x128xf32>
    %19 = arith.addf %13, %18 : vector<8x128xf32>
    %20 = vector.extract_strided_slice %7 {offsets = [0, 2], sizes = [8, 1], strides = [1, 1]} : vector<8x3xf32> to vector<8x1xf32>
    %21 = vector.extract_strided_slice %8 {offsets = [2, 0], sizes = [1, 128], strides = [1, 1]} : vector<3x128xf32> to vector<1x128xf32>
    %22 = vector.broadcast %20 : vector<8x1xf32> to vector<8x128xf32>
    %23 = vector.broadcast %21 : vector<1x128xf32> to vector<8x128xf32>
    %24 = arith.mulf %22, %23 : vector<8x128xf32>
    %25 = arith.addf %19, %24 : vector<8x128xf32>
    %26 = math.cos %25 : vector<8x128xf32>
    %27 = math.sin %25 : vector<8x128xf32>
    %c0_9 = arith.constant 0 : index
    %c0_10 = arith.constant 0 : index
    %28 = vector.load %arg5[%c0_9, %c0_10] : memref<3x8xf32, #tpu.memory_space<vmem>>, vector<3x8xf32>
    %29 = vector.extract_strided_slice %7 {offsets = [0, 0], sizes = [8, 1], strides = [1, 1]} : vector<8x3xf32> to vector<8x1xf32>
    %30 = vector.extract_strided_slice %28 {offsets = [0, 0], sizes = [1, 8], strides = [1, 1]} : vector<3x8xf32> to vector<1x8xf32>
    %31 = vector.broadcast %29 : vector<8x1xf32> to vector<8x8xf32>
    %32 = vector.broadcast %30 : vector<1x8xf32> to vector<8x8xf32>
    %33 = arith.mulf %31, %32 : vector<8x8xf32>
    %34 = vector.extract_strided_slice %7 {offsets = [0, 1], sizes = [8, 1], strides = [1, 1]} : vector<8x3xf32> to vector<8x1xf32>
    %35 = vector.extract_strided_slice %28 {offsets = [1, 0], sizes = [1, 8], strides = [1, 1]} : vector<3x8xf32> to vector<1x8xf32>
    %36 = vector.broadcast %34 : vector<8x1xf32> to vector<8x8xf32>
    %37 = vector.broadcast %35 : vector<1x8xf32> to vector<8x8xf32>
    %38 = arith.mulf %36, %37 : vector<8x8xf32>
    %39 = arith.addf %33, %38 : vector<8x8xf32>
    %40 = vector.extract_strided_slice %7 {offsets = [0, 2], sizes = [8, 1], strides = [1, 1]} : vector<8x3xf32> to vector<8x1xf32>
    %41 = vector.extract_strided_slice %28 {offsets = [2, 0], sizes = [1, 8], strides = [1, 1]} : vector<3x8xf32> to vector<1x8xf32>
    %42 = vector.broadcast %40 : vector<8x1xf32> to vector<8x8xf32>
    %43 = vector.broadcast %41 : vector<1x8xf32> to vector<8x8xf32>
    %44 = arith.mulf %42, %43 : vector<8x8xf32>
    %45 = arith.addf %39, %44 : vector<8x8xf32>
    %46 = math.cos %45 : vector<8x8xf32>
    %47 = math.sin %45 : vector<8x8xf32>
    %c0_11 = arith.constant 0 : index
    %c0_12 = arith.constant 0 : index
    %48 = vector.load %arg6[%c0_11, %c0_12] : memref<8x128xf32, #tpu.memory_space<vmem>>, vector<8x128xf32>
    %cst_13 = arith.constant 0.000000e+00 : f32
    %49 = vector.broadcast %cst_13 : f32 to vector<8x128xf32>
    %cst_14 = arith.constant 0.000000e+00 : f32
    %50 = vector.broadcast %cst_14 : f32 to vector<8x128xf32>
    %51 = vector.extract_strided_slice %48 {offsets = [0, 0], sizes = [1, 128], strides = [1, 1]} : vector<8x128xf32> to vector<1x128xf32>
    %52 = vector.extract_strided_slice %46 {offsets = [0, 0], sizes = [8, 1], strides = [1, 1]} : vector<8x8xf32> to vector<8x1xf32>
    %53 = vector.broadcast %51 : vector<1x128xf32> to vector<8x128xf32>
    %54 = vector.broadcast %52 : vector<8x1xf32> to vector<8x128xf32>
    %55 = arith.mulf %53, %54 : vector<8x128xf32>
    %56 = arith.addf %49, %55 : vector<8x128xf32>
    %57 = vector.extract_strided_slice %47 {offsets = [0, 0], sizes = [8, 1], strides = [1, 1]} : vector<8x8xf32> to vector<8x1xf32>
    %58 = vector.broadcast %51 : vector<1x128xf32> to vector<8x128xf32>
    %59 = vector.broadcast %57 : vector<8x1xf32> to vector<8x128xf32>
    %60 = arith.mulf %58, %59 : vector<8x128xf32>
    %61 = arith.addf %50, %60 : vector<8x128xf32>
    %62 = vector.extract_strided_slice %48 {offsets = [1, 0], sizes = [1, 128], strides = [1, 1]} : vector<8x128xf32> to vector<1x128xf32>
    %63 = vector.extract_strided_slice %46 {offsets = [0, 1], sizes = [8, 1], strides = [1, 1]} : vector<8x8xf32> to vector<8x1xf32>
    %64 = vector.broadcast %62 : vector<1x128xf32> to vector<8x128xf32>
    %65 = vector.broadcast %63 : vector<8x1xf32> to vector<8x128xf32>
    %66 = arith.mulf %64, %65 : vector<8x128xf32>
    %67 = arith.addf %56, %66 : vector<8x128xf32>
    %68 = vector.extract_strided_slice %47 {offsets = [0, 1], sizes = [8, 1], strides = [1, 1]} : vector<8x8xf32> to vector<8x1xf32>
    %69 = vector.broadcast %62 : vector<1x128xf32> to vector<8x128xf32>
    %70 = vector.broadcast %68 : vector<8x1xf32> to vector<8x128xf32>
    %71 = arith.mulf %69, %70 : vector<8x128xf32>
    %72 = arith.addf %61, %71 : vector<8x128xf32>
    %73 = vector.extract_strided_slice %48 {offsets = [2, 0], sizes = [1, 128], strides = [1, 1]} : vector<8x128xf32> to vector<1x128xf32>
    %74 = vector.extract_strided_slice %46 {offsets = [0, 2], sizes = [8, 1], strides = [1, 1]} : vector<8x8xf32> to vector<8x1xf32>
    %75 = vector.broadcast %73 : vector<1x128xf32> to vector<8x128xf32>
    %76 = vector.broadcast %74 : vector<8x1xf32> to vector<8x128xf32>
    %77 = arith.mulf %75, %76 : vector<8x128xf32>
    %78 = arith.addf %67, %77 : vector<8x128xf32>
    %79 = vector.extract_strided_slice %47 {offsets = [0, 2], sizes = [8, 1], strides = [1, 1]} : vector<8x8xf32> to vector<8x1xf32>
    %80 = vector.broadcast %73 : vector<1x128xf32> to vector<8x128xf32>
    %81 = vector.broadcast %79 : vector<8x1xf32> to vector<8x128xf32>
    %82 = arith.mulf %80, %81 : vector<8x128xf32>
    %83 = arith.addf %72, %82 : vector<8x128xf32>
    %84 = vector.extract_strided_slice %48 {offsets = [3, 0], sizes = [1, 128], strides = [1, 1]} : vector<8x128xf32> to vector<1x128xf32>
    %85 = vector.extract_strided_slice %46 {offsets = [0, 3], sizes = [8, 1], strides = [1, 1]} : vector<8x8xf32> to vector<8x1xf32>
    %86 = vector.broadcast %84 : vector<1x128xf32> to vector<8x128xf32>
    %87 = vector.broadcast %85 : vector<8x1xf32> to vector<8x128xf32>
    %88 = arith.mulf %86, %87 : vector<8x128xf32>
    %89 = arith.addf %78, %88 : vector<8x128xf32>
    %90 = vector.extract_strided_slice %47 {offsets = [0, 3], sizes = [8, 1], strides = [1, 1]} : vector<8x8xf32> to vector<8x1xf32>
    %91 = vector.broadcast %84 : vector<1x128xf32> to vector<8x128xf32>
    %92 = vector.broadcast %90 : vector<8x1xf32> to vector<8x128xf32>
    %93 = arith.mulf %91, %92 : vector<8x128xf32>
    %94 = arith.addf %83, %93 : vector<8x128xf32>
    %95 = vector.extract_strided_slice %48 {offsets = [4, 0], sizes = [1, 128], strides = [1, 1]} : vector<8x128xf32> to vector<1x128xf32>
    %96 = vector.extract_strided_slice %46 {offsets = [0, 4], sizes = [8, 1], strides = [1, 1]} : vector<8x8xf32> to vector<8x1xf32>
    %97 = vector.broadcast %95 : vector<1x128xf32> to vector<8x128xf32>
    %98 = vector.broadcast %96 : vector<8x1xf32> to vector<8x128xf32>
    %99 = arith.mulf %97, %98 : vector<8x128xf32>
    %100 = arith.addf %89, %99 : vector<8x128xf32>
    %101 = vector.extract_strided_slice %47 {offsets = [0, 4], sizes = [8, 1], strides = [1, 1]} : vector<8x8xf32> to vector<8x1xf32>
    %102 = vector.broadcast %95 : vector<1x128xf32> to vector<8x128xf32>
    %103 = vector.broadcast %101 : vector<8x1xf32> to vector<8x128xf32>
    %104 = arith.mulf %102, %103 : vector<8x128xf32>
    %105 = arith.addf %94, %104 : vector<8x128xf32>
    %106 = vector.extract_strided_slice %48 {offsets = [5, 0], sizes = [1, 128], strides = [1, 1]} : vector<8x128xf32> to vector<1x128xf32>
    %107 = vector.extract_strided_slice %46 {offsets = [0, 5], sizes = [8, 1], strides = [1, 1]} : vector<8x8xf32> to vector<8x1xf32>
    %108 = vector.broadcast %106 : vector<1x128xf32> to vector<8x128xf32>
    %109 = vector.broadcast %107 : vector<8x1xf32> to vector<8x128xf32>
    %110 = arith.mulf %108, %109 : vector<8x128xf32>
    %111 = arith.addf %100, %110 : vector<8x128xf32>
    %112 = vector.extract_strided_slice %47 {offsets = [0, 5], sizes = [8, 1], strides = [1, 1]} : vector<8x8xf32> to vector<8x1xf32>
    %113 = vector.broadcast %106 : vector<1x128xf32> to vector<8x128xf32>
    %114 = vector.broadcast %112 : vector<8x1xf32> to vector<8x128xf32>
    %115 = arith.mulf %113, %114 : vector<8x128xf32>
    %116 = arith.addf %105, %115 : vector<8x128xf32>
    %117 = vector.extract_strided_slice %48 {offsets = [6, 0], sizes = [1, 128], strides = [1, 1]} : vector<8x128xf32> to vector<1x128xf32>
    %118 = vector.extract_strided_slice %46 {offsets = [0, 6], sizes = [8, 1], strides = [1, 1]} : vector<8x8xf32> to vector<8x1xf32>
    %119 = vector.broadcast %117 : vector<1x128xf32> to vector<8x128xf32>
    %120 = vector.broadcast %118 : vector<8x1xf32> to vector<8x128xf32>
    %121 = arith.mulf %119, %120 : vector<8x128xf32>
    %122 = arith.addf %111, %121 : vector<8x128xf32>
    %123 = vector.extract_strided_slice %47 {offsets = [0, 6], sizes = [8, 1], strides = [1, 1]} : vector<8x8xf32> to vector<8x1xf32>
    %124 = vector.broadcast %117 : vector<1x128xf32> to vector<8x128xf32>
    %125 = vector.broadcast %123 : vector<8x1xf32> to vector<8x128xf32>
    %126 = arith.mulf %124, %125 : vector<8x128xf32>
    %127 = arith.addf %116, %126 : vector<8x128xf32>
    %128 = vector.extract_strided_slice %48 {offsets = [7, 0], sizes = [1, 128], strides = [1, 1]} : vector<8x128xf32> to vector<1x128xf32>
    %129 = vector.extract_strided_slice %46 {offsets = [0, 7], sizes = [8, 1], strides = [1, 1]} : vector<8x8xf32> to vector<8x1xf32>
    %130 = vector.broadcast %128 : vector<1x128xf32> to vector<8x128xf32>
    %131 = vector.broadcast %129 : vector<8x1xf32> to vector<8x128xf32>
    %132 = arith.mulf %130, %131 : vector<8x128xf32>
    %133 = arith.addf %122, %132 : vector<8x128xf32>
    %134 = vector.extract_strided_slice %47 {offsets = [0, 7], sizes = [8, 1], strides = [1, 1]} : vector<8x8xf32> to vector<8x1xf32>
    %135 = vector.broadcast %128 : vector<1x128xf32> to vector<8x128xf32>
    %136 = vector.broadcast %134 : vector<8x1xf32> to vector<8x128xf32>
    %137 = arith.mulf %135, %136 : vector<8x128xf32>
    %138 = arith.addf %127, %137 : vector<8x128xf32>
    %139 = arith.mulf %26, %133 : vector<8x128xf32>
    %140 = arith.mulf %27, %138 : vector<8x128xf32>
    %141 = arith.subf %139, %140 : vector<8x128xf32>
    %142 = arith.mulf %27, %133 : vector<8x128xf32>
    %143 = arith.mulf %26, %138 : vector<8x128xf32>
    %144 = arith.addf %142, %143 : vector<8x128xf32>
    %cst_15 = arith.constant dense<0.000000e+00> : vector<128x512xf32>
    %145 = tpu.matmul %141, %5, %cst_15 {dimension_numbers = #tpu.dot_dimension_numbers<[0], [0], [1], [1], [0, 1, 1, 1], [], []>} : vector<8x128xf32>, vector<8x512xf32>, vector<128x512xf32> -> vector<128x512xf32>
    %cst_16 = arith.constant dense<0.000000e+00> : vector<128x512xf32>
    %146 = tpu.matmul %144, %5, %cst_16 {dimension_numbers = #tpu.dot_dimension_numbers<[0], [0], [1], [1], [0, 1, 1, 1], [], []>} : vector<8x128xf32>, vector<8x512xf32>, vector<128x512xf32> -> vector<128x512xf32>
    %147 = vector.extract_strided_slice %145 {offsets = [0, 0], sizes = [128, 256], strides = [1, 1]} : vector<128x512xf32> to vector<128x256xf32>
    %148 = vector.extract_strided_slice %145 {offsets = [0, 256], sizes = [128, 256], strides = [1, 1]} : vector<128x512xf32> to vector<128x256xf32>
    %149 = vector.extract_strided_slice %146 {offsets = [0, 0], sizes = [128, 256], strides = [1, 1]} : vector<128x512xf32> to vector<128x256xf32>
    %150 = vector.extract_strided_slice %146 {offsets = [0, 256], sizes = [128, 256], strides = [1, 1]} : vector<128x512xf32> to vector<128x256xf32>
    %151 = arith.mulf %147, %147 : vector<128x256xf32>
    %152 = arith.mulf %149, %149 : vector<128x256xf32>
    %153 = arith.addf %151, %152 : vector<128x256xf32>
    %154 = math.sqrt %153 : vector<128x256xf32>
    %155 = tpu.concatenate %148, %150 in 0 : vector<128x256xf32>, vector<128x256xf32> -> vector<256x256xf32>
    %156 = math.absf %4 : vector<8x256xf32>
    %c0_17 = arith.constant 0 : index
    %c0_18 = arith.constant 0 : index
    %157 = vector.load %arg7[%c0_17, %c0_18] : memref<1x128xf32, #tpu.memory_space<vmem>>, vector<1x128xf32>
    %158 = vector.extract_strided_slice %156 {offsets = [0, 0], sizes = [8, 64], strides = [1, 1]} : vector<8x256xf32> to vector<8x64xf32>
    %159 = vector.extract_strided_slice %154 {offsets = [0, 0], sizes = [128, 64], strides = [1, 1]} : vector<128x256xf32> to vector<128x64xf32>
    %cst_19 = arith.constant dense<0.000000e+00> : vector<8x128xf32>
    %160 = tpu.matmul %158, %159, %cst_19 {dimension_numbers = #tpu.dot_dimension_numbers<[1], [1], [0], [0], [0, 0, 1, 0], [], []>} : vector<8x64xf32>, vector<128x64xf32>, vector<8x128xf32> -> vector<8x128xf32>
    %161 = vector.broadcast %157 : vector<1x128xf32> to vector<8x128xf32>
    %162 = arith.addf %160, %161 : vector<8x128xf32>
    %cst_20 = arith.constant dense<0xFF800000> : vector<8xf32>
    %163 = vector.multi_reduction <maximumf>, %162, %cst_20 [1] : vector<8x128xf32> to vector<8xf32>
    %164 = vector.shape_cast %163 : vector<8xf32> to vector<8x1xf32>
    %165 = vector.broadcast %164 : vector<8x1xf32> to vector<8x128xf32>
    %166 = arith.subf %162, %165 : vector<8x128xf32>
    %167 = math.exp %166 : vector<8x128xf32>
    %cst_21 = arith.constant dense<0.000000e+00> : vector<8xf32>
    %168 = vector.multi_reduction <add>, %167, %cst_21 [1] : vector<8x128xf32> to vector<8xf32>
    %169 = vector.shape_cast %168 : vector<8xf32> to vector<8x1xf32>
    %170 = tpu.reciprocal %169 {approx = true} : vector<8x1xf32> -> vector<8x1xf32>
    %171 = vector.broadcast %170 : vector<8x1xf32> to vector<8x128xf32>
    %172 = arith.mulf %167, %171 : vector<8x128xf32>
    %173 = arith.mulf %172, %26 : vector<8x128xf32>
    %174 = arith.mulf %172, %27 : vector<8x128xf32>
    %175 = tpu.concatenate %173, %174 in 1 : vector<8x128xf32>, vector<8x128xf32> -> vector<8x256xf32>
    %176 = vector.extract_strided_slice %155 {offsets = [0, 0], sizes = [256, 64], strides = [1, 1]} : vector<256x256xf32> to vector<256x64xf32>
    %cst_22 = arith.constant dense<0.000000e+00> : vector<8x64xf32>
    %177 = tpu.matmul %175, %176, %cst_22 {dimension_numbers = #tpu.dot_dimension_numbers<[1], [0], [0], [1], [0, 0, 1, 1], [], []>} : vector<8x256xf32>, vector<256x64xf32>, vector<8x64xf32> -> vector<8x64xf32>
    %178 = vector.extract_strided_slice %156 {offsets = [0, 64], sizes = [8, 64], strides = [1, 1]} : vector<8x256xf32> to vector<8x64xf32>
    %179 = vector.extract_strided_slice %154 {offsets = [0, 64], sizes = [128, 64], strides = [1, 1]} : vector<128x256xf32> to vector<128x64xf32>
    %cst_23 = arith.constant dense<0.000000e+00> : vector<8x128xf32>
    %180 = tpu.matmul %178, %179, %cst_23 {dimension_numbers = #tpu.dot_dimension_numbers<[1], [1], [0], [0], [0, 0, 1, 0], [], []>} : vector<8x64xf32>, vector<128x64xf32>, vector<8x128xf32> -> vector<8x128xf32>
    %181 = vector.broadcast %157 : vector<1x128xf32> to vector<8x128xf32>
    %182 = arith.addf %180, %181 : vector<8x128xf32>
    %cst_24 = arith.constant dense<0xFF800000> : vector<8xf32>
    %183 = vector.multi_reduction <maximumf>, %182, %cst_24 [1] : vector<8x128xf32> to vector<8xf32>
    %184 = vector.shape_cast %183 : vector<8xf32> to vector<8x1xf32>
    %185 = vector.broadcast %184 : vector<8x1xf32> to vector<8x128xf32>
    %186 = arith.subf %182, %185 : vector<8x128xf32>
    %187 = math.exp %186 : vector<8x128xf32>
    %cst_25 = arith.constant dense<0.000000e+00> : vector<8xf32>
    %188 = vector.multi_reduction <add>, %187, %cst_25 [1] : vector<8x128xf32> to vector<8xf32>
    %189 = vector.shape_cast %188 : vector<8xf32> to vector<8x1xf32>
    %190 = tpu.reciprocal %189 {approx = true} : vector<8x1xf32> -> vector<8x1xf32>
    %191 = vector.broadcast %190 : vector<8x1xf32> to vector<8x128xf32>
    %192 = arith.mulf %187, %191 : vector<8x128xf32>
    %193 = arith.mulf %192, %26 : vector<8x128xf32>
    %194 = arith.mulf %192, %27 : vector<8x128xf32>
    %195 = tpu.concatenate %193, %194 in 1 : vector<8x128xf32>, vector<8x128xf32> -> vector<8x256xf32>
    %196 = vector.extract_strided_slice %155 {offsets = [0, 64], sizes = [256, 64], strides = [1, 1]} : vector<256x256xf32> to vector<256x64xf32>
    %cst_26 = arith.constant dense<0.000000e+00> : vector<8x64xf32>
    %197 = tpu.matmul %195, %196, %cst_26 {dimension_numbers = #tpu.dot_dimension_numbers<[1], [0], [0], [1], [0, 0, 1, 1], [], []>} : vector<8x256xf32>, vector<256x64xf32>, vector<8x64xf32> -> vector<8x64xf32>
    %198 = vector.extract_strided_slice %156 {offsets = [0, 128], sizes = [8, 64], strides = [1, 1]} : vector<8x256xf32> to vector<8x64xf32>
    %199 = vector.extract_strided_slice %154 {offsets = [0, 128], sizes = [128, 64], strides = [1, 1]} : vector<128x256xf32> to vector<128x64xf32>
    %cst_27 = arith.constant dense<0.000000e+00> : vector<8x128xf32>
    %200 = tpu.matmul %198, %199, %cst_27 {dimension_numbers = #tpu.dot_dimension_numbers<[1], [1], [0], [0], [0, 0, 1, 0], [], []>} : vector<8x64xf32>, vector<128x64xf32>, vector<8x128xf32> -> vector<8x128xf32>
    %201 = vector.broadcast %157 : vector<1x128xf32> to vector<8x128xf32>
    %202 = arith.addf %200, %201 : vector<8x128xf32>
    %cst_28 = arith.constant dense<0xFF800000> : vector<8xf32>
    %203 = vector.multi_reduction <maximumf>, %202, %cst_28 [1] : vector<8x128xf32> to vector<8xf32>
    %204 = vector.shape_cast %203 : vector<8xf32> to vector<8x1xf32>
    %205 = vector.broadcast %204 : vector<8x1xf32> to vector<8x128xf32>
    %206 = arith.subf %202, %205 : vector<8x128xf32>
    %207 = math.exp %206 : vector<8x128xf32>
    %cst_29 = arith.constant dense<0.000000e+00> : vector<8xf32>
    %208 = vector.multi_reduction <add>, %207, %cst_29 [1] : vector<8x128xf32> to vector<8xf32>
    %209 = vector.shape_cast %208 : vector<8xf32> to vector<8x1xf32>
    %210 = tpu.reciprocal %209 {approx = true} : vector<8x1xf32> -> vector<8x1xf32>
    %211 = vector.broadcast %210 : vector<8x1xf32> to vector<8x128xf32>
    %212 = arith.mulf %207, %211 : vector<8x128xf32>
    %213 = arith.mulf %212, %26 : vector<8x128xf32>
    %214 = arith.mulf %212, %27 : vector<8x128xf32>
    %215 = tpu.concatenate %213, %214 in 1 : vector<8x128xf32>, vector<8x128xf32> -> vector<8x256xf32>
    %216 = vector.extract_strided_slice %155 {offsets = [0, 128], sizes = [256, 64], strides = [1, 1]} : vector<256x256xf32> to vector<256x64xf32>
    %cst_30 = arith.constant dense<0.000000e+00> : vector<8x64xf32>
    %217 = tpu.matmul %215, %216, %cst_30 {dimension_numbers = #tpu.dot_dimension_numbers<[1], [0], [0], [1], [0, 0, 1, 1], [], []>} : vector<8x256xf32>, vector<256x64xf32>, vector<8x64xf32> -> vector<8x64xf32>
    %218 = vector.extract_strided_slice %156 {offsets = [0, 192], sizes = [8, 64], strides = [1, 1]} : vector<8x256xf32> to vector<8x64xf32>
    %219 = vector.extract_strided_slice %154 {offsets = [0, 192], sizes = [128, 64], strides = [1, 1]} : vector<128x256xf32> to vector<128x64xf32>
    %cst_31 = arith.constant dense<0.000000e+00> : vector<8x128xf32>
    %220 = tpu.matmul %218, %219, %cst_31 {dimension_numbers = #tpu.dot_dimension_numbers<[1], [1], [0], [0], [0, 0, 1, 0], [], []>} : vector<8x64xf32>, vector<128x64xf32>, vector<8x128xf32> -> vector<8x128xf32>
    %221 = vector.broadcast %157 : vector<1x128xf32> to vector<8x128xf32>
    %222 = arith.addf %220, %221 : vector<8x128xf32>
    %cst_32 = arith.constant dense<0xFF800000> : vector<8xf32>
    %223 = vector.multi_reduction <maximumf>, %222, %cst_32 [1] : vector<8x128xf32> to vector<8xf32>
    %224 = vector.shape_cast %223 : vector<8xf32> to vector<8x1xf32>
    %225 = vector.broadcast %224 : vector<8x1xf32> to vector<8x128xf32>
    %226 = arith.subf %222, %225 : vector<8x128xf32>
    %227 = math.exp %226 : vector<8x128xf32>
    %cst_33 = arith.constant dense<0.000000e+00> : vector<8xf32>
    %228 = vector.multi_reduction <add>, %227, %cst_33 [1] : vector<8x128xf32> to vector<8xf32>
    %229 = vector.shape_cast %228 : vector<8xf32> to vector<8x1xf32>
    %230 = tpu.reciprocal %229 {approx = true} : vector<8x1xf32> -> vector<8x1xf32>
    %231 = vector.broadcast %230 : vector<8x1xf32> to vector<8x128xf32>
    %232 = arith.mulf %227, %231 : vector<8x128xf32>
    %233 = arith.mulf %232, %26 : vector<8x128xf32>
    %234 = arith.mulf %232, %27 : vector<8x128xf32>
    %235 = tpu.concatenate %233, %234 in 1 : vector<8x128xf32>, vector<8x128xf32> -> vector<8x256xf32>
    %236 = vector.extract_strided_slice %155 {offsets = [0, 192], sizes = [256, 64], strides = [1, 1]} : vector<256x256xf32> to vector<256x64xf32>
    %cst_34 = arith.constant dense<0.000000e+00> : vector<8x64xf32>
    %237 = tpu.matmul %235, %236, %cst_34 {dimension_numbers = #tpu.dot_dimension_numbers<[1], [0], [0], [1], [0, 0, 1, 1], [], []>} : vector<8x256xf32>, vector<256x64xf32>, vector<8x64xf32> -> vector<8x64xf32>
    %238 = tpu.concatenate %177, %197, %217, %237 in 1 : vector<8x64xf32>, vector<8x64xf32>, vector<8x64xf32>, vector<8x64xf32> -> vector<8x256xf32>
    %c0_35 = arith.constant 0 : index
    %c0_36 = arith.constant 0 : index
    %c0_37 = arith.constant 0 : index
    %239 = vector.load %arg8[%c0_35, %c0_36, %c0_37] : memref<1x8x256xf32, #tpu.memory_space<vmem>>, vector<1x8x256xf32>
    %240 = vector.shape_cast %239 : vector<1x8x256xf32> to vector<8x256xf32>
    %241 = vector.shape_cast %238 : vector<8x256xf32> to vector<1x8x256xf32>
    tpu.vector_store %arg8[%c0_35, %c0_36, %c0_37], %241 {strides = array<i32>} : memref<1x8x256xf32, #tpu.memory_space<vmem>>, vector<1x8x256xf32>,
    return
  }
  func.func @transform_0(%arg0: i32) -> (i32, i32, i32) {
    %c0_i32 = arith.constant 0 : i32
    %c0_i32_0 = arith.constant 0 : i32
    %c0_i32_1 = arith.constant 0 : i32
    return %arg0, %c0_i32, %c0_i32_0 : i32, i32, i32
  }
  func.func @transform_1(%arg0: i32) -> (i32, i32) {
    %c0_i32 = arith.constant 0 : i32
    %c0_i32_0 = arith.constant 0 : i32
    %c0_i32_1 = arith.constant 0 : i32
    return %c0_i32, %c0_i32_0 : i32, i32
  }
  func.func @transform_2(%arg0: i32) -> (i32, i32, i32) {
    %c0_i32 = arith.constant 0 : i32
    %c0_i32_0 = arith.constant 0 : i32
    %c0_i32_1 = arith.constant 0 : i32
    return %arg0, %c0_i32, %c0_i32_0 : i32, i32, i32
  }
  func.func @transform_3(%arg0: i32) -> (i32, i32) {
    %c0_i32 = arith.constant 0 : i32
    %c0_i32_0 = arith.constant 0 : i32
    %c0_i32_1 = arith.constant 0 : i32
    return %c0_i32, %c0_i32_0 : i32, i32
  }
  func.func @transform_4(%arg0: i32) -> (i32, i32) {
    %c0_i32 = arith.constant 0 : i32
    %c0_i32_0 = arith.constant 0 : i32
    %c0_i32_1 = arith.constant 0 : i32
    return %c0_i32, %c0_i32_0 : i32, i32
  }
  func.func @transform_5(%arg0: i32) -> (i32, i32) {
    %c0_i32 = arith.constant 0 : i32
    %c0_i32_0 = arith.constant 0 : i32
    %c0_i32_1 = arith.constant 0 : i32
    return %c0_i32, %c0_i32_0 : i32, i32
  }
  func.func @transform_6(%arg0: i32) -> (i32, i32) {
    %c0_i32 = arith.constant 0 : i32
    %c0_i32_0 = arith.constant 0 : i32
    %c0_i32_1 = arith.constant 0 : i32
    return %c0_i32, %c0_i32_0 : i32, i32
  }
  func.func @transform_7(%arg0: i32) -> (i32, i32, i32) {
    %c0_i32 = arith.constant 0 : i32
    %c0_i32_0 = arith.constant 0 : i32
    %c0_i32_1 = arith.constant 0 : i32
    return %arg0, %c0_i32, %c0_i32_0 : i32, i32, i32
  }
}

</mosaic_0001>

<bundles_post_ra>
// kernel: tpu_custom_call.1
= control target key start
LH: loop header
LB: loop body
LE: loop exit
PB: predicated region body
PF: predicated region fallthrough
CT: control target
= control target key end

     0   :  { %s6116_s0 = inlined_call_operand.hbm [shape: f32[2,8,256], index: 0, kind: input, shape index: {}]   ;;  %s6117_s1 = inlined_call_operand.hbm [shape: f32[256,768], index: 1, kind: input, shape index: {}]   ;;  %s6118_s2 = inlined_call_operand.vmem [shape: f32[2,8,3], index: 2, kind: input, shape index: {}]   ;;  %s6119_s3 = inlined_call_operand.vmem [shape: f32[3,128], index: 3, kind: input, shape index: {}]   ;;  %s6120_s4 = inlined_call_operand.vmem [shape: f32[3,8], index: 4, kind: input, shape index: {}]   ;;  %s6121_s5 = inlined_call_operand.vmem [shape: f32[8,128], index: 5, kind: input, shape index: {}]   ;;  %s6122_s6 = inlined_call_operand.vmem [shape: f32[1,128], index: 6, kind: input, shape index: {}]   ;;  %s6123_s7 = inlined_call_operand.hbm [shape: f32[2,8,256], index: 7, kind: output, shape index: {}]  }
   0x1   :  { %6174 = sst [smem:[#allocation55_spill]] %s6117_s1 }
   0x2   :  { %12 = vsyncpa [#allocation3], 0 }
   0x3   :  { %14 = vsyncpa [#allocation3 + $0x1], 0 }
   0x4   :  { %15 = vsyncpa [#allocation6], 0 }
   0x5   :  { %16 = vsyncpa [#allocation4], 0 }
   0x6   :  { %18 = vsyncpa [#allocation4 + $0x1], 0  ;;  %s4577_s24 = smov 0   ;;  %s4579_s25 = smov 0  }
   0x7   :  { %s4581_s26 = smov 0   ;;  %s4583_s27 = smov 0  }
   0x8 LB: > { %s4598_s28 = sadd.s32 4294967295, %s4513_s27   ;;  %s3687_s29 = sadd.s32 4294967294, %s4513_s27   ;;  %s4513_s27 = sphi %s4583_s27, %s6286_s27   ;;  %s4509_s26 = sphi %s4581_s26, %s6285_s26   ;;  %s4505_s25 = sphi %s4579_s25, %s6284_s25   ;;  %s4501_s24 = sphi %s4577_s24, %s6283_s24  }
   0x9   : > { %p44_p0 = scmp.ne.s32.totalorder %s4505_s25, %s4501_s24  ;;  %p6124_p1 = scmp.eq.s32.totalorder %s4598_s28, 0 }
   0xa   : > { %p205_p3 = scmp.eq.s32.totalorder %s3687_s29, 1  ;;  %p3688_p5 = scmp.ge.s32.totalorder %s4513_s27, 1 }
   0xb   : > { %p4607_p4 = por %p6124_p1, %p44_p0  ;;  %p212_p7 = scmp.lt.s32.totalorder %s4513_s27, 3 }
   0xc   : > { %p4612_p6 = por %p205_p3, %p44_p0  ;;  %s4515_s10 = smov [#allocation5]  }
   0xd   : > { %s6175_s30 = scalar_select %p4607_p4, 1, 0 }
   0xe   : > { %s6176_s8 = scalar_select %p4612_p6, 1, 0 }
   0xf   : > { %p4617_p8 = pnand %p3688_p5, %p212_p7  ;;  %s224_s11 = sshll.u32 %s4515_s10, 4  ;;  %s225_s11 = int_to_ptr.vmem [resolvable:$true] %s224_s11 }
  0x10   : > { %s4631_s13 = sadd.s32 1, %s4513_s27   ;;  %s31_s14 = sadd.s32 1, %s4509_s26 }
  0x11   : > { %s6177_s9 = scalar_select %p4617_p8, 1, 0 }
  0x12   : > { %p4219_p9 = pneg %p4617_p8  ;;  %s28_s15 = ssub.s32 %s4513_s27, %s4631_s13 }
  0x13   : > { %s4402_s16 = scalar_lea.vmem %s225_s11, 24576  ;;  %p4410_p5 = scmp.lt.s32.totalorder %s225_s11, %s225_s11 }
  0x14   : > { %p4626_p11 = pnand %p4219_p9, %p6124_p1  ;;  %p4403_p13 = scmp.ne.s32.totalorder %s225_s11, %s4402_s16 }
  0x15   : > { %p4411_p7 = scmp.lt.s32.totalorder %s4402_s16, %s4402_s16 }
  0x16   : > { %p4393_p12 = pneg %p4626_p11 }
  0x17   : > { %p4412_p10 = por %p4411_p7, %p4410_p5 }
  0x18   : > { %p4405_p0 = pnand %p4403_p13, %p4393_p12 }
  0x1a   : > { %p4406_p3 = pneg %p4405_p0 }
  0x1c   : > { %p4413_p2 = pnand %p4412_p10, %p4406_p3 }
  0x1e   : > { %4416 = shalt.err (!%p4413_p2)
}
  0x1f   : > { %s4516_s17 = smov 768   ;;  %s4517_s18 = smov 48  }
  0x20   : > { %s6179_s1 = sld [smem:[#allocation55_spill]]  ;;  %p29_p9 = scmp.eq.s32.totalorder %s28_s15, 0 }
  0x21   : > { %p38_p12 = scmp.ne.s32.totalorder %s4509_s26, %s4505_s25  ;;  %p39_p10 = scmp.eq.s32.totalorder %s4513_s27, 0 }
  0x22   : > { %p4232_p2 = scmp.lt.s32.totalorder %s4513_s27, 2  ;;  %p6181_p0 = scmp.eq.s32.totalorder %s4598_s28, 1 }
  0x23   : > { %s4648_s21 = scalar_select %p29_p9, %s4509_s26, %s31_s14  }
  0x24   : > { %p40_p13 = por %p39_p10, %p38_p12  ;;  %p4652_p3 = por %p6181_p0, %p38_p12 }
  0x25   : > { %6180 = sst [smem:[#allocation11_spill]] %s4648_s21  ;;  %s250_s23 = sand.u32 1, %s4509_s26  }
  0x26   : > { %4222 = dma.hbm_to_vmem [thread:$0]  (!%p4626_p11), %s6179_s1, 24576, %s225_s11, [#allocation6], %s4516_s17, %s4516_s17, %s4517_s18  }
  0x27   : > { %s6182_s22 = scalar_select %p4652_p3, 1, 0 }
  0x28   : > { %s3853_s29 = sshll.u32 %s4513_s27, 8  ;;  %s3691_s10 = sshll.u32 %s250_s23, 4 }
  0x29   : > { %s4661_s19 = scalar_lea.hbm %s6116_s0, %s3853_s29  ;;  %s254_s11 = scalar_lea.vmem [#allocation2], %s3691_s10 }
  0x2a   : > { %s262_s14 = sshll.u32 %s254_s11, 4  ;;  %p4663_p11 = pnand %p4232_p2, %p40_p13  ;;  %s263_s14 = int_to_ptr.vmem [resolvable:$true] %s262_s14 }
  0x2b   : > { %s251_s17 = scalar_lea.sflag [#allocation3], %s250_s23  ;;  %s4417_s18 = scalar_lea.hbm %s4661_s19, 256 }
  0x2c   : > { %p4418_p5 = scmp.ne.s32.totalorder %s4661_s19, %s4417_s18  ;;  %p4419_p7 = pneg %p4663_p11 }
  0x2d   : > { %s4422_s12 = scalar_lea.hbm %s6116_s0, 512  ;;  %p4423_p10 = scmp.lt.s32.totalorder %s4661_s19, %s6116_s0 }
  0x2e   : > { %p4420_p9 = pnand %p4419_p7, %p4418_p5  ;;  %p4424_p2 = scmp.lt.s32.totalorder %s4422_s12, %s4417_s18 }
  0x30   : > { %p4421_p12 = pneg %p4420_p9  ;;  %p4425_p13 = por %p4424_p2, %p4423_p10 }
  0x32   : > { %p4426_p0 = pnand %p4425_p13, %p4421_p12 }
  0x34   : > { %4429 = shalt.err (!%p4426_p0)
}
  0x35   : > { %s4430_s11 = scalar_lea.vmem %s263_s14, 256  ;;  %s4518_s23 = smov [#allocation2]  }
  0x36   : > { %p4431_p1 = scmp.ne.s32.totalorder %s263_s14, %s4430_s11  ;;  %s4435_s1 = sshll.u32 %s4518_s23, 4  ;;  %s4436_s1 = int_to_ptr.vmem [resolvable:$false] %s4435_s1 }
  0x37   : > { %s4437_s21 = scalar_lea.vmem %s4436_s1, 512  ;;  %p4438_p5 = scmp.lt.s32.totalorder %s263_s14, %s4436_s1 }
  0x38   : > { %p4433_p6 = pnand %p4431_p1, %p4419_p7  ;;  %p4439_p9 = scmp.lt.s32.totalorder %s4437_s21, %s4430_s11 }
  0x3a   : > { %p4434_p3 = pneg %p4433_p6  ;;  %p4440_p4 = por %p4439_p9, %p4438_p5 }
  0x3c   : > { %p4441_p8 = pnand %p4440_p4, %p4434_p3 }
  0x3e   : > { %4444 = shalt.err (!%p4441_p8)
}
  0x3f   : > { %4226 = dma.hbm_to_vmem [thread:$0]  (!%p4663_p11), %s4661_s19, 256, %s263_s14, %s251_s17  }
  0x40   : > { %p6184_p12 = scmp.ne.s32.totalorder %s6177_s9, 0 }
  0x42   : > { %278 = sbr.rel (%p6184_p12) target bundleno = 2603 (0xa2b), region = 48 }
  0x47   : > { %s4684_s18 = sand.u32 1, %s4505_s25   ;;  %p6185_p1 = scmp.ne.s32.totalorder %s6175_s30, 0 }
  0x48   : > { %s3695_s20 = sshll.u32 %s4684_s18, 4  ;;  %s281_s1 = scalar_lea.sflag [#allocation3], %s4684_s18 }
  0x49   : > { %s4690_s21 = scalar_lea.vmem [#allocation2], %s3695_s20 }
  0x4a   : > { %4488 = dma.done.wait (%p6185_p1), %s281_s1, 256  }
  0x4b   : > { %4490 = vsyncadd (%p6185_p1), %s281_s1, 4294967040  ;;  %p6186_p4 = scmp.eq.s32.totalorder %s4598_s28, 0 }
  0x4d   : > { %4492 = dma.done.wait (%p6186_p4), [#allocation6], 24576   ;;  %p6187_p6 = pmov %p6186_p4 }
  0x4e   : > { %p323_p8 = scmp.lt.s32.totalorder %s4598_s28, 1  ;;  %v4519_v0 = vmov 0   ;;  %v4520_v1 = vmov 2   ;;  %v4521_v3 = vmov 1   ;;  %v420_v4 = vld [vmem:[#allocation5 + $0x2d8] sm:$0xff]  ;;  %v419_v5 = vld [vmem:[#allocation5 + $0x2d0] sm:$0xff]  ;;  %v741_v36 = vlaneseq }
  0x4f   : > { %4494 = vsyncadd (%p6187_p6), [#allocation6], 4294942720  ;;  %4287 = vset.pattern.permute.xlu0 %v4519_v0  ;;  %4289 = vset.pattern.permute.xlu1 %v4520_v1  ;;  %v414_v6 = vld [vmem:[#allocation5 + $0x2a8] sm:$0xff]  ;;  %v413_v7 = vld [vmem:[#allocation5 + $0x2a0] sm:$0xff]  ;;  %s4535_s23 = smov 64   ;;  %s3581_s17 = scalar_lea.sflag [#allocation4], %s4684_s18 }
  0x50   : > { %s324_s9 = scalar_select %p323_p8, %s4598_s28, 1  ;;  %521 = vmatprep.subr.mxu0 %v420_v4  ;;  %v408_v8 = vld [vmem:[#allocation5 + $0x278] sm:$0xff]  ;;  %v407_v9 = vld [vmem:[#allocation5 + $0x270] sm:$0xff]  ;;  %v402_v10 = vld [vmem:[#allocation5 + $0x248] sm:$0xff]  ;;  %v4707_v41 = vshrl.u32 %v741_v36, 7 }
  0x51   : > { %522 = vmatpush1.msra.mxu0 %v419_v5  ;;  %v401_v11 = vld [vmem:[#allocation5 + $0x240] sm:$0xff]  ;;  %v396_v12 = vld [vmem:[#allocation5 + $0x218] sm:$0xff]  ;;  %v395_v13 = vld [vmem:[#allocation5 + $0x210] sm:$0xff]  ;;  %p6279_p11 = scmp.ne.s32.totalorder %s6182_s22, 0  ;;  %s4536_s12 = smov [#allocation7]  }
  0x52   : > { %s3698_s19 = sshll.u32 %s324_s9, 3  ;;  %523 = vmatprep.subr.mxu0 %v414_v6  ;;  %v390_v14 = vld [vmem:[#allocation5 + $0x1e8] sm:$0xff]  ;;  %v389_v15 = vld [vmem:[#allocation5 + $0x1e0] sm:$0xff]  ;;  %v384_v16 = vld [vmem:[#allocation5 + $0x1b8] sm:$0xff]  ;;  %v4710_v46 = vsub.s32 0, %v4707_v41  ;;  %v4713_v47 = vsub.s32 1, %v4707_v41 }
  0x53   : > { %s326_s30 = scalar_lea.vmem %s6118_s2, %s3698_s19  ;;  %524 = vmatpush1.msra.mxu0 %v413_v7  ;;  %v383_v17 = vld [vmem:[#allocation5 + $0x1b0] sm:$0xff]  ;;  %v378_v18 = vld [vmem:[#allocation5 + $0x188] sm:$0xff]  ;;  %v377_v19 = vld [vmem:[#allocation5 + $0x180] sm:$0xff]  ;;  %v4722_v51 = vsub.s32 2, %v4707_v41  ;;  %s322_s9 = scalar_lea.vmem [#allocation7], %s3695_s20 }
  0x54   : > { %v734_v2 = vld [vmem:[%s326_s30] sm:$0xff]  ;;  %525 = vmatprep.subr.mxu0 %v408_v8  ;;  %v372_v20 = vld [vmem:[#allocation5 + $0x158] sm:$0xff]  ;;  %v371_v21 = vld [vmem:[#allocation5 + $0x150] sm:$0xff]  ;;  %s3595_s20 = sshll.u32 %s322_s9, 4  ;;  %s3854_s19 = sshll.u32 %s4598_s28, 8  ;;  %s3596_s20 = int_to_ptr.vmem [resolvable:$true] %s3595_s20 }
  0x55   : > { %738 = vperm.xlu0 %4287, %v734_v2   ;;  %757 = vperm.xlu1 %4289, %v734_v2   ;;  %v366_v22 = vld [vmem:[#allocation5 + $0x128] sm:$0xff]  ;;  %v365_v23 = vld [vmem:[#allocation5 + $0x120] sm:$0xff]  ;;  %v360_v24 = vld [vmem:[#allocation5 + $0xf8] sm:$0xff]  ;;  %s6077_s30 = scalar_lea.hbm %s6123_s7, %s3854_s19  ;;  %s4445_s29 = scalar_lea.vmem %s3596_s20, 256 }
  0x56   : > { %526 = vmatpush1.msra.mxu0 %v407_v9  ;;  %v359_v25 = vld [vmem:[#allocation5 + $0xf0] sm:$0xff]  ;;  %v354_v26 = vld [vmem:[#allocation5 + $0xc8] sm:$0xff]  ;;  %v353_v27 = vld [vmem:[#allocation5 + $0xc0] sm:$0xff]  ;;  %p4446_p3 = scmp.ne.s32.totalorder %s3596_s20, %s4445_s29  ;;  %s4449_s16 = sshll.u32 %s4536_s12, 4  ;;  %s4450_s16 = int_to_ptr.vmem [resolvable:$false] %s4449_s16 }
  0x57   : > { %527 = vmatprep.subr.mxu0 %v402_v10  ;;  %v348_v28 = vld [vmem:[#allocation5 + $0x98] sm:$0xff]  ;;  %v347_v29 = vld [vmem:[#allocation5 + $0x90] sm:$0xff]  ;;  %v342_v30 = vld [vmem:[#allocation5 + $0x68] sm:$0xff]  ;;  %s4451_s28 = scalar_lea.vmem %s4450_s16, 512  ;;  %p4452_p2 = scmp.lt.s32.totalorder %s3596_s20, %s4450_s16 }
  0x58   : > { %528 = vmatpush1.msra.mxu0 %v401_v11  ;;  %v341_v31 = vld [vmem:[#allocation5 + $0x60] sm:$0xff]  ;;  %v336_v32 = vld [vmem:[#allocation5 + $0x38] sm:$0xff]  ;;  %v335_v33 = vld [vmem:[#allocation5 + $0x30] sm:$0xff]  ;;  %p4447_p7 = pnand %p4446_p3, %p6279_p11  ;;  %p4453_p13 = scmp.lt.s32.totalorder %s4451_s28, %s4445_s29 }
  0x59   : > { %4288 = vset.pattern.permute.xlu0 %v4521_v3  ;;  %4290 = vset.pattern.permute.xlu1 %v4519_v0  ;;  %v330_v34 = vld [vmem:[#allocation5 + $0x8] sm:$0xff]  ;;  %v329_v35 = vld [vmem:[#allocation5] sm:$0xff]  ;;  %v516_v37 = vld [vmem:[#allocation5 + $0x5d8] sm:$0xff] }
  0x5a   : > { %747 = vperm.xlu0 %4288, %v734_v2   ;;  %529 = vmatprep.subr.mxu0 %v396_v12  ;;  %v515_v38 = vld [vmem:[#allocation5 + $0x5d0] sm:$0xff]  ;;  %v510_v39 = vld [vmem:[#allocation5 + $0x5a8] sm:$0xff]  ;;  %v509_v40 = vld [vmem:[#allocation5 + $0x5a0] sm:$0xff]  ;;  %p4448_p10 = pneg %p4447_p7  ;;  %p4454_p0 = por %p4453_p13, %p4452_p2 }
  0x5b   : > { %530 = vmatpush1.msra.mxu0 %v395_v13  ;;  %v504_v42 = vld [vmem:[#allocation5 + $0x578] sm:$0xff]  ;;  %v503_v43 = vld [vmem:[#allocation5 + $0x570] sm:$0xff]  ;;  %v498_v44 = vld [vmem:[#allocation5 + $0x548] sm:$0xff] }
  0x5c   : > { %531 = vmatprep.subr.mxu0 %v390_v14  ;;  %v497_v45 = vld [vmem:[#allocation5 + $0x540] sm:$0xff]  ;;  %v492_v48 = vld [vmem:[#allocation5 + $0x518] sm:$0xff]  ;;  %v491_v52 = vld [vmem:[#allocation5 + $0x510] sm:$0xff]  ;;  %p4455_p5 = pnand %p4454_p0, %p4448_p10 }
  0x5d   : > { %532 = vmatpush1.msra.mxu0 %v389_v15  ;;  %v735_v49 = vld [vmem:[%s6119_s3] sm:$0x7]  ;;  %v486_v53 = vld [vmem:[#allocation5 + $0x4e8] sm:$0xff]  ;;  %v480_v58 = vld [vmem:[#allocation5 + $0x4b8] sm:$0xff] }
  0x5e   : > { %533 = vmatprep.subr.mxu0 %v384_v16  ;;  %v973_v50 = vld [vmem:[%s6120_s4] sm:$0x7]  ;;  %v744_v56 = vrot.slane %v735_v49, %v4710_v46  ;;  %v753_v59 = vrot.slane %v735_v49, %v4713_v47  ;;  %v763_v61 = vrot.slane %v735_v49, %v4722_v51  ;;  %v479_v63 = vld [vmem:[#allocation5 + $0x4b0] sm:$0xff]  ;;  %v474_v2 = vld [vmem:[#allocation5 + $0x488] sm:$0xff] }
  0x5f   : > { %534 = vmatpush1.msra.mxu0 %v383_v17  ;;  %v485_v55 = vld [vmem:[#allocation5 + $0x4e0] sm:$0xff]  ;;  %v977_v57 = vrot.slane %v973_v50, %v4710_v46  ;;  %v982_v60 = vrot.slane %v973_v50, %v4713_v47  ;;  %v988_v62 = vrot.slane %v973_v50, %v4722_v51  ;;  %v468_v8 = vld [vmem:[#allocation5 + $0x458] sm:$0xff]  ;;  %v467_v13 = vld [vmem:[#allocation5 + $0x450] sm:$0xff] }
  0x60   : > { %535 = vmatprep.subr.mxu0 %v378_v18  ;;  %v473_v4 = vld [vmem:[#allocation5 + $0x480] sm:$0xff]  ;;  %v462_v14 = vld [vmem:[#allocation5 + $0x428] sm:$0xff]  ;;  %v456_v18 = vld [vmem:[#allocation5 + $0x3f8] sm:$0xff] }
  0x61   : > { %536 = vmatpush1.msra.mxu0 %v377_v19  ;;  %v461_v17 = vld [vmem:[#allocation5 + $0x420] sm:$0xff] }
  0x62   : > { %537 = vmatprep.subr.mxu0 %v372_v20  ;;  %v409_v49 = vld [vmem:[#allocation5 + $0x280] sm:$0xff] }
  0x63   : > { %538 = vmatpush1.msra.mxu0 %v371_v21  ;;  %v455_v21 = vld [vmem:[#allocation5 + $0x3f0] sm:$0xff] }
  0x64   : > { %539 = vmatprep.subr.mxu0 %v366_v22  ;;  %v450_v22 = vld [vmem:[#allocation5 + $0x3c8] sm:$0xff] }
  0x65   : > { %540 = vmatpush1.msra.mxu0 %v365_v23 }
  0x66   : > { %541 = vmatprep.subr.mxu0 %v360_v24 }
  0x67   : > { %542 = vmatpush1.msra.mxu0 %v359_v25 }
  0x68   : > { %543 = vmatprep.subr.mxu0 %v354_v26  ;;  %v449_v26 = vld [vmem:[#allocation5 + $0x3c0] sm:$0xff] }
  0x69   : > { %544 = vmatpush1.msra.mxu0 %v353_v27 }
  0x6a   : > { %545 = vmatprep.subr.mxu0 %v348_v28  ;;  %v444_v28 = vld [vmem:[#allocation5 + $0x398] sm:$0xff] }
  0x6b   : > { %546 = vmatpush1.msra.mxu0 %v347_v29  ;;  %v422_v29 = vld [vmem:[#allocation5 + $0x2e8] sm:$0xff] }
  0x6c   : > { %547 = vmatprep.subr.mxu0 %v342_v30  ;;  %592 = vmatprep.subr.mxu1 %v422_v29 }
  0x6d   : > { %548 = vmatpush1.msra.mxu0 %v341_v31  ;;  %v443_v31 = vld [vmem:[#allocation5 + $0x390] sm:$0xff] }
  0x6e   : > { %549 = vmatprep.subr.mxu0 %v336_v32 }
  0x6f   : > { %550 = vmatpush1.msra.mxu0 %v335_v33 }
  0x70   : > { %551 = vmatprep.subr.mxu0 %v330_v34 }
  0x71   : > { %552 = vmatpush1.msra.mxu0 %v329_v35  ;;  %v438_v35 = vld [vmem:[#allocation5 + $0x368] sm:$0xff] }
  0x72   : > { %553 = vmatprep.subr.mxu0 %v516_v37  ;;  %v421_v37 = vld [vmem:[#allocation5 + $0x2e0] sm:$0xff] }
  0x73   : > { %554 = vmatpush2.msra.mxu0 %v515_v38  ;;  %v437_v38 = vld [vmem:[#allocation5 + $0x360] sm:$0xff]  ;;  %593 = vmatpush1.msra.mxu1 %v421_v37  ;;  %v386_v37 = vld [vmem:[#allocation5 + $0x1c8] sm:$0xff] }
  0x74   : > { %555 = vmatprep.subr.mxu0 %v510_v39  ;;  %v416_v39 = vld [vmem:[#allocation5 + $0x2b8] sm:$0xff] }
  0x75   : > { %556 = vmatpush2.msra.mxu0 %v509_v40  ;;  %594 = vmatprep.subr.mxu1 %v416_v39 }
  0x76   : > { %557 = vmatprep.subr.mxu0 %v504_v42  ;;  %v432_v42 = vld [vmem:[#allocation5 + $0x338] sm:$0xff] }
  0x77   : > { %558 = vmatpush2.msra.mxu0 %v503_v43  ;;  %v415_v43 = vld [vmem:[#allocation5 + $0x2b0] sm:$0xff] }
  0x78   : > { %559 = vmatprep.subr.mxu0 %v498_v44  ;;  %595 = vmatpush1.msra.mxu1 %v415_v43  ;;  %v411_v43 = vld [vmem:[#allocation5 + $0x290] sm:$0xff] }
  0x79   : > { %560 = vmatpush2.msra.mxu0 %v497_v45  ;;  %v431_v45 = vld [vmem:[#allocation5 + $0x330] sm:$0xff] }
  0x7a   : > { %561 = vmatprep.subr.mxu0 %v492_v48  ;;  %v410_v48 = vld [vmem:[#allocation5 + $0x288] sm:$0xff] }
  0x7b   : > { %562 = vmatpush2.msra.mxu0 %v491_v52  ;;  %596 = vmatprep.subr.mxu1 %v410_v48 }
  0x7c   : > { %563 = vmatprep.subr.mxu0 %v486_v53  ;;  %597 = vmatpush1.msra.mxu1 %v409_v49 }
  0x7d   : > { %564 = vmatpush2.msra.mxu0 %v485_v55  ;;  %v425_v55 = vld [vmem:[#allocation5 + $0x300] sm:$0xff] }
  0x7e   : > { %565 = vmatprep.subr.mxu0 %v480_v58  ;;  %v4743_v58 = vld [vmem:[%s4690_s21 + $0x8] sm:$0xff] }
  0x7f   : > { %566 = vmatpush2.msra.mxu0 %v479_v63  ;;  %585 = vmatprep.mubr.f32.mxu0 %v4743_v58 }
  0x80   : > { %567 = vmatprep.subr.mxu0 %v474_v2  ;;  %v398_v2 = vld [vmem:[#allocation5 + $0x228] sm:$0xff]  ;;  %656 = vmatprep.mubr.f32.mxu1 %v4743_v58 }
  0x81   : > { %568 = vmatpush2.msra.mxu0 %v473_v4 }
  0x82   : > { %569 = vmatprep.subr.mxu0 %v468_v8 }
  0x83   : > { %570 = vmatpush2.msra.mxu0 %v467_v13 }
  0x84   : > { %571 = vmatprep.subr.mxu0 %v462_v14  ;;  %v397_v14 = vld [vmem:[#allocation5 + $0x220] sm:$0xff] }
  0x85   : > { %572 = vmatpush2.msra.mxu0 %v461_v17 }
  0x86   : > { %573 = vmatprep.subr.mxu0 %v456_v18  ;;  %v4525_v18 = vmov 2102212464  }
  0x87   : > { %574 = vmatpush2.msra.mxu0 %v455_v21 }
  0x88   : > { %575 = vmatprep.subr.mxu0 %v450_v22  ;;  %v4526_v22 = vmov 920167782  }
  0x89   : > { %576 = vmatpush2.msra.mxu0 %v449_v26  ;;  %v392_v26 = vld [vmem:[#allocation5 + $0x1f8] sm:$0xff] }
  0x8a   : > { %577 = vmatprep.subr.mxu0 %v444_v28 }
  0x8b   : > { %578 = vmatpush2.msra.mxu0 %v443_v31  ;;  %v391_v31 = vld [vmem:[#allocation5 + $0x1f0] sm:$0xff] }
  0x8c   : > { %579 = vmatprep.subr.mxu0 %v438_v35 }
  0x8d   : > { %580 = vmatpush2.msra.mxu0 %v437_v38 }
  0x8e   : > { %581 = vmatprep.subr.mxu0 %v432_v42 }
  0x8f   : > { %582 = vmatpush2.msra.mxu0 %v431_v45 }
  0xd0   : > { %v739_v54 = vpop.permute.xlu0 %738  ;;  %v758_v0 = vpop.permute.xlu1 %757 }
  0xd1   : > { %v745_v5 = vmul.f32 %v744_v56, %v739_v54  ;;  %v978_v6 = vmul.f32 %v977_v57, %v739_v54  ;;  %v764_v11 = vmul.f32 %v763_v61, %v758_v0  ;;  %v989_v12 = vmul.f32 %v988_v62, %v758_v0  ;;  %v426_v54 = vld [vmem:[#allocation5 + $0x308] sm:$0xff]  ;;  %v404_v56 = vld [vmem:[#allocation5 + $0x258] sm:$0xff]  ;;  %v4748_v0 = vld [vmem:[%s4690_s21] sm:$0xff] }
  0xd2   : > { %583 = vmatprep.subr.mxu0 %v426_v54  ;;  %598 = vmatprep.subr.mxu1 %v404_v56  ;;  %v380_v56 = vld [vmem:[#allocation5 + $0x198] sm:$0xff] }
  0xd3   : > { %584 = vmatpush2.msra.mxu0 %v425_v55 }
  0xd4   : > { %586 = vmatmul.mubr.f32.vlgmr.msra.gmra.mxu0 %v4748_v0 }
  0xd5   : > { %v748_v7 = vpop.permute.xlu0 %747  ;;  %727 = vmatprep.mubr.f32.mxu0 %v4743_v58 }
  0xd6   : > { %v754_v9 = vmul.f32 %v753_v59, %v748_v7  ;;  %v983_v10 = vmul.f32 %v982_v60, %v748_v7  ;;  %v403_v59 = vld [vmem:[#allocation5 + $0x250] sm:$0xff]  ;;  %v424_v60 = vld [vmem:[#allocation5 + $0x2f8] sm:$0xff] }
  0xd7   : > { %v423_v7 = vld [vmem:[#allocation5 + $0x2f0] sm:$0xff]  ;;  %599 = vmatpush1.msra.mxu1 %v403_v59  ;;  %663 = vmatprep.subr.mxu0 %v424_v60 }
  0xd8   : > { %v755_v15 = vadd.f32 %v754_v9, %v745_v5  ;;  %v984_v16 = vadd.f32 %v983_v10, %v978_v6  ;;  %v4522_v9 = vmov 683565275   ;;  %600 = vmatprep.subr.mxu1 %v398_v2  ;;  %664 = vmatpush1.msra.mxu0 %v423_v7  ;;  %v379_v2 = vld [vmem:[#allocation5 + $0x190] sm:$0xff] }
  0xd9   : > { %601 = vmatpush1.msra.mxu1 %v397_v14  ;;  %v400_v14 = vld [vmem:[#allocation5 + $0x238] sm:$0xff] }
  0xda   : > { %v4730_v19 = vadd.f32 %v764_v11, %v755_v15  ;;  %v4732_v20 = vadd.f32 %v989_v12, %v984_v16  ;;  %v4523_v11 = vmov 2475754826   ;;  %v418_v15 = vld [vmem:[#allocation5 + $0x2c8] sm:$0xff]  ;;  %v4524_v16 = vmov 2131351028   ;;  %602 = vmatprep.subr.mxu1 %v392_v26 }
  0xdb   : > { %665 = vmatprep.subr.mxu0 %v418_v15  ;;  %603 = vmatpush1.msra.mxu1 %v391_v31  ;;  %v374_v26 = vld [vmem:[#allocation5 + $0x168] sm:$0xff]  ;;  %v373_v31 = vld [vmem:[#allocation5 + $0x160] sm:$0xff] }
  0xdc   : > { %v766_v23 = vand.u32 2147483647, %v4730_v19  ;;  %v769_v24 = vand.u32 2139095040, %v4730_v19  ;;  %v991_v25 = vand.u32 2147483647, %v4732_v20  ;;  %v994_v27 = vand.u32 2139095040, %v4732_v20  ;;  %604 = vmatprep.subr.mxu1 %v386_v37 }
  0xdd   : > { %vm768_vm14 = vcmp.lt.s32.totalorder %v4730_v19, 0 }
  0xde   : > { %v770_v30 = vshrl.u32 %v769_v24, 23  ;;  %v773_v32 = vand.u32 8388607, %v766_v23  ;;  %v995_v33 = vshrl.u32 %v994_v27, 23  ;;  %v998_v34 = vand.u32 8388607, %v991_v25 }
  0xdf   : > { %v417_v27 = vld [vmem:[#allocation5 + $0x2c0] sm:$0xff]  ;;  %vm4893_vm15 = vcmp.le.f32.partialorder %v766_v23, 0.7853982  ;;  %v460_v23 = vld [vmem:[#allocation5 + $0x418] sm:$0xff] }
  0xe0   : > { %v3699_v36 = vadd.s32 4294967169, %v770_v30  ;;  %v3707_v40 = vadd.s32 4294967169, %v995_v33  ;;  %v774_v50 = vor.u32 8388608, %v773_v32  ;;  %v999_v52 = vor.u32 8388608, %v998_v34  ;;  %666 = vmatpush1.msra.mxu0 %v417_v27 }
  0xe1   : > { %v4527_v34 = vmov 1326507024  }
  0xe2   : > { %v776_v44 = vadd.s32 1, %v3699_v36  ;;  %v1001_v53 = vadd.s32 1, %v3707_v40  ;;  %v4750_v4 = vshll.u32 %v774_v50, 8  ;;  %v4754_v6 = vshll.u32 %v999_v52, 8  ;;  %v412_v36 = vld [vmem:[#allocation5 + $0x298] sm:$0xff]  ;;  %v406_v50 = vld [vmem:[#allocation5 + $0x268] sm:$0xff] }
  0xe3   : > { %667 = vmatprep.subr.mxu0 %v412_v36  ;;  %v368_v36 = vld [vmem:[#allocation5 + $0x138] sm:$0xff] }
  0xe4   : > { %vm777_vm0 = vcmp.gt.s32.totalorder %v776_v44, 0  ;;  %vm1002_vm1 = vcmp.gt.s32.totalorder %v1001_v53, 0  ;;  %668 = vmatpush1.msra.mxu0 %v411_v43  ;;  %v393_v43 = vld [vmem:[#allocation5 + $0x200] sm:$0xff] }
  0xe5   : > { %v778_v57 = vsel %vm777_vm0, %v776_v44, 0  ;;  %v1003_v63 = vsel %vm1002_vm1, %v1001_v53, 0  ;;  %v385_v44 = vld [vmem:[#allocation5 + $0x1c0] sm:$0xff]  ;;  %669 = vmatprep.subr.mxu0 %v406_v50  ;;  %vm993_vm0 = vcmp.lt.s32.totalorder %v4732_v20, 0  ;;  %vm4910_vm1 = vcmp.le.f32.partialorder %v991_v25, 0.7853982 }
  0xe6   : > { %v4745_v61 = vshrl.u32 %v778_v57, 5  ;;  %v780_v62 = vand.u32 31, %v778_v57  ;;  %v4752_v5 = vshrl.u32 %v1003_v63, 5  ;;  %v4759_v13 = vand.u32 31, %v1003_v63  ;;  %605 = vmatpush1.msra.mxu1 %v385_v44  ;;  %v405_v63 = vld [vmem:[#allocation5 + $0x260] sm:$0xff]  ;;  %v367_v44 = vld [vmem:[#allocation5 + $0x130] sm:$0xff] }
  0xe7   : > { %606 = vmatprep.subr.mxu1 %v380_v56  ;;  %670 = vmatpush1.msra.mxu0 %v405_v63  ;;  %v436_v25 = vld [vmem:[#allocation5 + $0x358] sm:$0xff] }
  0xe8   : > { %v781_v8 = vsub.s32 32, %v780_v62  ;;  %v783_v10 = vshll.u32 %v4522_v9, %v780_v62  ;;  %v786_v12 = vshll.u32 %v4523_v11, %v780_v62  ;;  %v789_v17 = vshll.u32 %v4524_v16, %v780_v62  ;;  %607 = vmatpush1.msra.mxu1 %v379_v2  ;;  %671 = vmatprep.subr.mxu0 %v400_v14 }
  0xe9   : > { %v792_v21 = vshll.u32 %v4525_v18, %v780_v62  ;;  %v795_v24 = vshll.u32 %v4526_v22, %v780_v62  ;;  %vm798_vm2 = vcmp.lt.s32.totalorder %v4745_v61, 1  ;;  %vm799_vm3 = vcmp.lt.s32.totalorder %v4745_v61, 2  ;;  %608 = vmatprep.subr.mxu1 %v374_v26 }
  0xea   : > { %v784_v28 = vshrl.u32 %v4523_v11, %v781_v8  ;;  %v787_v29 = vshrl.u32 %v4524_v16, %v781_v8  ;;  %v790_v30 = vshrl.u32 %v4525_v18, %v781_v8  ;;  %v782_v32 = vshrl.u32 %v4522_v9, %v781_v8  ;;  %609 = vmatpush1.msra.mxu1 %v373_v31 }
  0xeb   : > { %v793_v33 = vshrl.u32 %v4526_v22, %v781_v8  ;;  %v796_v35 = vshrl.u32 %v4527_v34, %v781_v8  ;;  %vm800_vm4 = vcmp.lt.s32.totalorder %v4745_v61, 3  ;;  %v1006_v42 = vsub.s32 32, %v4759_v13  ;;  %610 = vmatprep.subr.mxu1 %v368_v36  ;;  %v338_v36 = vld [vmem:[#allocation5 + $0x48] sm:$0xff] }
  0xec   : > { %v785_v38 = vor.u32 %v784_v28, %v783_v10  ;;  %v788_v39 = vor.u32 %v787_v29, %v786_v12  ;;  %v791_v40 = vor.u32 %v790_v30, %v789_v17  ;;  %vm801_vm5 = vcmp.lt.s32.totalorder %v4745_v61, 4  ;;  %v399_v30 = vld [vmem:[#allocation5 + $0x230] sm:$0xff]  ;;  %611 = vmatpush1.msra.mxu1 %v367_v44  ;;  %v332_v44 = vld [vmem:[#allocation5 + $0x18] sm:$0xff] }
  0xed   : > { %v794_v45 = vor.u32 %v793_v33, %v792_v21  ;;  %v797_v48 = vor.u32 %v796_v35, %v795_v24  ;;  %v1008_v49 = vshll.u32 %v4522_v9, %v4759_v13  ;;  %v1011_v62 = vshll.u32 %v4523_v11, %v4759_v13  ;;  %v394_v35 = vld [vmem:[#allocation5 + $0x208] sm:$0xff]  ;;  %672 = vmatpush1.msra.mxu0 %v399_v30 }
  0xee   : > { %v802_v52 = vsel %vm798_vm2, %v782_v32, %v785_v38  ;;  %v803_v53 = vsel %vm801_vm5, %v791_v40, 2102212464  ;;  %v806_v54 = vsel %vm798_vm2, %v785_v38, %v788_v39  ;;  %v810_v55 = vsel %vm798_vm2, %v788_v39, %v791_v40  ;;  %673 = vmatprep.subr.mxu0 %v394_v35  ;;  %v364_v35 = vld [vmem:[#allocation5 + $0x118] sm:$0xff] }
  0xef   : > { %v804_v57 = vsel %vm800_vm4, %v788_v39, %v803_v53  ;;  %v807_v59 = vsel %vm801_vm5, %v794_v45, 920167782  ;;  %v811_v60 = vsel %vm801_vm5, %v797_v48, 1326507024  ;;  %v1009_v12 = vshrl.u32 %v4523_v11, %v1006_v42  ;;  %v362_v48 = vld [vmem:[#allocation5 + $0x108] sm:$0xff]  ;;  %674 = vmatpush1.msra.mxu0 %v393_v43  ;;  %v356_v53 = vld [vmem:[#allocation5 + $0xd8] sm:$0xff] }
  0xf0   : > { %v4790_v7 = vsel %vm799_vm3, %v802_v52, %v804_v57  ;;  %v808_v8 = vsel %vm800_vm4, %v791_v40, %v807_v59  ;;  %v812_v10 = vsel %vm800_vm4, %v794_v45, %v811_v60  ;;  %v1007_v21 = vshrl.u32 %v4522_v9, %v1006_v42  ;;  %v382_v52 = vld [vmem:[#allocation5 + $0x1a8] sm:$0xff]  ;;  %612 = vmatprep.subr.mxu1 %v362_v48  ;;  %v381_v59 = vld [vmem:[#allocation5 + $0x1a0] sm:$0xff]  ;;  %v355_v60 = vld [vmem:[#allocation5 + $0xd0] sm:$0xff] }
  0xf1   : > { %v809_v15 = vsel %vm799_vm3, %v806_v54, %v808_v8  ;;  %v813_v17 = vsel %vm799_vm3, %v810_v55, %v812_v10  ;;  %v1012_v24 = vshrl.u32 %v4524_v16, %v1006_v42  ;;  %v1010_v61 = vor.u32 %v1009_v12, %v1008_v49  ;;  %v387_v49 = vld [vmem:[#allocation5 + $0x1d0] sm:$0xff]  ;;  %v376_v8 = vld [vmem:[#allocation5 + $0x178] sm:$0xff]  ;;  %v350_v10 = vld [vmem:[#allocation5 + $0xa8] sm:$0xff] }
  0xf2   : > { %v4804_v27 = vmul.u32.u64.low %v4750_v4, %v813_v17  ;;  %v4805_v28 = vmul.u32.u64.high %v4750_v4, %v813_v17, %v4804_v27  ;;  %v4808_v11 = vmul.u32.u64.low %v4750_v4, %v809_v15  ;;  %v4809_v29 = vmul.u32.u64.high %v4750_v4, %v809_v15, %v4808_v11  ;;  %v375_v17 = vld [vmem:[#allocation5 + $0x170] sm:$0xff]  ;;  %v358_v43 = vld [vmem:[#allocation5 + $0xe8] sm:$0xff] }
  0xf3   : > { %v1013_v32 = vor.u32 %v1012_v24, %v1011_v62  ;;  %v1014_v9 = vshll.u32 %v4524_v16, %v4759_v13  ;;  %v1015_v33 = vshrl.u32 %v4525_v18, %v1006_v42  ;;  %v821_v37 = vmul.u32 %v4750_v4, %v4790_v7  ;;  %v388_v4 = vld [vmem:[#allocation5 + $0x1d8] sm:$0xff] }
  0xf4   : > { %v1017_v38 = vshll.u32 %v4525_v18, %v4759_v13  ;;  %v1018_v39 = vshrl.u32 %v4526_v22, %v1006_v42  ;;  %v1021_v40 = vshrl.u32 %v4527_v34, %v1006_v42  ;;  %v1020_v16 = vshll.u32 %v4526_v22, %v4759_v13  ;;  %v361_v13 = vld [vmem:[#allocation5 + $0x100] sm:$0xff]  ;;  %675 = vmatprep.subr.mxu0 %v388_v4 }
  0xf5   : > { %v1016_v45 = vor.u32 %v1015_v33, %v1014_v9  ;;  %vm1023_vm6 = vcmp.lt.s32.totalorder %v4752_v5, 1  ;;  %vm1024_vm7 = vcmp.lt.s32.totalorder %v4752_v5, 2  ;;  %v4825_v18 = vadd.s32 %v4808_v11, %v4805_v28  ;;  %676 = vmatpush1.msra.mxu0 %v387_v49  ;;  %613 = vmatpush1.msra.mxu1 %v361_v13  ;;  %v351_v13 = vld [vmem:[#allocation5 + $0xb0] sm:$0xff] }
  0xf6   : > { %vm823_vm8 = vc.u32 %v4805_v28, %v4808_v11  ;;  %v824_v34 = vadd.s32 1, %v4809_v29  ;;  %v1019_v42 = vor.u32 %v1018_v39, %v1017_v38  ;;  %v1022_v22 = vor.u32 %v1021_v40, %v1020_v16  ;;  %677 = vmatprep.subr.mxu0 %v382_v52  ;;  %614 = vmatprep.subr.mxu1 %v356_v53  ;;  %v370_v11 = vld [vmem:[#allocation5 + $0x148] sm:$0xff]  ;;  %v337_v38 = vld [vmem:[#allocation5 + $0x40] sm:$0xff]  ;;  %v331_v16 = vld [vmem:[#allocation5 + $0x10] sm:$0xff] }
  0xf7   : > { %vm1025_vm9 = vcmp.lt.s32.totalorder %v4752_v5, 3  ;;  %vm1026_vm10 = vcmp.lt.s32.totalorder %v4752_v5, 4  ;;  %v1031_v50 = vsel %vm1023_vm6, %v1010_v61, %v1013_v32  ;;  %v1035_v57 = vsel %vm1023_vm6, %v1013_v32, %v1016_v45  ;;  %678 = vmatpush1.msra.mxu0 %v381_v59  ;;  %615 = vmatpush1.msra.mxu1 %v355_v60  ;;  %v357_v5 = vld [vmem:[#allocation5 + $0xe0] sm:$0xff]  ;;  %v512_v52 = vld [vmem:[#allocation5 + $0x5b8] sm:$0xff]  ;;  %v506_v59 = vld [vmem:[#allocation5 + $0x588] sm:$0xff] }
  0xf8   : > { %v825_v54 = vsel %vm823_vm8, %v824_v34, %v4809_v29  ;;  %v1028_v55 = vsel %vm1026_vm10, %v1016_v45, 2102212464  ;;  %v1032_v56 = vsel %vm1026_vm10, %v1019_v42, 920167782  ;;  %v1027_v63 = vsel %vm1023_vm6, %v1007_v21, %v1010_v61  ;;  %v349_v21 = vld [vmem:[#allocation5 + $0xa0] sm:$0xff]  ;;  %v344_v29 = vld [vmem:[#allocation5 + $0x78] sm:$0xff]  ;;  %679 = vmatprep.subr.mxu0 %v376_v8  ;;  %616 = vmatprep.subr.mxu1 %v350_v10 }
  0xf9   : > { %v826_v62 = vadd.s32 %v825_v54, %v821_v37  ;;  %v1033_v2 = vsel %vm1025_vm9, %v1016_v45, %v1032_v56  ;;  %v1036_v7 = vsel %vm1026_vm10, %v1022_v22, 1326507024  ;;  %v1029_v12 = vsel %vm1025_vm9, %v1013_v32, %v1028_v55  ;;  %v369_v61 = vld [vmem:[#allocation5 + $0x140] sm:$0xff]  ;;  %v343_v32 = vld [vmem:[#allocation5 + $0x70] sm:$0xff]  ;;  %680 = vmatpush1.msra.mxu0 %v375_v17  ;;  %617 = vmatpush1.msra.mxu1 %v349_v21  ;;  %v352_v34 = vld [vmem:[#allocation5 + $0xb8] sm:$0xff] }
  0xfa   : > { %v1034_v14 = vsel %vm1024_vm7, %v1031_v50, %v1033_v2  ;;  %v1037_v15 = vsel %vm1025_vm9, %v1019_v42, %v1036_v7  ;;  %v1030_v33 = vsel %vm1024_vm7, %v1027_v63, %v1029_v12  ;;  %681 = vmatprep.subr.mxu0 %v370_v11  ;;  %618 = vmatprep.subr.mxu1 %v344_v29  ;;  %v363_v37 = vld [vmem:[#allocation5 + $0x110] sm:$0xff]  ;;  %v518_v42 = vld [vmem:[#allocation5 + $0x5e8] sm:$0xff]  ;;  %v345_v54 = vld [vmem:[#allocation5 + $0x80] sm:$0xff]  ;;  %vm858_vm8 = vweird.f32 %v4730_v19 }
  0xfb   : > { %v827_v24 = vadd.s32 536870912, %v826_v62  ;;  %v1038_v26 = vsel %vm1024_vm7, %v1035_v57, %v1037_v15  ;;  %v4855_v27 = vmul.u32.u64.low %v4754_v6, %v1034_v14  ;;  %v4856_v28 = vmul.u32.u64.high %v4754_v6, %v1034_v14, %v4855_v27  ;;  %682 = vmatpush1.msra.mxu0 %v369_v61  ;;  %619 = vmatpush1.msra.mxu1 %v343_v32  ;;  %v346_v50 = vld [vmem:[#allocation5 + $0x88] sm:$0xff]  ;;  %v511_v55 = vld [vmem:[#allocation5 + $0x5b0] sm:$0xff]  ;;  %v340_v57 = vld [vmem:[#allocation5 + $0x58] sm:$0xff] }
  0xfc   : > { %v4860_v30 = vmul.u32.u64.low %v4754_v6, %v1038_v26  ;;  %v4861_v31 = vmul.u32.u64.high %v4754_v6, %v1038_v26, %v4860_v30  ;;  %v1046_v45 = vmul.u32 %v4754_v6, %v1030_v33  ;;  %683 = vmatprep.subr.mxu0 %v364_v35  ;;  %620 = vmatprep.subr.mxu1 %v338_v36  ;;  %v517_v6 = vld [vmem:[#allocation5 + $0x5e0] sm:$0xff]  ;;  %v334_v7 = vld [vmem:[#allocation5 + $0x28] sm:$0xff]  ;;  %v500_v8 = vld [vmem:[#allocation5 + $0x558] sm:$0xff] }
  0xfd   : > { %v4863_v9 = vshrl.u32 %v827_v24, 30  ;;  %v1049_v40 = vadd.s32 1, %v4856_v28  ;;  %684 = vmatpush1.msra.mxu0 %v363_v37  ;;  %621 = vmatpush1.msra.mxu1 %v337_v38  ;;  %v505_v63 = vld [vmem:[#allocation5 + $0x580] sm:$0xff]  ;;  %v499_v14 = vld [vmem:[#allocation5 + $0x550] sm:$0xff]  ;;  %v520_v17 = vld [vmem:[#allocation5 + $0x5f8] sm:$0xff] }
  0xfe   : > { %vm1048_vm11 = vc.u32 %v4861_v31, %v4855_v27  ;;  %685 = vmatprep.subr.mxu0 %v358_v43  ;;  %622 = vmatprep.subr.mxu1 %v332_v44  ;;  %v333_v12 = vld [vmem:[#allocation5 + $0x20] sm:$0xff]  ;;  %v494_v21 = vld [vmem:[#allocation5 + $0x528] sm:$0xff]  ;;  %v519_v26 = vld [vmem:[#allocation5 + $0x5f0] sm:$0xff] }
  0xff   : > { %v829_v39 = vshll.u32 %v4863_v9, 30  ;;  %v1050_v48 = vsel %vm1048_vm11, %v1049_v40, %v4856_v28  ;;  %686 = vmatpush1.msra.mxu0 %v357_v5  ;;  %623 = vmatpush1.msra.mxu1 %v331_v16  ;;  %v493_v28 = vld [vmem:[#allocation5 + $0x520] sm:$0xff]  ;;  %v514_v11 = vld [vmem:[#allocation5 + $0x5c8] sm:$0xff]  ;;  %v488_v29 = vld [vmem:[#allocation5 + $0x4f8] sm:$0xff] }
 0x100   : > { %v1051_v49 = vadd.s32 %v1050_v48, %v1046_v45  ;;  %687 = vmatprep.subr.mxu0 %v352_v34  ;;  %624 = vmatprep.subr.mxu1 %v518_v42  ;;  %v513_v32 = vld [vmem:[#allocation5 + $0x5c0] sm:$0xff]  ;;  %v487_v33 = vld [vmem:[#allocation5 + $0x4f0] sm:$0xff]  ;;  %v508_v37 = vld [vmem:[#allocation5 + $0x598] sm:$0xff] }
 0x101   : > { %v4872_v4 = vsub.s32 %v826_v62, %v829_v39  ;;  %688 = vmatpush1.msra.mxu0 %v351_v13  ;;  %625 = vmatpush2.msra.mxu1 %v517_v6  ;;  %v339_v62 = vld [vmem:[#allocation5 + $0x50] sm:$0xff]  ;;  %v482_v38 = vld [vmem:[#allocation5 + $0x4c8] sm:$0xff]  ;;  %v481_v43 = vld [vmem:[#allocation5 + $0x4c0] sm:$0xff] }
 0x102   : > { %v1052_v53 = vadd.s32 536870912, %v1051_v49  ;;  %689 = vmatprep.subr.mxu0 %v346_v50  ;;  %626 = vmatprep.subr.mxu1 %v512_v52  ;;  %v507_v40 = vld [vmem:[#allocation5 + $0x590] sm:$0xff]  ;;  %v502_v16 = vld [vmem:[#allocation5 + $0x568] sm:$0xff]  ;;  %v476_v48 = vld [vmem:[#allocation5 + $0x498] sm:$0xff] }
 0x103   : > { %v832_v22 = vsub.s32 0, %v4872_v4  ;;  %690 = vmatpush1.msra.mxu0 %v345_v54  ;;  %627 = vmatpush2.msra.mxu1 %v511_v55  ;;  %v501_v42 = vld [vmem:[#allocation5 + $0x560] sm:$0xff]  ;;  %v470_v50 = vld [vmem:[#allocation5 + $0x468] sm:$0xff]  ;;  %v464_v55 = vld [vmem:[#allocation5 + $0x438] sm:$0xff] }
 0x104   : > { %v4877_v60 = vshrl.u32 %v1052_v53, 30  ;;  %691 = vmatprep.subr.mxu0 %v340_v57  ;;  %628 = vmatprep.subr.mxu1 %v506_v59  ;;  %v490_v54 = vld [vmem:[#allocation5 + $0x508] sm:$0xff]  ;;  %v463_v57 = vld [vmem:[#allocation5 + $0x430] sm:$0xff] }
 0x105   : > { %v3700_v56 = vmin.u32 %v832_v22, %v4872_v4  ;;  %692 = vmatpush1.msra.mxu0 %v339_v62  ;;  %629 = vmatpush2.msra.mxu1 %v505_v63  ;;  %v496_v22 = vld [vmem:[#allocation5 + $0x538] sm:$0xff] }
 0x106   : > { %v1054_v10 = vshll.u32 %v4877_v60, 30  ;;  %693 = vmatprep.subr.mxu0 %v334_v7  ;;  %630 = vmatprep.subr.mxu1 %v500_v8  ;;  %v458_v7 = vld [vmem:[#allocation5 + $0x408] sm:$0xff]  ;;  %v1047_v8 = vadd.s32 %v4855_v27, %v4861_v31  ;;  %v472_v31 = vld [vmem:[#allocation5 + $0x478] sm:$0xff] }
 0x107   : > { %v834_v2 = vclz %v3700_v56  ;;  %694 = vmatpush1.msra.mxu0 %v333_v12  ;;  %631 = vmatpush2.msra.mxu1 %v499_v14  ;;  %v489_v56 = vld [vmem:[#allocation5 + $0x500] sm:$0xff]  ;;  %v483_v14 = vld [vmem:[#allocation5 + $0x4d0] sm:$0xff] }
 0x108   : > { %v4880_v24 = vsub.s32 %v1051_v49, %v1054_v10  ;;  %695 = vmatprep.subr.mxu0 %v520_v17  ;;  %632 = vmatprep.subr.mxu1 %v494_v21  ;;  %v475_v49 = vld [vmem:[#allocation5 + $0x490] sm:$0xff]  ;;  %v478_v21 = vld [vmem:[#allocation5 + $0x4a8] sm:$0xff] }
 0x109   : > { %v3701_v15 = vadd.s32 4294967294, %v834_v2  ;;  %696 = vmatpush2.msra.mxu0 %v519_v26  ;;  %633 = vmatpush2.msra.mxu1 %v493_v28  ;;  %v484_v2 = vld [vmem:[#allocation5 + $0x4d8] sm:$0xff] }
 0x10a   : > { %v1057_v61 = vsub.s32 0, %v4880_v24  ;;  %697 = vmatprep.subr.mxu0 %v514_v11  ;;  %634 = vmatprep.subr.mxu1 %v488_v29  ;;  %v452_v26 = vld [vmem:[#allocation5 + $0x3d8] sm:$0xff] }
 0x10b   : > { %vm3702_vm12 = vcmp.lt.s32.totalorder %v3701_v15, 0  ;;  %698 = vmatpush2.msra.mxu0 %v513_v32  ;;  %635 = vmatpush2.msra.mxu1 %v487_v33  ;;  %v446_v32 = vld [vmem:[#allocation5 + $0x3a8] sm:$0xff]  ;;  %v852_v33 = vsub.s32 4, %v4863_v9 }
 0x10c   : > { %v837_v30 = vsel %vm3702_vm12, 0, %v3701_v15  ;;  %v3708_v39 = vmin.u32 %v1057_v61, %v4880_v24  ;;  %699 = vmatprep.subr.mxu0 %v508_v37  ;;  %636 = vmatprep.subr.mxu1 %v482_v38  ;;  %v457_v15 = vld [vmem:[#allocation5 + $0x400] sm:$0xff]  ;;  %v451_v61 = vld [vmem:[#allocation5 + $0x3d0] sm:$0xff] }
 0x10d   : > { %v838_v35 = vsub.s32 32, %v837_v30  ;;  %v842_v36 = vsub.s32 4294967266, %v837_v30  ;;  %v839_v44 = vshll.u32 %v4872_v4, %v837_v30  ;;  %700 = vmatpush2.msra.mxu0 %v507_v40  ;;  %637 = vmatpush2.msra.mxu1 %v481_v43  ;;  %v469_v4 = vld [vmem:[#allocation5 + $0x460] sm:$0xff]  ;;  %v466_v40 = vld [vmem:[#allocation5 + $0x448] sm:$0xff]  ;;  %v440_v43 = vld [vmem:[#allocation5 + $0x378] sm:$0xff] }
 0x10e   : > { %v1059_v34 = vclz %v3708_v39  ;;  %701 = vmatprep.subr.mxu0 %v502_v16  ;;  %638 = vmatprep.subr.mxu1 %v476_v48  ;;  %v477_v30 = vld [vmem:[#allocation5 + $0x4a0] sm:$0xff]  ;;  %v439_v16 = vld [vmem:[#allocation5 + $0x370] sm:$0xff]  ;;  %v434_v48 = vld [vmem:[#allocation5 + $0x348] sm:$0xff] }
 0x10f   : > { %v840_v45 = vshrl.u32 %v4825_v18, %v838_v35  ;;  %v843_v5 = vadd.s32 127, %v842_v36  ;;  %v495_v18 = vld [vmem:[#allocation5 + $0x530] sm:$0xff]  ;;  %702 = vmatpush2.msra.mxu0 %v501_v42  ;;  %639 = vmatpush2.msra.mxu1 %v475_v49  ;;  %v445_v37 = vld [vmem:[#allocation5 + $0x3a0] sm:$0xff] }
 0x110   : > { %v3709_v52 = vadd.s32 4294967294, %v1059_v34  ;;  %703 = vmatprep.subr.mxu0 %v496_v22  ;;  %640 = vmatprep.subr.mxu1 %v470_v50  ;;  %v853_v34 = vsel %vm768_vm14, %v852_v33, %v4863_v9  ;;  %v454_v22 = vld [vmem:[#allocation5 + $0x3e8] sm:$0xff]  ;;  %v428_v50 = vld [vmem:[#allocation5 + $0x318] sm:$0xff] }
 0x111   : > { %v841_v13 = vor.u32 %v840_v45, %v839_v44  ;;  %v844_v6 = vshll.u32 %v843_v5, 23  ;;  %704 = vmatpush2.msra.mxu0 %v495_v18  ;;  %641 = vmatpush2.msra.mxu1 %v469_v4  ;;  %v465_v5 = vld [vmem:[#allocation5 + $0x440] sm:$0xff]  ;;  %v427_v4 = vld [vmem:[#allocation5 + $0x310] sm:$0xff]  ;;  %v448_v9 = vld [vmem:[#allocation5 + $0x3b8] sm:$0xff] }
 0x112   : > { %vm3710_vm13 = vcmp.lt.s32.totalorder %v3709_v52, 0  ;;  %705 = vmatprep.subr.mxu0 %v490_v54  ;;  %642 = vmatprep.subr.mxu1 %v464_v55  ;;  %v453_v18 = vld [vmem:[#allocation5 + $0x3e0] sm:$0xff]  ;;  %v447_v55 = vld [vmem:[#allocation5 + $0x3b0] sm:$0xff] }
 0x113   : > { %v845_v53 = vor.u32 4788187, %v844_v6  ;;  %v848_v62 = vcvt.s32.f32 %v841_v13  ;;  %v1062_v63 = vsel %vm3710_vm13, 0, %v3709_v52  ;;  %706 = vmatpush2.msra.mxu0 %v489_v56  ;;  %643 = vmatpush2.msra.mxu1 %v463_v57  ;;  %v459_v13 = vld [vmem:[#allocation5 + $0x410] sm:$0xff]  ;;  %v433_v6 = vld [vmem:[#allocation5 + $0x340] sm:$0xff]  ;;  %v442_v56 = vld [vmem:[#allocation5 + $0x388] sm:$0xff] }
 0x114   : > { %v1063_v10 = vsub.s32 32, %v1062_v63  ;;  %v1067_v12 = vsub.s32 4294967266, %v1062_v63  ;;  %v1064_v28 = vshll.u32 %v4880_v24, %v1062_v63  ;;  %707 = vmatprep.subr.mxu0 %v484_v2  ;;  %644 = vmatprep.subr.mxu1 %v458_v7  ;;  %v471_v24 = vld [vmem:[#allocation5 + $0x470] sm:$0xff]  ;;  %v1077_v63 = vsub.s32 4, %v4877_v60  ;;  %v441_v2 = vld [vmem:[#allocation5 + $0x380] sm:$0xff] }
 0x115   : > { %v846_v59 = vand.u32 2147483647, %v845_v53  ;;  %708 = vmatpush2.msra.mxu0 %v483_v14  ;;  %645 = vmatpush2.msra.mxu1 %v457_v15  ;;  %v855_v53 = vsel %vm4893_vm15, 0, %v853_v34  ;;  %v429_v15 = vld [vmem:[#allocation5 + $0x320] sm:$0xff]  ;;  %v4530_v34 = vmov 6  }
 0x116   : > { %v1065_v11 = vshrl.u32 %v1047_v8, %v1063_v10  ;;  %v1068_v29 = vadd.s32 127, %v1067_v12  ;;  %709 = vmatprep.subr.mxu0 %v478_v21  ;;  %646 = vmatprep.subr.mxu1 %v452_v26  ;;  %v962_v57 = vadd.s32 3, %v855_v53  ;;  %v435_v8 = vld [vmem:[#allocation5 + $0x350] sm:$0xff]  ;;  %v430_v10 = vld [vmem:[#allocation5 + $0x328] sm:$0xff]  ;;  %v859_v12 = vand.u32 3, %v855_v53 }
 0x117   : > { %v849_v17 = vmul.f32 %v848_v62, %v846_v59  ;;  %710 = vmatpush2.msra.mxu0 %v477_v30  ;;  %647 = vmatpush2.msra.mxu1 %v451_v61  ;;  %v1078_v14 = vsel %vm993_vm0, %v1077_v63, %v4877_v60 }
 0x118   : > { %v1066_v35 = vor.u32 %v1065_v11, %v1064_v28  ;;  %v1069_v36 = vshll.u32 %v1068_v29, 23  ;;  %711 = vmatprep.subr.mxu0 %v472_v31  ;;  %648 = vmatprep.subr.mxu1 %v446_v32  ;;  %v1080_v28 = vsel %vm4910_vm1, 0, %v1078_v14  ;;  %vm860_vm2 = vcmp.lt.s32.totalorder %v859_v12, 2 }
 0x119   : > { %v850_v27 = vxor.u32 2147483648, %v849_v17  ;;  %712 = vmatpush2.msra.mxu0 %v471_v24  ;;  %649 = vmatpush2.msra.mxu1 %v445_v37  ;;  %vm864_vm3 = vcmp.eq.s32.totalorder %v859_v12, 2  ;;  %vm861_vm5 = vcmp.eq.s32.totalorder %v859_v12, 0  ;;  %v1187_v30 = vadd.s32 3, %v1080_v28 }
 0x11a   : > { %v1070_v45 = vor.u32 4788187, %v1069_v36  ;;  %v1073_v49 = vcvt.s32.f32 %v1066_v35  ;;  %713 = vmatprep.subr.mxu0 %v466_v40  ;;  %650 = vmatprep.subr.mxu1 %v440_v43 }
 0x11b   : > { %v851_v39 = vsel %vm768_vm14, %v850_v27, %v849_v17  ;;  %714 = vmatpush2.msra.mxu0 %v465_v5  ;;  %651 = vmatpush2.msra.mxu1 %v439_v16  ;;  %v963_v17 = vand.u32 3, %v962_v57  ;;  %v1188_v36 = vand.u32 3, %v1187_v30  ;;  %vm1083_vm14 = vweird.f32 %v4732_v20 }
 0x11c   : > { %v854_v44 = vsel %vm4893_vm15, %v4730_v19, %v851_v39  ;;  %v1071_v42 = vand.u32 2147483647, %v1070_v45  ;;  %715 = vmatprep.subr.mxu0 %v460_v23  ;;  %652 = vmatprep.subr.mxu1 %v434_v48  ;;  %v4528_v48 = vmov 3  }
 0x11d   : > { %4303 = vcosq.f32 %v854_v44  ;;  %716 = vmatpush2.msra.mxu0 %v459_v13  ;;  %653 = vmatpush2.msra.mxu1 %v433_v6  ;;  %vm968_vm4 = vcmp.eq.s32.totalorder %v963_v17, 2  ;;  %vm965_vm6 = vcmp.eq.s32.totalorder %v963_v17, 0  ;;  %vm964_vm7 = vcmp.lt.s32.totalorder %v963_v17, 2 }
 0x11e   : > { %4305 = vsinq.f32 %v854_v44  ;;  %v1074_v52 = vmul.f32 %v1073_v49, %v1071_v42  ;;  %717 = vmatprep.subr.mxu0 %v454_v22  ;;  %654 = vmatprep.subr.mxu1 %v428_v50  ;;  %vm1190_vm11 = vcmp.eq.s32.totalorder %v1188_v36, 0  ;;  %vm1193_vm12 = vcmp.eq.s32.totalorder %v1188_v36, 2 }
 0x11f   : > { %718 = vmatpush2.msra.mxu0 %v453_v18  ;;  %655 = vmatpush2.msra.mxu1 %v427_v4  ;;  %vm1189_vm15 = vcmp.lt.s32.totalorder %v1188_v36, 2  ;;  %v4531_v42 = vmov 4  }
 0x120   : > { %v1075_v54 = vxor.u32 2147483648, %v1074_v52  ;;  %719 = vmatprep.subr.mxu0 %v448_v9  ;;  %657 = vmatmul.mubr.f32.vlgmr.msra.gmra.mxu1 %v4748_v0 }
 0x121   : > { %720 = vmatpush2.msra.mxu0 %v447_v55  ;;  %v1251_v55 = vsub.s32 3, %v4707_v41 }
 0x122   : > { %v1076_v62 = vsel %vm993_vm0, %v1075_v54, %v1074_v52  ;;  %721 = vmatprep.subr.mxu0 %v442_v56  ;;  %v1198_v52 = vld [vmem:[%s6121_s5] sm:$0xff]  ;;  %v1267_v56 = vsub.s32 4, %v4707_v41  ;;  %vm1367_vm0 = vcmask 64512  }
 0x123   : > { %v1079_v7 = vsel %vm4910_vm1, %v4732_v20, %v1076_v62  ;;  %722 = vmatpush2.msra.mxu0 %v441_v2  ;;  %v4529_v20 = vmov 5   ;;  %v1220_v4 = vrot.slane %v1198_v52, %v4713_v47  ;;  %v1202_v53 = vrot.slane %v1198_v52, %v4710_v46 }
 0x124   : > { %4307 = vcosq.f32 %v1079_v7  ;;  %723 = vmatprep.subr.mxu0 %v436_v25  ;;  %v1236_v54 = vrot.slane %v1198_v52, %v4722_v51  ;;  %v1283_v46 = vsub.s32 5, %v4707_v41  ;;  %vm4534_vm1 = vmmov 0  }
 0x125   : > { %4309 = vsinq.f32 %v1079_v7  ;;  %724 = vmatpush2.msra.mxu0 %v435_v8  ;;  %v1252_v7 = vrot.slane %v1198_v52, %v1251_v55  ;;  %v1268_v8 = vrot.slane %v1198_v52, %v1267_v56 }
 0x126   : > { %725 = vmatprep.subr.mxu0 %v430_v10 }
 0x127   : > { %726 = vmatpush2.msra.mxu0 %v429_v15 }
 0x128   : > { %728 = vmatmul.mubr.f32.vlgmr.msra.gmra.mxu0 %v4748_v0  ;;  %v1084_v0 = vand.u32 3, %v1080_v28 }
 0x12a   : > { %v4304_v21 = vpop.eup %4303  ;;  %vm1089_vm9 = vcmp.eq.s32.totalorder %v1084_v0, 2  ;;  %vm1086_vm10 = vcmp.eq.s32.totalorder %v1084_v0, 0  ;;  %vm1085_vm13 = vcmp.lt.s32.totalorder %v1084_v0, 2 }
 0x12b   : > { %v4306_v26 = vpop.eup %4305  ;;  %v865_v58 = vxor.u32 2147483648, %v4304_v21 }
 0x12c   : > { %v862_v11 = vxor.u32 2147483648, %v4306_v26 }
 0x12d   : > { %v866_v60 = vsel %vm864_vm3, %v865_v58, %v4306_v26  ;;  %v970_v29 = vsel %vm968_vm4, %v865_v58, %v4306_v26  ;;  %v1315_v58 = vsub.s32 7, %v4707_v41 }
 0x12e   : > { %v863_v61 = vsel %vm861_vm5, %v4304_v21, %v862_v11  ;;  %v967_v27 = vsel %vm965_vm6, %v4304_v21, %v862_v11  ;;  %v1299_v21 = vsub.s32 6, %v4707_v41  ;;  %v1284_v11 = vrot.slane %v1198_v52, %v1283_v46 }
 0x12f   : > { %v867_v31 = vsel %vm860_vm2, %v863_v61, %v866_v60  ;;  %v971_v32 = vsel %vm964_vm7, %v967_v27, %v970_v29  ;;  %vm2469_vm5 = vcmask 523264  }
 0x130   : > { %v4930_v33 = vsel %vm858_vm8, nan, %v867_v31  ;;  %v4932_v35 = vsel %vm858_vm8, nan, %v971_v32  ;;  %v1300_v31 = vrot.slane %v1198_v52, %v1299_v21 }
 0x131   : > { %6192 = vst [vmem:[#allocation12_spill] sm:$0xff] %v4930_v33  ;;  %6193 = vst [vmem:[#allocation13_spill] sm:$0xff] %v4932_v35  ;;  %v4308_v24 = vpop.eup %4307 }
 0x132   : > { %v4310_v37 = vpop.eup %4309  ;;  %v1090_v38 = vxor.u32 2147483648, %v4308_v24 }
 0x133   : > { %v1087_v39 = vxor.u32 2147483648, %v4310_v37 }
 0x134   : > { %v1091_v40 = vsel %vm1089_vm9, %v1090_v38, %v4310_v37  ;;  %v1195_v44 = vsel %vm1193_vm12, %v1090_v38, %v4310_v37 }
 0x135   : > { %v1088_v43 = vsel %vm1086_vm10, %v4308_v24, %v1087_v39  ;;  %v1192_v19 = vsel %vm1190_vm11, %v4308_v24, %v1087_v39  ;;  %v1316_v24 = vrot.slane %v1198_v52, %v1315_v58 }
 0x136   : > { %v1092_v45 = vsel %vm1085_vm13, %v1088_v43, %v1091_v40  ;;  %v1196_v16 = vsel %vm1189_vm15, %v1192_v19, %v1195_v44 }
 0x137   : > { %v1093_v5 = vsel %vm1083_vm14, nan, %v1092_v45  ;;  %v1197_v23 = vsel %vm1083_vm14, nan, %v1196_v16 }
 0x138   : > { %1222 = vperm.xlu0 %4288, %v1093_v5   ;;  %1205 = vperm.xlu1 %4290, %v1093_v5  }
 0x13c   : > { %4292 = vset.pattern.permute.xlu0 %v4520_v1  ;;  %1212 = vperm.xlu1 %4290, %v1197_v23  }
 0x13d   : > { %1238 = vperm.xlu0 %4292, %v1093_v5  }
 0x140   : > { %4291 = vset.pattern.permute.xlu1 %v4521_v3  ;;  %v4532_v3 = vmov 7  }
 0x141   : > { %4295 = vset.pattern.permute.xlu0 %v4528_v48  ;;  %1228 = vperm.xlu1 %4291, %v1197_v23  }
 0x142   : > { %1260 = vperm.xlu0 %4295, %v1197_v23  }
 0x145   : > { %4293 = vset.pattern.permute.xlu1 %v4520_v1 }
 0x146   : > { %4297 = vset.pattern.permute.xlu0 %v4529_v20  ;;  %1244 = vperm.xlu1 %4293, %v1197_v23  }
 0x147   : > { %1286 = vperm.xlu0 %4297, %v1093_v5  }
 0x14a   : > { %4294 = vset.pattern.permute.xlu1 %v4528_v48 }
 0x14b   : > { %4300 = vset.pattern.permute.xlu0 %v4530_v34  ;;  %1254 = vperm.xlu1 %4294, %v1093_v5  }
 0x14c   : > { %1308 = vperm.xlu0 %4300, %v1197_v23  }
 0x14f   : > { %4296 = vset.pattern.permute.xlu1 %v4531_v42 }
 0x150   : > { %1270 = vperm.xlu1 %4296, %v1093_v5  }
 0x154   : > { %1276 = vperm.xlu1 %4296, %v1197_v23  }
 0x158   : > { %4298 = vset.pattern.permute.xlu1 %v4529_v20 }
 0x159   : > { %1292 = vperm.xlu1 %4298, %v1197_v23  }
 0x15d   : > { %4299 = vset.pattern.permute.xlu1 %v4530_v34 }
 0x15e   : > { %1302 = vperm.xlu1 %4299, %v1093_v5  }
 0x162   : > { %4301 = vset.pattern.permute.xlu1 %v4532_v3 }
 0x163   : > { %1318 = vperm.xlu1 %4301, %v1093_v5  }
 0x167   : > { %1324 = vperm.xlu1 %4301, %v1197_v23  }
 0x194   : > { %v4950_v48 = vpop.f32.mrf.mxu0 }
 0x1b3   : > { %v1206_v1 = vpop.permute.xlu1 %1205  ;;  %v1223_v22 = vpop.permute.xlu0 %1222 }
 0x1b4   : > { %v1225_v59 = vmul.f32 %v1223_v22, %v1220_v4  ;;  %v1208_v62 = vmul.f32 %v1206_v1, %v1202_v53 }
 0x1b6   : > { %v1226_v47 = vadd.f32 %v1225_v59, %v1208_v62 }
 0x1b7   : > { %v1213_v49 = vpop.permute.xlu1 %1212 }
 0x1b8   : > { %v1239_v9 = vpop.permute.xlu0 %1238  ;;  %v1215_v10 = vmul.f32 %v1213_v49, %v1202_v53 }
 0x1b9   : > { %v1241_v2 = vmul.f32 %v1239_v9, %v1236_v54 }
 0x1bb   : > { %v1242_v17 = vadd.f32 %v1241_v2, %v1226_v47 }
 0x1bc   : > { %v1229_v13 = vpop.permute.xlu1 %1228 }
 0x1bd   : > { %v1231_v63 = vmul.f32 %v1229_v13, %v1220_v4  ;;  %v1261_v25 = vpop.permute.xlu0 %1260 }
 0x1be   : > { %v1263_v30 = vmul.f32 %v1261_v25, %v1252_v7 }
 0x1bf   : > { %v1232_v51 = vadd.f32 %v1231_v63, %v1215_v10 }
 0x1c1   : > { %v1245_v6 = vpop.permute.xlu1 %1244 }
 0x1c2   : > { %v1247_v12 = vmul.f32 %v1245_v6, %v1236_v54  ;;  %v1287_v60 = vpop.permute.xlu0 %1286  ;;  %v4953_v6 = vpop.f32.mrf.mxu0 }
 0x1c3   : > { %v1289_v37 = vmul.f32 %v1287_v60, %v1284_v11  ;;  %6194 = vst [vmem:[#allocation14_spill] sm:$0xff] %v4953_v6 }
 0x1c4   : > { %v1248_v28 = vadd.f32 %v1247_v12, %v1232_v51 }
 0x1c6   : > { %v1255_v50 = vpop.permute.xlu1 %1254  ;;  %v1264_v0 = vadd.f32 %v1263_v30, %v1248_v28 }
 0x1c7   : > { %v1257_v14 = vmul.f32 %v1255_v50, %v1252_v7  ;;  %v1309_v40 = vpop.permute.xlu0 %1308 }
 0x1c8   : > { %v1311_v5 = vmul.f32 %v1309_v40, %v1300_v31 }
 0x1c9   : > { %v1258_v29 = vadd.f32 %v1257_v14, %v1242_v17 }
 0x1cb   : > { %v1271_v18 = vpop.permute.xlu1 %1270 }
 0x1cc   : > { %v1273_v26 = vmul.f32 %v1271_v18, %v1268_v8  ;;  %v6128_v18 = vmov 0.0  }
 0x1cd   : > { %1480 = vmatprep.mubr.f32.mxu1 %v6128_v18  ;;  %1641 = vmatprep.mubr.f32.mxu0 %v6128_v18 }
 0x1ce   : > { %v1274_v32 = vadd.f32 %v1273_v26, %v1258_v29 }
 0x1cf   : > { %v1277_v57 = vpop.permute.xlu1 %1276 }
 0x1d0   : > { %v1279_v61 = vmul.f32 %v1277_v57, %v1268_v8  ;;  %v1290_v43 = vadd.f32 %v1289_v37, %v1274_v32 }
 0x1d2   : > { %v1280_v39 = vadd.f32 %v1279_v61, %v1264_v0 }
 0x1d4   : > { %v1293_v15 = vpop.permute.xlu1 %1292 }
 0x1d5   : > { %v1295_v36 = vmul.f32 %v1293_v15, %v1284_v11 }
 0x1d7   : > { %v1296_v44 = vadd.f32 %v1295_v36, %v1280_v39 }
 0x1d9   : > { %v1303_v27 = vpop.permute.xlu1 %1302  ;;  %v1312_v20 = vadd.f32 %v1311_v5, %v1296_v44 }
 0x1da   : > { %v1305_v38 = vmul.f32 %v1303_v27, %v1300_v31 }
 0x1dc   : > { %v1306_v41 = vadd.f32 %v1305_v38, %v1290_v43 }
 0x1de   : > { %v1319_v19 = vpop.permute.xlu1 %1318 }
 0x1df   : > { %v1321_v45 = vmul.f32 %v1319_v19, %v1316_v24 }
 0x1e0   : > { %v658_v42 = vpop.f32.mrf.mxu1 }
 0x1e1   : > { %v1322_v16 = vadd.f32 %v1321_v45, %v1306_v41 }
 0x1e2   : > { %v1325_v23 = vpop.permute.xlu1 %1324  ;;  %v660_v49 = vpop.f32.mrf.mxu1 }
 0x1e3   : > { %v1327_v34 = vmul.f32 %v1325_v23, %v1316_v24  ;;  %v1329_v13 = vmul.f32 %v1322_v16, %v4930_v33  ;;  %1446 = vmatprep.subr.mxu1 %v660_v49  ;;  %v1332_v22 = vmul.f32 %v1322_v16, %v4932_v35 }
 0x1e4   : > { %1447 = vmatpush1.msra.mxu1 %v658_v42 }
 0x1e5   : > { %v1328_v1 = vadd.f32 %v1327_v34, %v1312_v20  ;;  %1848 = vmatprep.subr.mxu1 %v660_v49 }
 0x1e7   : > { %v1330_v50 = vmul.f32 %v1328_v1, %v4932_v35  ;;  %v1333_v52 = vmul.f32 %v1328_v1, %v4930_v33 }
 0x1e8   : > { %v729_v9 = vpop.f32.mrf.mxu0 }
 0x1e9   : > { %v1334_v4 = vadd.f32 %v1333_v52, %v1332_v22  ;;  %v1331_v53 = vsub.f32 %v1329_v13, %v1330_v50 }
 0x1ea   : > { %v731_v54 = vpop.f32.mrf.mxu0 }
 0x1eb   : > { %1738 = vxpose.xlu1.b32.start.end [1/1] (short) %v1334_v4, 128  ;;  %1335 = vxpose.xlu0.b32.start.end [1/1] (short) %v1331_v53, 128 }
 0x1ec   : > { %1607 = vmatprep.subr.mxu0 %v731_v54 }
 0x1ed   : > { %1608 = vmatpush1.msra.mxu0 %v729_v9 }
 0x1ee   : > { %2009 = vmatprep.subr.mxu0 %v731_v54 }
 0x214   : > { %4302 = vset.pattern.permute.xlu0 %v4532_v3 }
 0x267   : > { %v1351_v55 = vpop.trf.xlu0  ;;  %v1754_v25 = vpop.trf.xlu1 }
 0x268   : > { %3715 = vmatmul.mubr.msk.f32.vlgmr.msra.gmra.mxu1 %vm1367_vm0, %v1351_v55  ;;  %3731 = vmatmul.mubr.msk.f32.vlgmr.msra.gmra.mxu0 %vm1367_vm0, %v1351_v55 }
 0x269   : > { %1849 = vmatpush1.msra.mxu1 %v658_v42  ;;  %1486 = vmatprep.mubr.f32.mxu1 %v6128_v18 }
 0x26a   : > { %1647 = vmatprep.mubr.f32.mxu0 %v6128_v18  ;;  %2010 = vmatpush1.msra.mxu0 %v729_v9 }
 0x26b   : > { %v1352_v56 = vpop.trf.xlu0  ;;  %4063 = vmatprep.subr.mxu1 %v6128_v18  ;;  %4098 = vmatprep.subr.mxu0 %v6128_v18  ;;  %v1755_v10 = vpop.trf.xlu1 }
 0x26c   : > { %3716 = vmatmul.mubr.msk.f32.gmra.mxu1 %vm1367_vm0, %v1352_v56  ;;  %3732 = vmatmul.mubr.msk.f32.gmra.mxu0 %vm1367_vm0, %v1352_v56 }
 0x26d   : > { %1492 = vmatprep.mubr.f32.mxu1 %v6128_v18  ;;  %1653 = vmatprep.mubr.f32.mxu0 %v6128_v18 }
 0x26f   : > { %v1353_v3 = vpop.trf.xlu0  ;;  %v1756_v46 = vpop.trf.xlu1 }
 0x270   : > { %3717 = vmatmul.mubr.msk.f32.gmra.mxu1 %vm1367_vm0, %v1353_v3  ;;  %3733 = vmatmul.mubr.msk.f32.gmra.mxu0 %vm1367_vm0, %v1353_v3 }
 0x271   : > { %1498 = vmatprep.mubr.f32.mxu1 %v6128_v18  ;;  %1659 = vmatprep.mubr.f32.mxu0 %v6128_v18 }
 0x273   : > { %v1354_v57 = vpop.trf.xlu0  ;;  %v1757_v15 = vpop.trf.xlu1 }
 0x274   : > { %3718 = vmatmul.mubr.msk.f32.gmra.mxu1 %vm1367_vm0, %v1354_v57  ;;  %3734 = vmatmul.mubr.msk.f32.gmra.mxu0 %vm1367_vm0, %v1354_v57 }
 0x275   : > { %1504 = vmatprep.mubr.f32.mxu1 %v6128_v18  ;;  %1665 = vmatprep.mubr.f32.mxu0 %v6128_v18 }
 0x277   : > { %v1355_v59 = vpop.trf.xlu0  ;;  %v1758_v21 = vpop.trf.xlu1 }
 0x278   : > { %3719 = vmatmul.mubr.msk.f32.gmra.mxu1 %vm1367_vm0, %v1355_v59  ;;  %3735 = vmatmul.mubr.msk.f32.gmra.mxu0 %vm1367_vm0, %v1355_v59 }
 0x279   : > { %1510 = vmatprep.mubr.f32.mxu1 %v6128_v18  ;;  %1671 = vmatprep.mubr.f32.mxu0 %v6128_v18 }
 0x27b   : > { %v1356_v62 = vpop.trf.xlu0  ;;  %v1759_v28 = vpop.trf.xlu1 }
 0x27c   : > { %3720 = vmatmul.mubr.msk.f32.gmra.mxu1 %vm1367_vm0, %v1356_v62  ;;  %3736 = vmatmul.mubr.msk.f32.gmra.mxu0 %vm1367_vm0, %v1356_v62 }
 0x27d   : > { %1516 = vmatprep.mubr.f32.mxu1 %v6128_v18  ;;  %1677 = vmatprep.mubr.f32.mxu0 %v6128_v18 }
 0x27f   : > { %v1357_v63 = vpop.trf.xlu0  ;;  %v1760_v58 = vpop.trf.xlu1 }
 0x280   : > { %3721 = vmatmul.mubr.msk.f32.gmra.mxu1 %vm1367_vm0, %v1357_v63  ;;  %3737 = vmatmul.mubr.msk.f32.gmra.mxu0 %vm1367_vm0, %v1357_v63 }
 0x281   : > { %1522 = vmatprep.mubr.f32.mxu1 %v6128_v18  ;;  %1683 = vmatprep.mubr.f32.mxu0 %v6128_v18 }
 0x283   : > { %v1358_v2 = vpop.trf.xlu0  ;;  %v1761_v11 = vpop.trf.xlu1 }
 0x284   : > { %3722 = vmatmul.mubr.msk.f32.gmra.mxu1 %vm1367_vm0, %v1358_v2  ;;  %3738 = vmatmul.mubr.msk.f32.gmra.mxu0 %vm1367_vm0, %v1358_v2 }
 0x285   : > { %1528 = vmatprep.mubr.f32.mxu1 %v6128_v18  ;;  %1689 = vmatprep.mubr.f32.mxu0 %v6128_v18 }
 0x287   : > { %v1359_v7 = vpop.trf.xlu0  ;;  %v1762_v60 = vpop.trf.xlu1 }
 0x288   : > { %3723 = vmatmul.mubr.msk.f32.gmra.mxu1 %vm1367_vm0, %v1359_v7  ;;  %3739 = vmatmul.mubr.msk.f32.gmra.mxu0 %vm1367_vm0, %v1359_v7 }
 0x289   : > { %1534 = vmatprep.mubr.f32.mxu1 %v6128_v18  ;;  %1695 = vmatprep.mubr.f32.mxu0 %v6128_v18 }
 0x28b   : > { %v1360_v8 = vpop.trf.xlu0  ;;  %v1763_v29 = vpop.trf.xlu1 }
 0x28c   : > { %3724 = vmatmul.mubr.msk.f32.gmra.mxu1 %vm1367_vm0, %v1360_v8  ;;  %3740 = vmatmul.mubr.msk.f32.gmra.mxu0 %vm1367_vm0, %v1360_v8 }
 0x28d   : > { %1540 = vmatprep.mubr.f32.mxu1 %v6128_v18  ;;  %1701 = vmatprep.mubr.f32.mxu0 %v6128_v18 }
 0x28f   : > { %v1361_v12 = vpop.trf.xlu0  ;;  %v1764_v30 = vpop.trf.xlu1 }
 0x290   : > { %3725 = vmatmul.mubr.msk.f32.gmra.mxu1 %vm1367_vm0, %v1361_v12  ;;  %3741 = vmatmul.mubr.msk.f32.gmra.mxu0 %vm1367_vm0, %v1361_v12 }
 0x291   : > { %1546 = vmatprep.mubr.f32.mxu1 %v6128_v18  ;;  %1707 = vmatprep.mubr.f32.mxu0 %v6128_v18 }
 0x293   : > { %v1362_v47 = vpop.trf.xlu0  ;;  %v1765_v61 = vpop.trf.xlu1 }
 0x294   : > { %3726 = vmatmul.mubr.msk.f32.gmra.mxu1 %vm1367_vm0, %v1362_v47  ;;  %3742 = vmatmul.mubr.msk.f32.gmra.mxu0 %vm1367_vm0, %v1362_v47 }
 0x295   : > { %1552 = vmatprep.mubr.f32.mxu1 %v6128_v18  ;;  %1713 = vmatprep.mubr.f32.mxu0 %v6128_v18 }
 0x297   : > { %v1363_v14 = vpop.trf.xlu0  ;;  %v1766_v27 = vpop.trf.xlu1 }
 0x298   : > { %3727 = vmatmul.mubr.msk.f32.gmra.mxu1 %vm1367_vm0, %v1363_v14  ;;  %3743 = vmatmul.mubr.msk.f32.gmra.mxu0 %vm1367_vm0, %v1363_v14 }
 0x299   : > { %1558 = vmatprep.mubr.f32.mxu1 %v6128_v18  ;;  %1719 = vmatprep.mubr.f32.mxu0 %v6128_v18 }
 0x29b   : > { %v1364_v51 = vpop.trf.xlu0  ;;  %v1767_v31 = vpop.trf.xlu1 }
 0x29c   : > { %3728 = vmatmul.mubr.msk.f32.gmra.mxu1 %vm1367_vm0, %v1364_v51  ;;  %3744 = vmatmul.mubr.msk.f32.gmra.mxu0 %vm1367_vm0, %v1364_v51 }
 0x29d   : > { %1564 = vmatprep.mubr.f32.mxu1 %v6128_v18  ;;  %1725 = vmatprep.mubr.f32.mxu0 %v6128_v18 }
 0x29f   : > { %v1365_v17 = vpop.trf.xlu0  ;;  %v1768_v32 = vpop.trf.xlu1 }
 0x2a0   : > { %3729 = vmatmul.mubr.msk.f32.gmra.mxu1 %vm1367_vm0, %v1365_v17  ;;  %3745 = vmatmul.mubr.msk.f32.gmra.mxu0 %vm1367_vm0, %v1365_v17 }
 0x2a1   : > { %1570 = vmatprep.mubr.f32.mxu1 %v6128_v18  ;;  %1731 = vmatprep.mubr.f32.mxu0 %v6128_v18 }
 0x2a3   : > { %v1366_v26 = vpop.trf.xlu0  ;;  %v1769_v0 = vpop.trf.xlu1 }
 0x2a4   : > { %3730 = vmatmul.mubr.msk.f32.gmra.mxu1 %vm1367_vm0, %v1366_v26  ;;  %3746 = vmatmul.mubr.msk.f32.gmra.mxu0 %vm1367_vm0, %v1366_v26 }
 0x2a5   : > { %1882 = vmatprep.mubr.f32.mxu1 %v6128_v18  ;;  %2043 = vmatprep.mubr.f32.mxu0 %v6128_v18 }
 0x2a8   : > { %3747 = vmatmul.mubr.msk.f32.vlgmr.msra.gmra.mxu1 %vm1367_vm0, %v1754_v25  ;;  %3763 = vmatmul.mubr.msk.f32.vlgmr.msra.gmra.mxu0 %vm1367_vm0, %v1754_v25 }
 0x2a9   : > { %1888 = vmatprep.mubr.f32.mxu1 %v6128_v18  ;;  %2049 = vmatprep.mubr.f32.mxu0 %v6128_v18 }
 0x2ac   : > { %3748 = vmatmul.mubr.msk.f32.gmra.mxu1 %vm1367_vm0, %v1755_v10  ;;  %3764 = vmatmul.mubr.msk.f32.gmra.mxu0 %vm1367_vm0, %v1755_v10 }
 0x2ad   : > { %1894 = vmatprep.mubr.f32.mxu1 %v6128_v18  ;;  %2055 = vmatprep.mubr.f32.mxu0 %v6128_v18 }
 0x2b0   : > { %3749 = vmatmul.mubr.msk.f32.gmra.mxu1 %vm1367_vm0, %v1756_v46  ;;  %3765 = vmatmul.mubr.msk.f32.gmra.mxu0 %vm1367_vm0, %v1756_v46 }
 0x2b1   : > { %1900 = vmatprep.mubr.f32.mxu1 %v6128_v18  ;;  %2061 = vmatprep.mubr.f32.mxu0 %v6128_v18 }
 0x2b4   : > { %3750 = vmatmul.mubr.msk.f32.gmra.mxu1 %vm1367_vm0, %v1757_v15  ;;  %3766 = vmatmul.mubr.msk.f32.gmra.mxu0 %vm1367_vm0, %v1757_v15 }
 0x2b5   : > { %1906 = vmatprep.mubr.f32.mxu1 %v6128_v18  ;;  %2067 = vmatprep.mubr.f32.mxu0 %v6128_v18 }
 0x2b8   : > { %3751 = vmatmul.mubr.msk.f32.gmra.mxu1 %vm1367_vm0, %v1758_v21  ;;  %3767 = vmatmul.mubr.msk.f32.gmra.mxu0 %vm1367_vm0, %v1758_v21 }
 0x2b9   : > { %1912 = vmatprep.mubr.f32.mxu1 %v6128_v18  ;;  %2073 = vmatprep.mubr.f32.mxu0 %v6128_v18 }
 0x2bc   : > { %3752 = vmatmul.mubr.msk.f32.gmra.mxu1 %vm1367_vm0, %v1759_v28  ;;  %3768 = vmatmul.mubr.msk.f32.gmra.mxu0 %vm1367_vm0, %v1759_v28 }
 0x2bd   : > { %1918 = vmatprep.mubr.f32.mxu1 %v6128_v18  ;;  %2079 = vmatprep.mubr.f32.mxu0 %v6128_v18 }
 0x2c0   : > { %3753 = vmatmul.mubr.msk.f32.gmra.mxu1 %vm1367_vm0, %v1760_v58  ;;  %3769 = vmatmul.mubr.msk.f32.gmra.mxu0 %vm1367_vm0, %v1760_v58 }
 0x2c1   : > { %1924 = vmatprep.mubr.f32.mxu1 %v6128_v18  ;;  %2085 = vmatprep.mubr.f32.mxu0 %v6128_v18 }
 0x2c4   : > { %3754 = vmatmul.mubr.msk.f32.gmra.mxu1 %vm1367_vm0, %v1761_v11  ;;  %3770 = vmatmul.mubr.msk.f32.gmra.mxu0 %vm1367_vm0, %v1761_v11 }
 0x2c5   : > { %1930 = vmatprep.mubr.f32.mxu1 %v6128_v18  ;;  %2091 = vmatprep.mubr.f32.mxu0 %v6128_v18 }
 0x2c8   : > { %3755 = vmatmul.mubr.msk.f32.gmra.mxu1 %vm1367_vm0, %v1762_v60  ;;  %3771 = vmatmul.mubr.msk.f32.gmra.mxu0 %vm1367_vm0, %v1762_v60 }
 0x2c9   : > { %1936 = vmatprep.mubr.f32.mxu1 %v6128_v18  ;;  %2097 = vmatprep.mubr.f32.mxu0 %v6128_v18 }
 0x2cc   : > { %3756 = vmatmul.mubr.msk.f32.gmra.mxu1 %vm1367_vm0, %v1763_v29  ;;  %3772 = vmatmul.mubr.msk.f32.gmra.mxu0 %vm1367_vm0, %v1763_v29 }
 0x2cd   : > { %1942 = vmatprep.mubr.f32.mxu1 %v6128_v18  ;;  %2103 = vmatprep.mubr.f32.mxu0 %v6128_v18 }
 0x2d0   : > { %3757 = vmatmul.mubr.msk.f32.gmra.mxu1 %vm1367_vm0, %v1764_v30  ;;  %3773 = vmatmul.mubr.msk.f32.gmra.mxu0 %vm1367_vm0, %v1764_v30 }
 0x2d1   : > { %1948 = vmatprep.mubr.f32.mxu1 %v6128_v18  ;;  %2109 = vmatprep.mubr.f32.mxu0 %v6128_v18 }
 0x2d4   : > { %3758 = vmatmul.mubr.msk.f32.gmra.mxu1 %vm1367_vm0, %v1765_v61  ;;  %3774 = vmatmul.mubr.msk.f32.gmra.mxu0 %vm1367_vm0, %v1765_v61 }
 0x2d5   : > { %1954 = vmatprep.mubr.f32.mxu1 %v6128_v18  ;;  %2115 = vmatprep.mubr.f32.mxu0 %v6128_v18 }
 0x2d8   : > { %3759 = vmatmul.mubr.msk.f32.gmra.mxu1 %vm1367_vm0, %v1766_v27  ;;  %3775 = vmatmul.mubr.msk.f32.gmra.mxu0 %vm1367_vm0, %v1766_v27 }
 0x2d9   : > { %1960 = vmatprep.mubr.f32.mxu1 %v6128_v18  ;;  %2121 = vmatprep.mubr.f32.mxu0 %v6128_v18 }
 0x2dc   : > { %3760 = vmatmul.mubr.msk.f32.gmra.mxu1 %vm1367_vm0, %v1767_v31  ;;  %3776 = vmatmul.mubr.msk.f32.gmra.mxu0 %vm1367_vm0, %v1767_v31 }
 0x2dd   : > { %1966 = vmatprep.mubr.f32.mxu1 %v6128_v18  ;;  %2127 = vmatprep.mubr.f32.mxu0 %v6128_v18 }
 0x2e0   : > { %3761 = vmatmul.mubr.msk.f32.gmra.mxu1 %vm1367_vm0, %v1768_v32  ;;  %3777 = vmatmul.mubr.msk.f32.gmra.mxu0 %vm1367_vm0, %v1768_v32 }
 0x2e1   : > { %1972 = vmatprep.mubr.f32.mxu1 %v6128_v18  ;;  %2133 = vmatprep.mubr.f32.mxu0 %v6128_v18 }
 0x2e4   : > { %3762 = vmatmul.mubr.msk.f32.gmra.mxu1 %vm1367_vm0, %v1769_v0  ;;  %3778 = vmatmul.mubr.msk.f32.gmra.mxu0 %vm1367_vm0, %v1769_v0 }
 0x328   : > { %v5089_v36 = vpop.f32.mrf.mxu1  ;;  %v5091_v24 = vpop.f32.mrf.mxu0 }
 0x329   : > { %6195 = vst [vmem:[#allocation15_spill] sm:$0xff] %v5091_v24 }
 0x32a   : > { %v5093_v37 = vpop.f32.mrf.mxu1  ;;  %v5095_v38 = vpop.f32.mrf.mxu0 }
 0x32b   : > { %6196 = vst [vmem:[#allocation16_spill] sm:$0xff] %v5095_v38 }
 0x32c   : > { %v5097_v39 = vpop.f32.mrf.mxu1  ;;  %v5099_v40 = vpop.f32.mrf.mxu0 }
 0x32d   : > { %6197 = vst [vmem:[#allocation17_spill] sm:$0xff] %v5099_v40 }
 0x32e   : > { %v5101_v43 = vpop.f32.mrf.mxu1  ;;  %v5103_v19 = vpop.f32.mrf.mxu0 }
 0x32f   : > { %6198 = vst [vmem:[#allocation18_spill] sm:$0xff] %v5103_v19 }
 0x330   : > { %v5105_v44 = vpop.f32.mrf.mxu1  ;;  %v5107_v45 = vpop.f32.mrf.mxu0 }
 0x332   : > { %v5109_v41 = vpop.f32.mrf.mxu1  ;;  %v5111_v5 = vpop.f32.mrf.mxu0 }
 0x333   : > { %6199 = vst [vmem:[#allocation19_spill] sm:$0xff] %v5111_v5 }
 0x334   : > { %v5113_v16 = vpop.f32.mrf.mxu1  ;;  %v5115_v23 = vpop.f32.mrf.mxu0 }
 0x336   : > { %v5117_v20 = vpop.f32.mrf.mxu1  ;;  %v5119_v34 = vpop.f32.mrf.mxu0 }
 0x337   : > { %6200 = vst [vmem:[#allocation20_spill] sm:$0xff] %v5119_v34 }
 0x338   : > { %v5121_v42 = vpop.f32.mrf.mxu1  ;;  %v5123_v1 = vpop.f32.mrf.mxu0 }
 0x33a   : > { %v5125_v49 = vpop.f32.mrf.mxu1  ;;  %v5127_v13 = vpop.f32.mrf.mxu0 }
 0x33b   : > { %6201 = vst [vmem:[#allocation21_spill] sm:$0xff] %v5127_v13 }
 0x33c   : > { %v5129_v22 = vpop.f32.mrf.mxu1  ;;  %v5131_v50 = vpop.f32.mrf.mxu0 }
 0x33e   : > { %v5133_v52 = vpop.f32.mrf.mxu1  ;;  %v5135_v4 = vpop.f32.mrf.mxu0 }
 0x33f   : > { %6202 = vst [vmem:[#allocation22_spill] sm:$0xff] %v5135_v4 }
 0x340   : > { %v5137_v53 = vpop.f32.mrf.mxu1  ;;  %v5139_v9 = vpop.f32.mrf.mxu0 }
 0x342   : > { %v5141_v54 = vpop.f32.mrf.mxu1  ;;  %v5143_v55 = vpop.f32.mrf.mxu0 }
 0x343   : > { %6203 = vst [vmem:[#allocation23_spill] sm:$0xff] %v5143_v55  ;;  %v2140_v55 = vmul.f32 %v5089_v36, %v5089_v36 }
 0x344   : > { %v5145_v56 = vpop.f32.mrf.mxu1  ;;  %v5147_v3 = vpop.f32.mrf.mxu0 }
 0x346   : > { %v5149_v57 = vpop.f32.mrf.mxu1  ;;  %v5151_v59 = vpop.f32.mrf.mxu0 }
 0x347   : > { %6204 = vst [vmem:[#allocation24_spill] sm:$0xff] %v5151_v59 }
 0x348   : > { %v5153_v62 = vpop.f32.mrf.mxu1  ;;  %v5155_v63 = vpop.f32.mrf.mxu0 }
 0x34a   : > { %v5157_v2 = vpop.f32.mrf.mxu1  ;;  %v5159_v7 = vpop.f32.mrf.mxu0 }
 0x34b   : > { %6205 = vst [vmem:[#allocation25_spill] sm:$0xff] %v5159_v7 }
 0x34c   : > { %v5161_v25 = vpop.f32.mrf.mxu1  ;;  %v5163_v8 = vpop.f32.mrf.mxu0 }
 0x34e   : > { %v5165_v10 = vpop.f32.mrf.mxu1  ;;  %v5167_v12 = vpop.f32.mrf.mxu0 }
 0x34f   : > { %6206 = vst [vmem:[#allocation26_spill] sm:$0xff] %v5167_v12 }
 0x350   : > { %v5169_v47 = vpop.f32.mrf.mxu1  ;;  %v5171_v46 = vpop.f32.mrf.mxu0 }
 0x352   : > { %v5173_v14 = vpop.f32.mrf.mxu1  ;;  %v5175_v15 = vpop.f32.mrf.mxu0 }
 0x353   : > { %6207 = vst [vmem:[#allocation27_spill] sm:$0xff] %v5175_v15 }
 0x354   : > { %v5177_v51 = vpop.f32.mrf.mxu1  ;;  %v5179_v17 = vpop.f32.mrf.mxu0 }
 0x356   : > { %v5181_v21 = vpop.f32.mrf.mxu1  ;;  %v5183_v26 = vpop.f32.mrf.mxu0 }
 0x357   : > { %6208 = vst [vmem:[#allocation28_spill] sm:$0xff] %v5183_v26 }
 0x358   : > { %v5185_v28 = vpop.f32.mrf.mxu1  ;;  %v5187_v58 = vpop.f32.mrf.mxu0 }
 0x35a   : > { %v5189_v11 = vpop.f32.mrf.mxu1  ;;  %v5191_v60 = vpop.f32.mrf.mxu0 }
 0x35b   : > { %6209 = vst [vmem:[#allocation29_spill] sm:$0xff] %v5191_v60 }
 0x35c   : > { %v5193_v29 = vpop.f32.mrf.mxu1  ;;  %v5195_v30 = vpop.f32.mrf.mxu0 }
 0x35e   : > { %v5197_v61 = vpop.f32.mrf.mxu1  ;;  %v5199_v27 = vpop.f32.mrf.mxu0 }
 0x35f   : > { %6210 = vst [vmem:[#allocation30_spill] sm:$0xff] %v5199_v27 }
 0x360   : > { %v5201_v31 = vpop.f32.mrf.mxu1  ;;  %v5203_v32 = vpop.f32.mrf.mxu0 }
 0x362   : > { %v5205_v0 = vpop.f32.mrf.mxu1  ;;  %v5207_v18 = vpop.f32.mrf.mxu0 }
 0x363   : > { %6211 = vst [vmem:[#allocation31_spill] sm:$0xff] %v5207_v18  ;;  %v2141_v18 = vmul.f32 %v5093_v37, %v5093_v37 }
 0x364   : > { %v5209_v38 = vpop.f32.mrf.mxu1  ;;  %v5211_v19 = vpop.f32.mrf.mxu0 }
 0x366   : > { %v5213_v5 = vpop.f32.mrf.mxu1  ;;  %v5215_v34 = vpop.f32.mrf.mxu0 }
 0x367   : > { %6212 = vst [vmem:[#allocation32_spill] sm:$0xff] %v5213_v5  ;;  %6213 = vst [vmem:[#allocation33_spill] sm:$0xff] %v5215_v34  ;;  %v2142_v34 = vmul.f32 %v5097_v39, %v5097_v39 }
 0x368   : > { %v1884_v13 = vpop.f32.mrf.mxu1  ;;  %v5217_v4 = vpop.f32.mrf.mxu0 }
 0x369   : > { %6214 = vst [vmem:[#allocation34_spill] sm:$0xff] %v5217_v4  ;;  %v2172_v59 = vmul.f32 %v1884_v13, %v1884_v13  ;;  %v2143_v13 = vmul.f32 %v5101_v43, %v5101_v43 }
 0x36a   : > { %v1886_v7 = vpop.f32.mrf.mxu1  ;;  %v5221_v12 = vpop.f32.mrf.mxu0 }
 0x36b   : > { %6215 = vst [vmem:[#allocation35_spill] sm:$0xff] %v5221_v12  ;;  %v5225_v15 = vadd.f32 %v2172_v59, %v2140_v55  ;;  %v2173_v26 = vmul.f32 %v1886_v7, %v1886_v7  ;;  %v2144_v55 = vmul.f32 %v5105_v44, %v5105_v44 }
 0x36c   : > { %v1890_v60 = vpop.f32.mrf.mxu1  ;;  %v5231_v35 = vpop.f32.mrf.mxu0 }
 0x36d   : > { %v5229_v27 = vadd.f32 %v2173_v26, %v2141_v18  ;;  %v2174_v33 = vmul.f32 %v1890_v60, %v1890_v60  ;;  %v2145_v26 = vmul.f32 %v5109_v41, %v5109_v41 }
 0x36e   : > { %v1892_v36 = vpop.f32.mrf.mxu1  ;;  %v5241_v39 = vpop.f32.mrf.mxu0 }
 0x36f   : > { %6216 = vst [vmem:[#allocation36_spill] sm:$0xff] %v5229_v27  ;;  %v5235_v12 = vadd.f32 %v2174_v33, %v2142_v34  ;;  %v2175_v6 = vmul.f32 %v1892_v36, %v1892_v36  ;;  %6218 = vst [vmem:[#allocation38_spill] sm:$0xff] %v5241_v39  ;;  %v2146_v33 = vmul.f32 %v5113_v16, %v5113_v16 }
 0x370   : > { %v1896_v37 = vpop.f32.mrf.mxu1  ;;  %v5251_v44 = vpop.f32.mrf.mxu0  ;;  %v2149_v16 = vmul.f32 %v5125_v49, %v5125_v49 }
 0x371   : > { %v5239_v59 = vadd.f32 %v2175_v6, %v2143_v13  ;;  %v2176_v7 = vmul.f32 %v1896_v37, %v1896_v37  ;;  %v2147_v13 = vmul.f32 %v5117_v20, %v5117_v20 }
 0x372   : > { %v1898_v18 = vpop.f32.mrf.mxu1 }
 0x373   : > { %6217 = vst [vmem:[#allocation37_spill] sm:$0xff] %v5239_v59  ;;  %v5245_v60 = vadd.f32 %v2176_v7, %v2144_v55  ;;  %v2177_v27 = vmul.f32 %v1898_v18, %v1898_v18  ;;  %v5261_v7 = vpop.f32.mrf.mxu0  ;;  %v2153_v59 = vmul.f32 %v5141_v54, %v5141_v54  ;;  %v2157_v54 = vmul.f32 %v5157_v2, %v5157_v2 }
 0x374   : > { %v1902_v43 = vpop.f32.mrf.mxu1  ;;  %6221 = vst [vmem:[#allocation41_spill] sm:$0xff] %v5261_v7  ;;  %v2161_v2 = vmul.f32 %v5173_v14, %v5173_v14  ;;  %v2165_v14 = vmul.f32 %v5189_v11, %v5189_v11 }
 0x375   : > { %v5249_v34 = vadd.f32 %v2177_v27, %v2145_v26  ;;  %v2178_v36 = vmul.f32 %v1902_v43, %v1902_v43  ;;  %v6222_v26 = vmov 0.0  }
 0x376   : > { %v1904_v6 = vpop.f32.mrf.mxu1  ;;  %4095 = vmatprep.mubr.msk.f32.mxu1 %vm4534_vm1, %v6222_v26  ;;  %4130 = vmatprep.mubr.msk.f32.mxu0 %vm4534_vm1, %v6222_v26 }
 0x377   : > { %6219 = vst [vmem:[#allocation39_spill] sm:$0xff] %v5249_v34  ;;  %v5255_v37 = vadd.f32 %v2178_v36, %v2146_v33  ;;  %v2179_v39 = vmul.f32 %v1904_v6, %v1904_v6  ;;  %v2151_v36 = vmul.f32 %v5133_v52, %v5133_v52  ;;  %v2155_v52 = vmul.f32 %v5149_v57, %v5149_v57 }
 0x378   : > { %v5257_v41 = vpop.f32.mrf.mxu1  ;;  %v2159_v57 = vmul.f32 %v5165_v10, %v5165_v10  ;;  %v2163_v10 = vmul.f32 %v5181_v21, %v5181_v21 }
 0x379   : > { %v5259_v55 = vadd.f32 %v2179_v39, %v2147_v13  ;;  %v5273_v39 = vpop.f32.mrf.mxu0 }
 0x37a   : > { %v1910_v18 = vpop.f32.mrf.mxu1 }
 0x37b   : > { %6220 = vst [vmem:[#allocation40_spill] sm:$0xff] %v5259_v55  ;;  %v2181_v27 = vmul.f32 %v1910_v18, %v1910_v18  ;;  %v5281_v18 = vpop.f32.mrf.mxu0 }
 0x37c   : > { %v5269_v20 = vpop.f32.mrf.mxu1  ;;  %6225 = vst [vmem:[#allocation44_spill] sm:$0xff] %v5281_v18 }
 0x37d   : > { %v5271_v43 = vadd.f32 %v2181_v27, %v2149_v16  ;;  %v5289_v55 = vpop.f32.mrf.mxu0 }
 0x37e   : > { %v1916_v33 = vpop.f32.mrf.mxu1 }
 0x37f   : > { %6223 = vst [vmem:[#allocation42_spill] sm:$0xff] %v5271_v43  ;;  %v2183_v6 = vmul.f32 %v1916_v33, %v1916_v33  ;;  %v5295_v18 = vpop.f32.mrf.mxu0 }
 0x380   : > { %v5277_v49 = vpop.f32.mrf.mxu1  ;;  %6228 = vst [vmem:[#allocation47_spill] sm:$0xff] %v5295_v18 }
 0x381   : > { %v5279_v13 = vadd.f32 %v2183_v6, %v2151_v36 }
 0x382   : > { %v1922_v7 = vpop.f32.mrf.mxu1 }
 0x383   : > { %6224 = vst [vmem:[#allocation43_spill] sm:$0xff] %v5279_v13  ;;  %v2185_v34 = vmul.f32 %v1922_v7, %v1922_v7 }
 0x384   : > { %v5285_v16 = vpop.f32.mrf.mxu1 }
 0x385   : > { %v5287_v27 = vadd.f32 %v2185_v34, %v2153_v59  ;;  %v5301_v34 = vpop.f32.mrf.mxu0 }
 0x386   : > { %v1928_v43 = vpop.f32.mrf.mxu1 }
 0x387   : > { %6226 = vst [vmem:[#allocation45_spill] sm:$0xff] %v5287_v27  ;;  %v2187_v33 = vmul.f32 %v1928_v43, %v1928_v43 }
 0x388   : > { %v1932_v36 = vpop.f32.mrf.mxu1 }
 0x389   : > { %v5293_v6 = vadd.f32 %v2187_v33, %v2155_v52  ;;  %v5307_v33 = vpop.f32.mrf.mxu0 }
 0x38a   : > { %v1934_v13 = vpop.f32.mrf.mxu1  ;;  %6231 = vst [vmem:[#allocation50_spill] sm:$0xff] %v5307_v33 }
 0x38b   : > { %6227 = vst [vmem:[#allocation46_spill] sm:$0xff] %v5293_v6  ;;  %v2189_v7 = vmul.f32 %v1934_v13, %v1934_v13 }
 0x38c   : > { %v1938_v5 = vpop.f32.mrf.mxu1 }
 0x38d   : > { %v5299_v59 = vadd.f32 %v2189_v7, %v2157_v54  ;;  %v5313_v7 = vpop.f32.mrf.mxu0 }
 0x38e   : > { %v1940_v27 = vpop.f32.mrf.mxu1 }
 0x38f   : > { %6229 = vst [vmem:[#allocation48_spill] sm:$0xff] %v5299_v59  ;;  %v2191_v43 = vmul.f32 %v1940_v27, %v1940_v27 }
 0x390   : > { %v1944_v24 = vpop.f32.mrf.mxu1 }
 0x391   : > { %v5305_v52 = vadd.f32 %v2191_v43, %v2159_v57  ;;  %v5319_v43 = vpop.f32.mrf.mxu0  ;;  %v2192_v21 = vmul.f32 %v1944_v24, %v1944_v24 }
 0x392   : > { %v1946_v18 = vpop.f32.mrf.mxu1  ;;  %6234 = vst [vmem:[#allocation53_spill] sm:$0xff] %v5319_v43 }
 0x393   : > { %6230 = vst [vmem:[#allocation49_spill] sm:$0xff] %v5305_v52  ;;  %v2193_v13 = vmul.f32 %v1946_v18, %v1946_v18  ;;  %v5327_v40 = vpop.f32.mrf.mxu0 }
 0x394   : > { %v1950_v6 = vpop.f32.mrf.mxu1 }
 0x395   : > { %v5311_v54 = vadd.f32 %v2193_v13, %v2161_v2  ;;  %v2164_v13 = vmul.f32 %v5185_v28, %v5185_v28  ;;  %v2166_v28 = vmul.f32 %v5193_v29, %v5193_v29 }
 0x396   : > { %v1952_v59 = vpop.f32.mrf.mxu1 }
 0x397   : > { %6232 = vst [vmem:[#allocation51_spill] sm:$0xff] %v5311_v54  ;;  %v2195_v27 = vmul.f32 %v1952_v59, %v1952_v59 }
 0x398   : > { %v1956_v4 = vpop.f32.mrf.mxu1 }
 0x399   : > { %v5317_v57 = vadd.f32 %v2195_v27, %v2163_v10  ;;  %v2196_v18 = vmul.f32 %v1956_v4, %v1956_v4  ;;  %v2167_v10 = vmul.f32 %v5197_v61, %v5197_v61  ;;  %v2160_v4 = vmul.f32 %v5169_v47, %v5169_v47 }
 0x39a   : > { %v1958_v33 = vpop.f32.mrf.mxu1  ;;  %v2169_v61 = vmul.f32 %v5205_v0, %v5205_v0 }
 0x39b   : > { %6233 = vst [vmem:[#allocation52_spill] sm:$0xff] %v5317_v57  ;;  %v2197_v52 = vmul.f32 %v1958_v33, %v1958_v33  ;;  %v5331_v27 = vadd.f32 %v2196_v18, %v2164_v13  ;;  %v2188_v18 = vmul.f32 %v1932_v36, %v1932_v36  ;;  %v2194_v13 = vmul.f32 %v1950_v6, %v1950_v6 }
 0x39c   : > { %v1962_v2 = vpop.f32.mrf.mxu1  ;;  %v2170_v36 = vmul.f32 %v5209_v38, %v5209_v38  ;;  %v2152_v38 = vmul.f32 %v5137_v53, %v5137_v53  ;;  %v2148_v53 = vmul.f32 %v5121_v42, %v5121_v42  ;;  %v2150_v42 = vmul.f32 %v5129_v22, %v5129_v22 }
 0x39d   : > { %v5325_v54 = vadd.f32 %v2197_v52, %v2165_v14  ;;  %v2198_v43 = vmul.f32 %v1962_v2, %v1962_v2  ;;  %v2168_v52 = vmul.f32 %v5201_v31, %v5201_v31  ;;  %v5343_v14 = vpop.f32.mrf.mxu0  ;;  %v5345_v2 = vadd.f32 %v2192_v21, %v2160_v4 }
 0x39e   : > { %v1964_v59 = vpop.f32.mrf.mxu1  ;;  %4311 = vrsqrt.f32 %v5331_v27  ;;  %v2156_v31 = vmul.f32 %v5153_v62, %v5153_v62  ;;  %v2190_v62 = vmul.f32 %v1938_v5, %v1938_v5  ;;  %vm2406_vm4 = vcmp.eq.f32.partialorder %v5331_v27, inf }
 0x39f   : > { %6235 = vst [vmem:[#allocation54_spill] sm:$0xff] %v5325_v54  ;;  %v2199_v57 = vmul.f32 %v1964_v59, %v1964_v59  ;;  %v5348_v59 = vadd.f32 %v2198_v43, %v2166_v28  ;;  %v2184_v43 = vmul.f32 %v5277_v49, %v5277_v49  ;;  %v5362_v4 = vpop.f32.mrf.mxu0  ;;  %v2180_v49 = vmul.f32 %v5257_v41, %v5257_v41 }
 0x3a0   : > { %v1968_v11 = vpop.f32.mrf.mxu1  ;;  %vm2408_vm7 = vcmp.eq.f32.partialorder %v5331_v27, 0.0  ;;  %vm2378_vm9 = vcmp.eq.f32.partialorder %v5345_v2, inf  ;;  %vm2380_vm11 = vcmp.eq.f32.partialorder %v5345_v2, 0.0 }
 0x3a1   : > { %v5339_v33 = vadd.f32 %v2199_v57, %v2167_v10  ;;  %v2200_v24 = vmul.f32 %v1968_v11, %v1968_v11  ;;  %v2162_v57 = vmul.f32 %v5177_v51, %v5177_v51  ;;  %v5360_v10 = vadd.f32 %v2188_v18, %v2156_v31  ;;  %v5377_v5 = vpop.f32.mrf.mxu0 }
 0x3a2   : > { %v1970_v47 = vpop.f32.mrf.mxu1  ;;  %v5374_v28 = vadd.f32 %v2184_v43, %v2152_v38  ;;  %v5388_v41 = vadd.f32 %v2180_v49, %v2148_v53  ;;  %vm2420_vm10 = vcmp.eq.f32.partialorder %v5348_v59, inf  ;;  %vm2422_vm12 = vcmp.eq.f32.partialorder %v5348_v59, 0.0 }
 0x3a3   : > { %v2232_v29 = vadd.f32 %v2200_v24, %v2168_v52  ;;  %v2201_v54 = vmul.f32 %v1970_v47, %v1970_v47  ;;  %v5365_v11 = vadd.f32 %v2194_v13, %v2162_v57  ;;  %v2186_v52 = vmul.f32 %v5285_v16, %v5285_v16  ;;  %v5393_v18 = vpop.f32.mrf.mxu0 }
 0x3a4   : > { %v1974_v0 = vpop.f32.mrf.mxu1  ;;  %vm2350_vm13 = vcmp.eq.f32.partialorder %v5360_v10, inf  ;;  %vm2352_vm15 = vcmp.eq.f32.partialorder %v5360_v10, 0.0 }
 0x3a5   : > { %4313 = vrsqrt.f32 %v2232_v29  ;;  %v5356_v21 = vadd.f32 %v2201_v54, %v2169_v61  ;;  %v2202_v6 = vmul.f32 %v1974_v0, %v1974_v0  ;;  %v2158_v54 = vmul.f32 %v5161_v25, %v5161_v25  ;;  %v5403_v31 = vpop.f32.mrf.mxu0 }
 0x3a6   : > { %4315 = vrsqrt.f32 %v5345_v2  ;;  %v2154_v25 = vmul.f32 %v5145_v56, %v5145_v56  ;;  %v2182_v61 = vmul.f32 %v5269_v20, %v5269_v20  ;;  %vm2434_vm2 = vcmp.eq.f32.partialorder %v2232_v29, inf }
 0x3a7   : > { %4317 = vrsqrt.f32 %v5348_v59  ;;  %v2234_v51 = vadd.f32 %v2202_v6, %v2170_v36  ;;  %v5381_v24 = vadd.f32 %v2190_v62, %v2158_v54  ;;  %v2437_v6 = vand.u32 2147483648, %v2232_v29  ;;  %v5409_v62 = vpop.f32.mrf.mxu0 }
 0x3a8   : > { %v5395_v16 = vadd.f32 %v2186_v52, %v2154_v25  ;;  %v5401_v56 = vadd.f32 %v2182_v61, %v2150_v42  ;;  %vm2436_vm3 = vcmp.eq.f32.partialorder %v2232_v29, 0.0  ;;  %v2409_v61 = vand.u32 2147483648, %v5331_v27 }
 0x3a9   : > { %4319 = vrsqrt.f32 %v2234_v51  ;;  %vm2448_vm6 = vcmp.eq.f32.partialorder %v2234_v51, inf  ;;  %vm2450_vm8 = vcmp.eq.f32.partialorder %v2234_v51, 0.0  ;;  %vm2392_vm14 = vcmp.eq.f32.partialorder %v5365_v11, inf }
 0x3aa   : > { %4321 = vrsqrt.f32 %v5360_v10  ;;  %vm2394_vm0 = vcmp.eq.f32.partialorder %v5365_v11, 0.0 }
 0x3ab   : > { %4323 = vrsqrt.f32 %v5365_v11  ;;  %v4312_v13 = vpop.eup %4311 }
 0x3ac   : > { %4325 = vrsqrt.f32 %v5374_v28  ;;  %v2405_v0 = vmul.f32 %v4312_v13, %v5331_v27  ;;  %v2451_v13 = vand.u32 2147483648, %v2234_v51 }
 0x3ad   : > { %4327 = vrsqrt.f32 %v5381_v24 }
 0x3ae   : > { %4329 = vrsqrt.f32 %v5388_v41  ;;  %v2407_v49 = vsel %vm2406_vm4, %v5331_v27, %v2405_v0  ;;  %vm2324_vm4 = vcmp.eq.f32.partialorder %v5374_v28, 0.0 }
 0x3af   : > { %4331 = vrsqrt.f32 %v5395_v16 }
 0x3b0   : > { %4333 = vrsqrt.f32 %v5245_v60 }
 0x3b1   : > { %4335 = vrsqrt.f32 %v5401_v56 }
 0x3b2   : > { %v4314_v47 = vpop.eup %4313  ;;  %4337 = vrsqrt.f32 %v5225_v15 }
 0x3b3   : > { %v4316_v20 = vpop.eup %4315  ;;  %v2433_v57 = vmul.f32 %v4314_v47, %v2232_v29  ;;  %v5420_v47 = vpop.f32.mrf.mxu0  ;;  %4339 = vrsqrt.f32 %v5255_v37 }
 0x3b4   : > { %v4318_v36 = vpop.eup %4317  ;;  %v2377_v53 = vmul.f32 %v4316_v20, %v5345_v2  ;;  %4341 = vrsqrt.f32 %v5235_v12 }
 0x3b5   : > { %v2435_v43 = vsel %vm2434_vm2, %v2232_v29, %v2433_v57  ;;  %v2419_v29 = vmul.f32 %v4318_v36, %v5348_v59  ;;  %v5422_v57 = vsel %vm2408_vm7, %v2409_v61, %v2407_v49  ;;  %v5440_v49 = vpop.f32.mrf.mxu0  ;;  %vm2322_vm2 = vcmp.eq.f32.partialorder %v5374_v28, inf }
 0x3b6   : > { %v4320_v22 = vpop.eup %4319  ;;  %v2438_v38 = vsel %vm2436_vm3, %v2437_v6, %v2435_v43  ;;  %v2379_v27 = vsel %vm2378_vm9, %v5345_v2, %v2377_v53  ;;  %vm2364_vm3 = vcmp.eq.f32.partialorder %v5381_v24, inf  ;;  %vm2294_vm7 = vcmp.eq.f32.partialorder %v5388_v41, inf }
 0x3b7   : > { %v4322_v54 = vpop.eup %4321  ;;  %2702 = vrot.lane.b32.xlu1 %v2438_v38, %s4535_s23  ;;  %v2447_v52 = vmul.f32 %v4320_v22, %v2234_v51  ;;  %v2381_v22 = vand.u32 2147483648, %v5345_v2  ;;  %vm2296_vm9 = vcmp.eq.f32.partialorder %v5388_v41, 0.0 }
 0x3b8   : > { %v4324_v25 = vpop.eup %4323  ;;  %v2349_v0 = vmul.f32 %v4322_v54, %v5360_v10  ;;  %v2423_v54 = vand.u32 2147483648, %v5348_v59 }
 0x3b9   : > { %v2449_v42 = vsel %vm2448_vm6, %v2234_v51, %v2447_v52  ;;  %v4326_v36 = vpop.eup %4325  ;;  %v2421_v51 = vsel %vm2420_vm10, %v5348_v59, %v2419_v29  ;;  %v2391_v6 = vmul.f32 %v4324_v25, %v5365_v11  ;;  %v5442_v52 = vsel %vm2380_vm11, %v2381_v22, %v2379_v27 }
 0x3ba   : > { %v2452_v20 = vsel %vm2450_vm8, %v2451_v13, %v2449_v42  ;;  %v4328_v43 = vpop.eup %4327  ;;  %v2424_v53 = vsel %vm2422_vm12, %v2423_v54, %v2421_v51  ;;  %v2321_v29 = vmul.f32 %v4326_v36, %v5374_v28  ;;  %v2351_v2 = vsel %vm2350_vm13, %v5360_v10, %v2349_v0  ;;  %v5460_v36 = vpop.f32.mrf.mxu0 }
 0x3bb   : > { %2698 = vrot.lane.b32.xlu1 %v5422_v57, %s4535_s23  ;;  %2704 = vrot.lane.b32.xlu0 %v2452_v20, %s4535_s23  ;;  %v4330_v25 = vpop.eup %4329  ;;  %v2393_v59 = vsel %vm2392_vm14, %v5365_v11, %v2391_v6  ;;  %v2363_v61 = vmul.f32 %v4328_v43, %v5381_v24  ;;  %v2353_v42 = vand.u32 2147483648, %v5360_v10  ;;  %v2325_v22 = vand.u32 2147483648, %v5374_v28 }
 0x3bc   : > { %4064 = vmatpush3.xpose.msk.msra.mxu1 %vm2469_vm5, %v2452_v20  ;;  %v4332_v13 = vpop.eup %4331  ;;  %v2395_v20 = vand.u32 2147483648, %v5365_v11  ;;  %v2323_v10 = vsel %vm2322_vm2, %v5374_v28, %v2321_v29  ;;  %v2367_v54 = vand.u32 2147483648, %v5381_v24  ;;  %vm2366_vm6 = vcmp.eq.f32.partialorder %v5381_v24, 0.0  ;;  %v5479_v29 = vpop.f32.mrf.mxu0 }
 0x3bd   : > { %4065 = vmatprep.subr.mxu1 %v6222_v26  ;;  %v4334_v0 = vpop.eup %4333  ;;  %v5462_v27 = vsel %vm2352_vm15, %v2353_v42, %v2351_v2  ;;  %v2365_v11 = vsel %vm2364_vm3, %v5381_v24, %v2363_v61  ;;  %v2335_v43 = vmul.f32 %v4332_v13, %v5395_v16  ;;  %vm2336_vm8 = vcmp.eq.f32.partialorder %v5395_v16, inf }
 0x3be   : > { %v2396_v51 = vsel %vm2394_vm0, %v2395_v20, %v2393_v59  ;;  %v4336_v6 = vpop.eup %4335  ;;  %v2368_v59 = vsel %vm2366_vm6, %v2367_v54, %v2365_v11  ;;  %v2297_v42 = vand.u32 2147483648, %v5388_v41  ;;  %v2339_v20 = vand.u32 2147483648, %v5395_v16 }
 0x3bf   : > { %2694 = vrot.lane.b32.xlu1 %v5442_v52, %s4535_s23  ;;  %2700 = vrot.lane.b32.xlu0 %v2424_v53, %s4535_s23  ;;  %v4338_v2 = vpop.eup %4337  ;;  %v2337_v24 = vsel %vm2336_vm8, %v5395_v16, %v2335_v43  ;;  %v2307_v61 = vmul.f32 %v4336_v6, %v5401_v56  ;;  %vm2338_vm10 = vcmp.eq.f32.partialorder %v5395_v16, 0.0  ;;  %vm2266_vm11 = vcmp.eq.f32.partialorder %v5245_v60, inf }
 0x3c0   : > { %4066 = vmatpush3.xpose.msk.msra.mxu1 %vm2469_vm5, %v2438_v38  ;;  %v2293_v38 = vmul.f32 %v4330_v25, %v5388_v41  ;;  %v5481_v25 = vsel %vm2324_vm4, %v2325_v22, %v2323_v10  ;;  %v4340_v13 = vpop.eup %4339  ;;  %v2340_v6 = vsel %vm2338_vm10, %v2339_v20, %v2337_v24  ;;  %vm2308_vm12 = vcmp.eq.f32.partialorder %v5401_v56, inf }
 0x3c1   : > { %4067 = vmatprep.subr.mxu1 %v6222_v26  ;;  %v2279_v16 = vmul.f32 %v4340_v13, %v5255_v37  ;;  %v4342_v11 = vpop.eup %4341  ;;  %v2269_v43 = vand.u32 2147483648, %v5245_v60  ;;  %v2311_v22 = vand.u32 2147483648, %v5401_v56  ;;  %vm2268_vm13 = vcmp.eq.f32.partialorder %v5245_v60, 0.0 }
 0x3c2   : > { %v2295_v28 = vsel %vm2294_vm7, %v5388_v41, %v2293_v38  ;;  %v2309_v41 = vsel %vm2308_vm12, %v5401_v56, %v2307_v61  ;;  %vm2310_vm14 = vcmp.eq.f32.partialorder %v5401_v56, 0.0  ;;  %vm2238_vm15 = vcmp.eq.f32.partialorder %v5225_v15, inf }
 0x3c3   : > { %2690 = vrot.lane.b32.xlu1 %v5462_v27, %s4535_s23  ;;  %2696 = vrot.lane.b32.xlu0 %v2396_v51, %s4535_s23  ;;  %v2298_v38 = vsel %vm2296_vm9, %v2297_v42, %v2295_v28  ;;  %vm2280_vm0 = vcmp.eq.f32.partialorder %v5255_v37, inf  ;;  %v2251_v24 = vmul.f32 %v4342_v11, %v5235_v12  ;;  %v2283_v56 = vand.u32 2147483648, %v5255_v37 }
 0x3c4   : > { %4068 = vmatpush3.xpose.msk.msra.mxu1 %vm2469_vm5, %v2424_v53  ;;  %v2265_v53 = vmul.f32 %v4334_v0, %v5245_v60  ;;  %v5499_v0 = vpop.f32.mrf.mxu0  ;;  %v2281_v28 = vsel %vm2280_vm0, %v5255_v37, %v2279_v16  ;;  %vm2240_vm2 = vcmp.eq.f32.partialorder %v5225_v15, 0.0  ;;  %vm2282_vm3 = vcmp.eq.f32.partialorder %v5255_v37, 0.0 }
 0x3c5   : > { %4069 = vmatprep.subr.mxu1 %v6222_v26  ;;  %v2284_v42 = vsel %vm2282_vm3, %v2283_v56, %v2281_v28  ;;  %vm2252_vm4 = vcmp.eq.f32.partialorder %v5235_v12, inf  ;;  %v2255_v20 = vand.u32 2147483648, %v5235_v12  ;;  %vm2254_vm6 = vcmp.eq.f32.partialorder %v5235_v12, 0.0  ;;  %v6239_v28 = vld [vmem:[#allocation32_spill] sm:$0xff] }
 0x3c6   : > { %v2267_v10 = vsel %vm2266_vm11, %v5245_v60, %v2265_v53  ;;  %v2123_v54 = vpop.f32.mrf.mxu0  ;;  %v2312_v53 = vsel %vm2310_vm14, %v2311_v22, %v2309_v41  ;;  %v2241_v60 = vand.u32 2147483648, %v5225_v15  ;;  %vm2441_vm9 = vcmp.eq.f32.partialorder %v5356_v21, inf }
 0x3c7   : > { %2686 = vrot.lane.b32.xlu1 %v5481_v25, %s4535_s23  ;;  %2692 = vrot.lane.b32.xlu0 %v2368_v59, %s4535_s23  ;;  %vm2443_vm10 = vcmp.eq.f32.partialorder %v5356_v21, 0.0  ;;  %vm2427_vm11 = vcmp.eq.f32.partialorder %v5339_v33, inf  ;;  %vm2429_vm12 = vcmp.eq.f32.partialorder %v5339_v33, 0.0 }
 0x3c8   : > { %4070 = vmatpush3.xpose.msk.msra.mxu1 %vm2469_vm5, %v5422_v57  ;;  %v2237_v57 = vmul.f32 %v4338_v2, %v5225_v15  ;;  %v2270_v2 = vsel %vm2268_vm13, %v2269_v43, %v2267_v10  ;;  %v5528_v61 = vpop.f32.mrf.mxu0 }
 0x3c9   : > { %4071 = vmatprep.subr.mxu1 %v6222_v26 }
 0x3cb   : > { %2682 = vrot.lane.b32.xlu1 %v2298_v38, %s4535_s23  ;;  %2688 = vrot.lane.b32.xlu0 %v2340_v6, %s4535_s23 }
 0x3cc   : > { %4072 = vmatpush3.xpose.msk.msra.mxu1 %vm2469_vm5, %v2396_v51  ;;  %v2239_v51 = vsel %vm2238_vm15, %v5225_v15, %v2237_v57  ;;  %v2129_v15 = vpop.f32.mrf.mxu0  ;;  %v2460_v57 = vand.u32 2147483647, %v4950_v48  ;;  %v6236_v48 = vld [vmem:[#allocation17_spill] sm:$0xff] }
 0x3cd   : > { %4073 = vmatprep.subr.mxu1 %v6222_v26  ;;  %v2242_v13 = vsel %vm2240_vm2, %v2241_v60, %v2239_v51 }
 0x3ce   : > { %v5543_v10 = vpop.f32.mrf.mxu0 }
 0x3cf   : > { %2678 = vrot.lane.b32.xlu1 %v2270_v2, %s4535_s23  ;;  %2684 = vrot.lane.b32.xlu0 %v2312_v53, %s4535_s23 }
 0x3d0   : > { %4074 = vmatpush3.xpose.msk.msra.mxu1 %vm2469_vm5, %v5442_v52  ;;  %v2253_v52 = vsel %vm2252_vm4, %v5235_v12, %v2251_v24  ;;  %v2135_v12 = vpop.f32.mrf.mxu0  ;;  %v2171_v24 = vmul.f32 %v6239_v28, %v6239_v28 }
 0x3d1   : > { %4075 = vmatprep.subr.mxu1 %v6222_v26  ;;  %v2256_v37 = vsel %vm2254_vm6, %v2255_v20, %v2253_v52  ;;  %v6240_v20 = vld [vmem:[#allocation54_spill] sm:$0xff] }
 0x3d2   : > { %vm2413_vm13 = vcmp.eq.f32.partialorder %v6240_v20, inf  ;;  %vm2415_vm14 = vcmp.eq.f32.partialorder %v6240_v20, 0.0 }
 0x3d3   : > { %2674 = vrot.lane.b32.xlu1 %v2242_v13, %s4535_s23  ;;  %2680 = vrot.lane.b32.xlu0 %v2284_v42, %s4535_s23 }
 0x3d4   : > { %4076 = vmatpush3.xpose.msk.msra.mxu1 %vm2469_vm5, %v2368_v59 }
 0x3d5   : > { %4077 = vmatprep.subr.mxu1 %v6222_v26 }
 0x3d7   : > { %2676 = vrot.lane.b32.xlu0 %v2256_v37, %s4535_s23 }
 0x3d8   : > { %4078 = vmatpush3.xpose.msk.msra.mxu1 %vm2469_vm5, %v5462_v27 }
 0x3d9   : > { %4079 = vmatprep.subr.mxu1 %v6222_v26 }
 0x3db   : > { %2672 = vrot.lane.b32.xlu0 %v2460_v57, %s4535_s23 }
 0x3dc   : > { %4080 = vmatpush3.xpose.msk.msra.mxu1 %vm2469_vm5, %v2340_v6 }
 0x3dd   : > { %4081 = vmatprep.subr.mxu1 %v6222_v26 }
 0x3df   : > { %2915 = vrot.lane.b32.xlu0 %v2135_v12, %s4535_s23 }
 0x3e0   : > { %4082 = vmatpush3.xpose.msk.msra.mxu1 %vm2469_vm5, %v5481_v25 }
 0x3e1   : > { %4083 = vmatprep.subr.mxu1 %v6222_v26 }
 0x3e3   : > { %2913 = vrot.lane.b32.xlu0 %v2129_v15, %s4535_s23 }
 0x3e4   : > { %4084 = vmatpush3.xpose.msk.msra.mxu1 %vm2469_vm5, %v2312_v53 }
 0x3e5   : > { %4085 = vmatprep.subr.mxu1 %v6222_v26 }
 0x3e7   : > { %2881 = vrot.lane.b32.xlu0 %v5203_v32, %s4535_s23 }
 0x3e8   : > { %4086 = vmatpush3.xpose.msk.msra.mxu1 %vm2469_vm5, %v2298_v38 }
 0x3e9   : > { %4087 = vmatprep.subr.mxu1 %v6222_v26 }
 0x3eb   : > { %2911 = vrot.lane.b32.xlu0 %v2123_v54, %s4535_s23 }
 0x3ec   : > { %4088 = vmatpush3.xpose.msk.msra.mxu1 %vm2469_vm5, %v2284_v42 }
 0x3ed   : > { %4089 = vmatprep.subr.mxu1 %v6222_v26 }
 0x3ef   : > { %2879 = vrot.lane.b32.xlu0 %v5195_v30, %s4535_s23 }
 0x3f0   : > { %4090 = vmatpush3.xpose.msk.msra.mxu1 %vm2469_vm5, %v2270_v2  ;;  %v1976_v2 = vpop.f32.mrf.mxu1 }
 0x3f1   : > { %4091 = vmatprep.subr.mxu1 %v6222_v26  ;;  %v2203_v51 = vmul.f32 %v1976_v2, %v1976_v2 }
 0x3f3   : > { %2909 = vrot.lane.b32.xlu0 %v5479_v29, %s4535_s23 }
 0x3f4   : > { %4092 = vmatpush3.xpose.msk.msra.mxu1 %vm2469_vm5, %v2256_v37  ;;  %v6241_v37 = vld [vmem:[#allocation52_spill] sm:$0xff] }
 0x3f5   : > { %4093 = vmatprep.subr.mxu1 %v6222_v26  ;;  %vm2399_vm15 = vcmp.eq.f32.partialorder %v6241_v37, inf  ;;  %vm2401_vm0 = vcmp.eq.f32.partialorder %v6241_v37, 0.0 }
 0x3f8   : > { %4094 = vmatpush3.xpose.msk.msra.mxu1 %vm2469_vm5, %v2242_v13  ;;  %v2235_v13 = vadd.f32 %v2203_v51, %v2171_v24 }
 0x3f9   : > { %3872 = vmatprep.subr.mxu1 %v2135_v12 }
 0x3fa   : > { %4343 = vrsqrt.f32 %v2235_v13  ;;  %vm2455_vm7 = vcmp.eq.f32.partialorder %v2235_v13, inf  ;;  %vm2457_vm8 = vcmp.eq.f32.partialorder %v2235_v13, 0.0 }
 0x3fb   : > { %4096 = vmatmul.mubr.msk.f32.vlgmr.msra.gmra.mxu1 %vm2469_vm5, %v2460_v57  ;;  %4345 = vrsqrt.f32 %v5356_v21 }
 0x3fc   : > { %3873 = vmatpush3.msra.mxu1 %v5211_v19  ;;  %4347 = vrsqrt.f32 %v5339_v33 }
 0x3fd   : > { %3874 = vmatprep.subr.mxu1 %v2129_v15  ;;  %4349 = vrsqrt.f32 %v6240_v20 }
 0x3fe   : > { %3875 = vmatpush3.msra.mxu1 %v5203_v32  ;;  %v6238_v32 = vld [vmem:[#allocation15_spill] sm:$0xff]  ;;  %4351 = vrsqrt.f32 %v6241_v37 }
 0x3ff   : > { %3876 = vmatprep.subr.mxu1 %v2123_v54 }
 0x400   : > { %3877 = vmatpush3.msra.mxu1 %v5195_v30  ;;  %v6237_v30 = vld [vmem:[#allocation34_spill] sm:$0xff] }
 0x401   : > { %3878 = vmatprep.subr.mxu1 %v5479_v29 }
 0x402   : > { %3879 = vmatpush3.msra.mxu1 %v5187_v58 }
 0x403   : > { %3880 = vmatprep.subr.mxu1 %v5440_v49 }
 0x404   : > { %3881 = vmatpush3.msra.mxu1 %v5179_v17 }
 0x405   : > { %3882 = vmatprep.subr.mxu1 %v5409_v62 }
 0x406   : > { %3883 = vmatpush3.msra.mxu1 %v5171_v46 }
 0x407   : > { %3884 = vmatprep.subr.mxu1 %v5393_v18  ;;  %v4344_v15 = vpop.eup %4343 }
 0x408   : > { %3885 = vmatpush3.msra.mxu1 %v5163_v8  ;;  %v2454_v57 = vmul.f32 %v4344_v15, %v2235_v13  ;;  %v4346_v12 = vpop.eup %4345  ;;  %v2416_v15 = vand.u32 2147483648, %v6240_v20 }
 0x409   : > { %3886 = vmatprep.subr.mxu1 %v5362_v4 }
 0x40a   : > { %3887 = vmatpush3.msra.mxu1 %v5155_v63 }
 0x40b   : > { %3888 = vmatprep.subr.mxu1 %v5327_v40 }
 0x40c   : > { %3889 = vmatpush3.msra.mxu1 %v5147_v3 }
 0x40d   : > { %3890 = vmatprep.subr.mxu1 %v5313_v7 }
 0x40e   : > { %3891 = vmatpush3.msra.mxu1 %v5139_v9 }
 0x40f   : > { %3892 = vmatprep.subr.mxu1 %v5301_v34 }
 0x410   : > { %3893 = vmatpush3.msra.mxu1 %v5131_v50 }
 0x411   : > { %3894 = vmatprep.subr.mxu1 %v5289_v55 }
 0x412   : > { %3895 = vmatpush3.msra.mxu1 %v5123_v1 }
 0x413   : > { %3896 = vmatprep.subr.mxu1 %v5273_v39 }
 0x414   : > { %3897 = vmatpush3.msra.mxu1 %v5115_v23 }
 0x415   : > { %3898 = vmatprep.subr.mxu1 %v5251_v44 }
 0x416   : > { %3899 = vmatpush3.msra.mxu1 %v5107_v45 }
 0x417   : > { %3900 = vmatprep.subr.mxu1 %v5231_v35 }
 0x418   : > { %3901 = vmatpush3.msra.mxu1 %v6236_v48 }
 0x419   : > { %3902 = vmatprep.subr.mxu1 %v6237_v30 }
 0x41a   : > { %3903 = vmatpush3.msra.mxu1 %v6238_v32 }
 0x429   : > { %v2703_v29 = vpop.permute.xlu1 %2702 }
 0x42d   : > { %v2705_v27 = vpop.permute.xlu0 %2704  ;;  %v2699_v38 = vpop.permute.xlu1 %2698 }
 0x42e   : > { %4099 = vmatpush3.xpose.msk.msra.mxu0 %vm2469_vm5, %v2705_v27 }
 0x42f   : > { %4100 = vmatprep.subr.mxu0 %v6222_v26 }
 0x431   : > { %v2701_v25 = vpop.permute.xlu0 %2700  ;;  %v2695_v16 = vpop.permute.xlu1 %2694 }
 0x432   : > { %4101 = vmatpush3.xpose.msk.msra.mxu0 %vm2469_vm5, %v2703_v29  ;;  %v6242_v29 = vld [vmem:[#allocation51_spill] sm:$0xff] }
 0x433   : > { %4102 = vmatprep.subr.mxu0 %v6222_v26  ;;  %4353 = vrsqrt.f32 %v6242_v29  ;;  %vm2385_vm2 = vcmp.eq.f32.partialorder %v6242_v29, inf  ;;  %vm2387_vm3 = vcmp.eq.f32.partialorder %v6242_v29, 0.0 }
 0x435   : > { %v2697_v59 = vpop.permute.xlu0 %2696  ;;  %v2691_v22 = vpop.permute.xlu1 %2690 }
 0x436   : > { %4103 = vmatpush3.xpose.msk.msra.mxu0 %vm2469_vm5, %v2701_v25  ;;  %v2456_v25 = vsel %vm2455_vm7, %v2235_v13, %v2454_v57  ;;  %v6246_v57 = vld [vmem:[#allocation45_spill] sm:$0xff] }
 0x437   : > { %4104 = vmatprep.subr.mxu0 %v6222_v26 }
 0x439   : > { %v2693_v6 = vpop.permute.xlu0 %2692  ;;  %v2687_v60 = vpop.permute.xlu1 %2686 }
 0x43a   : > { %4105 = vmatpush3.xpose.msk.msra.mxu0 %vm2469_vm5, %v2699_v38  ;;  %v4348_v38 = vpop.eup %4347 }
 0x43b   : > { %4106 = vmatprep.subr.mxu0 %v6222_v26 }
 0x43d   : > { %v2689_v41 = vpop.permute.xlu0 %2688  ;;  %v2683_v42 = vpop.permute.xlu1 %2682 }
 0x43e   : > { %4107 = vmatpush3.xpose.msk.msra.mxu0 %vm2469_vm5, %v2697_v59  ;;  %v2440_v59 = vmul.f32 %v4346_v12, %v5356_v21 }
 0x43f   : > { %4108 = vmatprep.subr.mxu0 %v6222_v26 }
 0x441   : > { %v2685_v11 = vpop.permute.xlu0 %2684  ;;  %v2679_v52 = vpop.permute.xlu1 %2678 }
 0x442   : > { %4109 = vmatpush3.xpose.msk.msra.mxu0 %vm2469_vm5, %v2695_v16  ;;  %v6243_v16 = vld [vmem:[#allocation49_spill] sm:$0xff] }
 0x443   : > { %4110 = vmatprep.subr.mxu0 %v6222_v26  ;;  %4355 = vrsqrt.f32 %v6243_v16  ;;  %vm2371_vm4 = vcmp.eq.f32.partialorder %v6243_v16, inf  ;;  %vm2373_vm6 = vcmp.eq.f32.partialorder %v6243_v16, 0.0 }
 0x445   : > { %v2681_v43 = vpop.permute.xlu0 %2680  ;;  %v2675_v27 = vpop.permute.xlu1 %2674 }
 0x446   : > { %4111 = vmatpush3.xpose.msk.msra.mxu0 %vm2469_vm5, %v2693_v6  ;;  %v2458_v6 = vand.u32 2147483648, %v2235_v13 }
 0x447   : > { %4112 = vmatprep.subr.mxu0 %v6222_v26 }
 0x449   : > { %v2677_v54 = vpop.permute.xlu0 %2676 }
 0x44a   : > { %4113 = vmatpush3.xpose.msk.msra.mxu0 %vm2469_vm5, %v2691_v22  ;;  %v4350_v22 = vpop.eup %4349 }
 0x44b   : > { %4114 = vmatprep.subr.mxu0 %v6222_v26  ;;  %v2412_v28 = vmul.f32 %v4350_v22, %v6240_v20  ;;  %v4352_v24 = vpop.eup %4351  ;;  %v2388_v22 = vand.u32 2147483648, %v6242_v29 }
 0x44d   : > { %v2673_v53 = vpop.permute.xlu0 %2672  ;;  %v2414_v13 = vsel %vm2413_vm13, %v6240_v20, %v2412_v28 }
 0x44e   : > { %4115 = vmatpush3.xpose.msk.msra.mxu0 %vm2469_vm5, %v2689_v41  ;;  %v5642_v41 = vsel %vm2457_vm8, %v2458_v6, %v2456_v25 }
 0x44f   : > { %4116 = vmatprep.subr.mxu0 %v6222_v26 }
 0x451   : > { %v2916_v56 = vpop.permute.xlu0 %2915 }
 0x452   : > { %4117 = vmatpush3.xpose.msk.msra.mxu0 %vm2469_vm5, %v2687_v60  ;;  %3924 = vmatprep.subr.mxu1 %v2916_v56  ;;  %v2430_v60 = vand.u32 2147483648, %v5339_v33  ;;  %v6245_v56 = vld [vmem:[#allocation46_spill] sm:$0xff] }
 0x453   : > { %4118 = vmatprep.subr.mxu0 %v6222_v26 }
 0x456   : > { %4119 = vmatpush3.xpose.msk.msra.mxu0 %vm2469_vm5, %v2685_v11  ;;  %v2442_v11 = vsel %vm2441_vm9, %v5356_v21, %v2440_v59  ;;  %v2402_v59 = vand.u32 2147483648, %v6241_v37  ;;  %vm2343_vm9 = vcmp.eq.f32.partialorder %v6245_v56, inf }
 0x457   : > { %4120 = vmatprep.subr.mxu0 %v6222_v26 }
 0x45a   : > { %4121 = vmatpush3.xpose.msk.msra.mxu0 %vm2469_vm5, %v2683_v42  ;;  %v2398_v42 = vmul.f32 %v4352_v24, %v6241_v37 }
 0x45b   : > { %4122 = vmatprep.subr.mxu0 %v6222_v26 }
 0x45c   : > { %v2400_v12 = vsel %vm2399_vm15, %v6241_v37, %v2398_v42 }
 0x45d   : > { %v5688_v20 = vsel %vm2401_vm0, %v2402_v59, %v2400_v12 }
 0x45e   : > { %4123 = vmatpush3.xpose.msk.msra.mxu0 %vm2469_vm5, %v2681_v43  ;;  %v2426_v43 = vmul.f32 %v4348_v38, %v5339_v33  ;;  %v6247_v38 = vld [vmem:[#allocation43_spill] sm:$0xff] }
 0x45f   : > { %4124 = vmatprep.subr.mxu0 %v6222_v26  ;;  %vm2315_vm13 = vcmp.eq.f32.partialorder %v6247_v38, inf }
 0x460   : > { %v2428_v51 = vsel %vm2427_vm11, %v5339_v33, %v2426_v43  ;;  %v5677_v33 = vsel %vm2415_vm14, %v2416_v15, %v2414_v13  ;;  %v6249_v13 = vld [vmem:[#allocation40_spill] sm:$0xff]  ;;  %vm2329_vm11 = vcmp.eq.f32.partialorder %v6246_v57, inf  ;;  %vm2317_vm14 = vcmp.eq.f32.partialorder %v6247_v38, 0.0 }
 0x462   : > { %4125 = vmatpush3.xpose.msk.msra.mxu0 %vm2469_vm5, %v2679_v52  ;;  %v4354_v52 = vpop.eup %4353 }
 0x463   : > { %4126 = vmatprep.subr.mxu0 %v6222_v26  ;;  %v4356_v25 = vpop.eup %4355 }
 0x466   : > { %4127 = vmatpush3.xpose.msk.msra.mxu0 %vm2469_vm5, %v2677_v54  ;;  %v2444_v54 = vand.u32 2147483648, %v5356_v21  ;;  %v5666_v21 = vsel %vm2429_vm12, %v2430_v60, %v2428_v51  ;;  %v2374_v60 = vand.u32 2147483648, %v6243_v16  ;;  %vm2331_vm12 = vcmp.eq.f32.partialorder %v6246_v57, 0.0 }
 0x467   : > { %4128 = vmatprep.subr.mxu0 %v6222_v26 }
 0x468   : > { %v5655_v2 = vsel %vm2443_vm10, %v2444_v54, %v2442_v11  ;;  %v2370_v11 = vmul.f32 %v4356_v25, %v6243_v16  ;;  %v6248_v54 = vld [vmem:[#allocation42_spill] sm:$0xff]  ;;  %vm2345_vm10 = vcmp.eq.f32.partialorder %v6245_v56, 0.0 }
 0x469   : > { %vm2301_vm15 = vcmp.eq.f32.partialorder %v6248_v54, inf  ;;  %vm2303_vm0 = vcmp.eq.f32.partialorder %v6248_v54, 0.0 }
 0x46a   : > { %4129 = vmatpush3.xpose.msk.msra.mxu0 %vm2469_vm5, %v2675_v27  ;;  %v2384_v27 = vmul.f32 %v4354_v52, %v6242_v29  ;;  %v2372_v51 = vsel %vm2371_vm4, %v6243_v16, %v2370_v11  ;;  %v2346_v11 = vand.u32 2147483648, %v6245_v56 }
 0x46b   : > { %4133 = vmatprep.subr.mxu0 %v6222_v26 }
 0x46c   : > { %v2386_v6 = vsel %vm2385_vm2, %v6242_v29, %v2384_v27  ;;  %v5710_v29 = vsel %vm2373_vm6, %v2374_v60, %v2372_v51  ;;  %v6250_v27 = vld [vmem:[#allocation39_spill] sm:$0xff]  ;;  %v6252_v60 = vld [vmem:[#allocation36_spill] sm:$0xff]  ;;  %vm2287_vm2 = vcmp.eq.f32.partialorder %v6249_v13, inf }
 0x46d   : > { %4131 = vmatmul.mubr.msk.f32.vlgmr.msra.gmra.mxu0 %vm2469_vm5, %v2673_v53  ;;  %v6244_v53 = vld [vmem:[#allocation48_spill] sm:$0xff]  ;;  %v5699_v37 = vsel %vm2387_vm3, %v2388_v22, %v2386_v6  ;;  %vm2289_vm3 = vcmp.eq.f32.partialorder %v6249_v13, 0.0  ;;  %vm2273_vm4 = vcmp.eq.f32.partialorder %v6250_v27, inf  ;;  %vm2275_vm6 = vcmp.eq.f32.partialorder %v6250_v27, 0.0 }
 0x46e   : > { %4134 = vmatpush3.xpose.msk.msra.mxu0 %vm2469_vm5, %v5642_v41  ;;  %4165 = vmatprep.mubr.msk.f32.mxu0 %vm4534_vm1, %v6222_v26  ;;  %4357 = vrsqrt.f32 %v6244_v53  ;;  %vm2357_vm7 = vcmp.eq.f32.partialorder %v6244_v53, inf  ;;  %v2360_v12 = vand.u32 2147483648, %v6244_v53  ;;  %vm2359_vm8 = vcmp.eq.f32.partialorder %v6244_v53, 0.0 }
 0x46f   : > { %4135 = vmatprep.subr.mxu0 %v6222_v26  ;;  %4359 = vrsqrt.f32 %v6245_v56 }
 0x470   : > { %4361 = vrsqrt.f32 %v6246_v57 }
 0x471   : > { %4363 = vrsqrt.f32 %v6247_v38 }
 0x472   : > { %4136 = vmatpush3.xpose.msk.msra.mxu0 %vm2469_vm5, %v5655_v2  ;;  %4365 = vrsqrt.f32 %v6248_v54 }
 0x473   : > { %4137 = vmatprep.subr.mxu0 %v6222_v26  ;;  %4367 = vrsqrt.f32 %v6249_v13 }
 0x474   : > { %4369 = vrsqrt.f32 %v6250_v27 }
 0x476   : > { %4138 = vmatpush3.xpose.msk.msra.mxu0 %vm2469_vm5, %v5666_v21 }
 0x477   : > { %4139 = vmatprep.subr.mxu0 %v6222_v26 }
 0x47a   : > { %4140 = vmatpush3.xpose.msk.msra.mxu0 %vm2469_vm5, %v5677_v33 }
 0x47b   : > { %4141 = vmatprep.subr.mxu0 %v6222_v26  ;;  %v4358_v43 = vpop.eup %4357 }
 0x47c   : > { %v2356_v28 = vmul.f32 %v4358_v43, %v6244_v53  ;;  %v4360_v24 = vpop.eup %4359  ;;  %v6251_v43 = vld [vmem:[#allocation37_spill] sm:$0xff] }
 0x47d   : > { %v2342_v52 = vmul.f32 %v4360_v24, %v6245_v56  ;;  %v4362_v15 = vpop.eup %4361  ;;  %4371 = vrsqrt.f32 %v6251_v43  ;;  %v2332_v24 = vand.u32 2147483648, %v6246_v57 }
 0x47e   : > { %4142 = vmatpush3.xpose.msk.msra.mxu0 %vm2469_vm5, %v5688_v20  ;;  %v2358_v42 = vsel %vm2357_vm7, %v6244_v53, %v2356_v28  ;;  %v2328_v59 = vmul.f32 %v4362_v15, %v6246_v57  ;;  %v4364_v6 = vpop.eup %4363  ;;  %4373 = vrsqrt.f32 %v6252_v60  ;;  %vm2259_vm7 = vcmp.eq.f32.partialorder %v6251_v43, inf }
 0x47f   : > { %4143 = vmatprep.subr.mxu0 %v6222_v26  ;;  %v5721_v16 = vsel %vm2359_vm8, %v2360_v12, %v2358_v42  ;;  %v2344_v25 = vsel %vm2343_vm9, %v6245_v56, %v2342_v52  ;;  %v2314_v51 = vmul.f32 %v4364_v6, %v6247_v38  ;;  %v4366_v28 = vpop.eup %4365  ;;  %v2318_v12 = vand.u32 2147483648, %v6247_v38 }
 0x480   : > { %v5732_v53 = vsel %vm2345_vm10, %v2346_v11, %v2344_v25  ;;  %v2330_v22 = vsel %vm2329_vm11, %v6246_v57, %v2328_v59  ;;  %v2300_v52 = vmul.f32 %v4366_v28, %v6248_v54  ;;  %v4368_v15 = vpop.eup %4367  ;;  %v2304_v11 = vand.u32 2147483648, %v6248_v54 }
 0x481   : > { %v5743_v56 = vsel %vm2331_vm12, %v2332_v24, %v2330_v22  ;;  %v2316_v42 = vsel %vm2315_vm13, %v6247_v38, %v2314_v51  ;;  %v2286_v59 = vmul.f32 %v4368_v15, %v6249_v13  ;;  %v4370_v6 = vpop.eup %4369  ;;  %v2290_v24 = vand.u32 2147483648, %v6249_v13 }
 0x482   : > { %4144 = vmatpush3.xpose.msk.msra.mxu0 %vm2469_vm5, %v5699_v37  ;;  %v5754_v57 = vsel %vm2317_vm14, %v2318_v12, %v2316_v42  ;;  %v2302_v25 = vsel %vm2301_vm15, %v6248_v54, %v2300_v52  ;;  %v2272_v51 = vmul.f32 %v4370_v6, %v6250_v27  ;;  %v2276_v12 = vand.u32 2147483648, %v6250_v27 }
 0x483   : > { %4145 = vmatprep.subr.mxu0 %v6222_v26  ;;  %v5764_v22 = vsel %vm2303_vm0, %v2304_v11, %v2302_v25  ;;  %v2288_v38 = vsel %vm2287_vm2, %v6249_v13, %v2286_v59  ;;  %v2262_v6 = vand.u32 2147483648, %v6251_v43  ;;  %vm2261_vm8 = vcmp.eq.f32.partialorder %v6251_v43, 0.0 }
 0x484   : > { %v5774_v42 = vsel %vm2289_vm3, %v2290_v24, %v2288_v38  ;;  %v2274_v54 = vsel %vm2273_vm4, %v6250_v27, %v2272_v51  ;;  %vm2245_vm9 = vcmp.eq.f32.partialorder %v6252_v60, inf  ;;  %v2248_v38 = vand.u32 2147483648, %v6252_v60  ;;  %v5814_v24 = vld [vmem:[%s6122_s6] ss:$0 sm:$0xff] }
 0x485   : > { %v5784_v25 = vsel %vm2275_vm6, %v2276_v12, %v2274_v54  ;;  %vm2247_vm10 = vcmp.eq.f32.partialorder %v6252_v60, 0.0 }
 0x486   : > { %4146 = vmatpush3.xpose.msk.msra.mxu0 %vm2469_vm5, %v5710_v29 }
 0x487   : > { %4147 = vmatprep.subr.mxu0 %v6222_v26 }
 0x48a   : > { %4148 = vmatpush3.xpose.msk.msra.mxu0 %vm2469_vm5, %v5721_v16  ;;  %v4372_v28 = vpop.eup %4371 }
 0x48b   : > { %4149 = vmatprep.subr.mxu0 %v6222_v26  ;;  %v2258_v52 = vmul.f32 %v4372_v28, %v6251_v43  ;;  %v4374_v15 = vpop.eup %4373 }
 0x48c   : > { %v2244_v59 = vmul.f32 %v4374_v15, %v6252_v60  ;;  %v5819_v15 = vpop.f32.mrf.mxu0 }
 0x48d   : > { %v2260_v13 = vsel %vm2259_vm7, %v6251_v43, %v2258_v52  ;;  %v6253_v43 = vld [vmem:[#allocation14_spill] sm:$0xff] }
 0x48e   : > { %4150 = vmatpush3.xpose.msk.msra.mxu0 %vm2469_vm5, %v5732_v53  ;;  %v5794_v11 = vsel %vm2261_vm8, %v2262_v6, %v2260_v13  ;;  %v2246_v27 = vsel %vm2245_vm9, %v6252_v60, %v2244_v59  ;;  %v2461_v28 = vand.u32 2147483647, %v6253_v43  ;;  %v6256_v43 = vld [vmem:[#allocation30_spill] sm:$0xff] }
 0x48f   : > { %4151 = vmatprep.subr.mxu0 %v6222_v26  ;;  %v5803_v51 = vsel %vm2247_vm10, %v2248_v38, %v2246_v27 }
 0x492   : > { %4152 = vmatpush3.xpose.msk.msra.mxu0 %vm2469_vm5, %v5743_v56 }
 0x493   : > { %4153 = vmatprep.subr.mxu0 %v6222_v26 }
 0x496   : > { %4154 = vmatpush3.xpose.msk.msra.mxu0 %vm2469_vm5, %v5754_v57 }
 0x497   : > { %4155 = vmatprep.subr.mxu0 %v6222_v26 }
 0x49a   : > { %4156 = vmatpush3.xpose.msk.msra.mxu0 %vm2469_vm5, %v5764_v22 }
 0x49b   : > { %4157 = vmatprep.subr.mxu0 %v6222_v26 }
 0x49e   : > { %4158 = vmatpush3.xpose.msk.msra.mxu0 %vm2469_vm5, %v5774_v42 }
 0x49f   : > { %4159 = vmatprep.subr.mxu0 %v6222_v26 }
 0x4a2   : > { %4160 = vmatpush3.xpose.msk.msra.mxu0 %vm2469_vm5, %v5784_v25 }
 0x4a3   : > { %4161 = vmatprep.subr.mxu0 %v6222_v26 }
 0x4a6   : > { %4162 = vmatpush3.xpose.msk.msra.mxu0 %vm2469_vm5, %v5794_v11 }
 0x4a7   : > { %4163 = vmatprep.subr.mxu0 %v6222_v26 }
 0x4aa   : > { %4164 = vmatpush3.xpose.msk.msra.mxu0 %vm2469_vm5, %v5803_v51 }
 0x4ad   : > { %4166 = vmatmul.mubr.msk.f32.vlgmr.msra.gmra.mxu0 %vm2469_vm5, %v2461_v28 }
 0x4bb   : > { %v2587_v54 = vpop.f32.mrf.mxu1 }
 0x4bc   : > { %v2588_v52 = vadd.f32 %v5814_v24, %v2587_v54 }
 0x4bd   : > { %v4097_v60 = vpop.f32.mrf.mxu1 }
 0x4be   : > { %2591 = vmax.xlane.f32.xlu1 %v2588_v52 }
 0x4cf   : > { %2883 = vrot.lane.b32.xlu1 %v5211_v19, %s4535_s23 }
 0x52d   : > { %v2806_v12 = vpop.f32.mrf.mxu0 }
 0x52e   : > { %v2807_v13 = vadd.f32 %v5814_v24, %v2806_v12 }
 0x52f   : > { %v4132_v59 = vpop.f32.mrf.mxu0 }
 0x530   : > { %2810 = vmax.xlane.f32.xlu0 %v2807_v13  ;;  %v6257_v59 = vld [vmem:[#allocation29_spill] sm:$0xff] }
 0x546   : > { %2877 = vrot.lane.b32.xlu0 %v5187_v58, %s4535_s23 }
 0x547   : > { %v2592_v6 = vpop.xlane.xlu1 %2591 }
 0x548   : > { %v2593_v27 = vsub.f32 %v2588_v52, %v2592_v6  ;;  %v6258_v6 = vld [vmem:[#allocation28_spill] sm:$0xff] }
 0x54a   : > { %v2594_v38 = vmul.f32 1.442695, %v2593_v27  ;;  %v6259_v27 = vld [vmem:[#allocation27_spill] sm:$0xff] }
 0x54c   : > { %4375 = vpow2.f32 %v2594_v38  ;;  %v6260_v38 = vld [vmem:[#allocation26_spill] sm:$0xff] }
 0x559   : > { %v4376_v54 = vpop.eup %4375 }
 0x55a   : > { %2596 = vadd.xlane.f32.xlu1 %v4376_v54 }
 0x56b   : > { %2873 = vrot.lane.b32.xlu1 %v5171_v46, %s4535_s23 }
 0x56d   : > { %v3136_v19 = vpop.f32.mrf.mxu0 }
 0x56e   : > { %v5827_v60 = vadd.f32 %v5814_v24, %v3136_v19  ;;  %v6262_v19 = vld [vmem:[#allocation24_spill] sm:$0xff] }
 0x56f   : > { %2899 = vrot.lane.b32.xlu1 %v5327_v40, %s4535_s23  ;;  %v4167_v12 = vpop.f32.mrf.mxu0  ;;  %v2914_v40 = vpop.permute.xlu0 %2913 }
 0x570   : > { %3140 = vmax.xlane.f32.xlu0 %v5827_v60  ;;  %v6264_v12 = vld [vmem:[#allocation22_spill] sm:$0xff] }
 0x573   : > { %2897 = vrot.lane.b32.xlu1 %v5313_v7, %s4535_s23 }
 0x577   : > { %2895 = vrot.lane.b32.xlu1 %v5301_v34, %s4535_s23 }
 0x57b   : > { %2893 = vrot.lane.b32.xlu1 %v5289_v55, %s4535_s23 }
 0x57f   : > { %2891 = vrot.lane.b32.xlu1 %v5273_v39, %s4535_s23  ;;  %v6255_v39 = vld [vmem:[#allocation12_spill] sm:$0xff] }
 0x583   : > { %2889 = vrot.lane.b32.xlu1 %v5251_v44, %s4535_s23  ;;  %v6254_v44 = vld [vmem:[#allocation13_spill] sm:$0xff] }
 0x586   : > { %2907 = vrot.lane.b32.xlu0 %v5440_v49, %s4535_s23 }
 0x587   : > { %2887 = vrot.lane.b32.xlu1 %v5231_v35, %s4535_s23  ;;  %v2882_v35 = vpop.permute.xlu0 %2881 }
 0x58a   : > { %2875 = vrot.lane.b32.xlu0 %v5179_v17, %s4535_s23 }
 0x58b   : > { %v2912_v46 = vpop.permute.xlu0 %2911 }
 0x58e   : > { %2905 = vrot.lane.b32.xlu0 %v5409_v62, %s4535_s23 }
 0x592   : > { %2903 = vrot.lane.b32.xlu0 %v5393_v18, %s4535_s23 }
 0x596   : > { %2871 = vrot.lane.b32.xlu0 %v5163_v8, %s4535_s23  ;;  %v2880_v8 = vpop.permute.xlu0 %2879 }
 0x59a   : > { %2901 = vrot.lane.b32.xlu0 %v5362_v4, %s4535_s23  ;;  %v2910_v17 = vpop.permute.xlu0 %2909 }
 0x59e   : > { %2869 = vrot.lane.b32.xlu0 %v5155_v63, %s4535_s23 }
 0x5a2   : > { %2867 = vrot.lane.b32.xlu0 %v5147_v3, %s4535_s23 }
 0x5a6   : > { %2865 = vrot.lane.b32.xlu0 %v5139_v9, %s4535_s23 }
 0x5aa   : > { %2863 = vrot.lane.b32.xlu0 %v5131_v50, %s4535_s23 }
 0x5ae   : > { %2861 = vrot.lane.b32.xlu0 %v5123_v1, %s4535_s23 }
 0x5b2   : > { %2859 = vrot.lane.b32.xlu0 %v5115_v23, %s4535_s23  ;;  %v2884_v23 = vpop.permute.xlu1 %2883 }
 0x5b6   : > { %2857 = vrot.lane.b32.xlu0 %v5107_v45, %s4535_s23 }
 0x5b9   : > { %v2811_v3 = vpop.xlane.xlu0 %2810 }
 0x5ba   : > { %v2812_v63 = vsub.f32 %v2807_v13, %v2811_v3  ;;  %2855 = vrot.lane.b32.xlu0 %v6236_v48, %s4535_s23  ;;  %v6267_v3 = vld [vmem:[#allocation19_spill] sm:$0xff] }
 0x5bc   : > { %v2813_v9 = vmul.f32 1.442695, %v2812_v63  ;;  %v6268_v63 = vld [vmem:[#allocation18_spill] sm:$0xff] }
 0x5bd   : > { %v2878_v7 = vpop.permute.xlu0 %2877 }
 0x5be   : > { %4377 = vpow2.f32 %v2813_v9  ;;  %2853 = vrot.lane.b32.xlu0 %v6238_v32, %s4535_s23 }
 0x5c2   : > { %3253 = vrot.lane.b32.xlu0 %v5642_v41, %s4535_s23 }
 0x5c6   : > { %3251 = vrot.lane.b32.xlu0 %v5655_v2, %s4535_s23 }
 0x5ca   : > { %3249 = vrot.lane.b32.xlu0 %v5666_v21, %s4535_s23 }
 0x5cb   : > { %v5880_v45 = vpop.eup %4377 }
 0x5cc   : > { %2815 = vadd.xlane.f32.xlu1 %v5880_v45 }
 0x5ce   : > { %3247 = vrot.lane.b32.xlu0 %v5677_v33, %s4535_s23 }
 0x5d2   : > { %3245 = vrot.lane.b32.xlu0 %v5688_v20, %s4535_s23 }
 0x5d6   : > { %3243 = vrot.lane.b32.xlu0 %v5699_v37, %s4535_s23 }
 0x5da   : > { %3241 = vrot.lane.b32.xlu0 %v5710_v29, %s4535_s23 }
 0x5dd   : > { %2885 = vrot.lane.b32.xlu1 %v6237_v30, %s4535_s23 }
 0x5de   : > { %3239 = vrot.lane.b32.xlu0 %v5721_v16, %s4535_s23 }
 0x5e2   : > { %3237 = vrot.lane.b32.xlu0 %v5732_v53, %s4535_s23 }
 0x5e3   : > { %v2597_v1 = vpop.xlane.xlu1 %2596 }
 0x5e4   : > { %4379 = vrcp.f32 %v2597_v1 }
 0x5e6   : > { %3233 = vrot.lane.b32.xlu0 %v5754_v57, %s4535_s23 }
 0x5e7   : > { %v2874_v30 = vpop.permute.xlu1 %2873 }
 0x5ea   : > { %3231 = vrot.lane.b32.xlu0 %v5764_v22, %s4535_s23 }
 0x5eb   : > { %v2900_v2 = vpop.permute.xlu1 %2899 }
 0x5ee   : > { %3229 = vrot.lane.b32.xlu0 %v5774_v42, %s4535_s23 }
 0x5ef   : > { %v2898_v20 = vpop.permute.xlu1 %2897 }
 0x5f1   : > { %v4380_v50 = vpop.eup %4379 }
 0x5f2   : > { %3227 = vrot.lane.b32.xlu0 %v5784_v25, %s4535_s23  ;;  %v2599_v58 = vmul.f32 %v4380_v50, %v4376_v54  ;;  %v6261_v54 = vld [vmem:[#allocation25_spill] sm:$0xff] }
 0x5f3   : > { %v2896_v16 = vpop.permute.xlu1 %2895 }
 0x5f4   : > { %v2601_v55 = vmul.f32 %v2599_v58, %v6254_v44  ;;  %v2600_v34 = vmul.f32 %v2599_v58, %v6255_v39  ;;  %v6269_v58 = vld [vmem:[#allocation33_spill] sm:$0xff] }
 0x5f6   : > { %2666 = vmatprep.mubr.f32.mxu1 %v2601_v55  ;;  %3223 = vrot.lane.b32.xlu0 %v5803_v51, %s4535_s23  ;;  %v6273_v55 = vld [vmem:[#allocation47_spill] sm:$0xff] }
 0x5f7   : > { %2667 = vmatmul.mubr.f32.vlgmr.msra.gmra.mxu1 %v2600_v34  ;;  %v2894_v57 = vpop.permute.xlu1 %2893  ;;  %v6274_v34 = vld [vmem:[#allocation44_spill] sm:$0xff] }
 0x5f8   : > { %3925 = vmatpush3.msra.mxu1 %v2884_v23 }
 0x5f9   : > { %3926 = vmatprep.subr.mxu1 %v2914_v40  ;;  %v3141_v4 = vpop.xlane.xlu0 %3140 }
 0x5fa   : > { %3927 = vmatpush3.msra.mxu1 %v2882_v35  ;;  %v3142_v18 = vsub.f32 %v5827_v60, %v3141_v4  ;;  %v6263_v60 = vld [vmem:[#allocation23_spill] sm:$0xff]  ;;  %v6265_v35 = vld [vmem:[#allocation21_spill] sm:$0xff]  ;;  %v6276_v4 = vld [vmem:[#allocation38_spill] sm:$0xff] }
 0x5fb   : > { %3928 = vmatprep.subr.mxu1 %v2912_v46  ;;  %v2892_v25 = vpop.permute.xlu1 %2891 }
 0x5fc   : > { %v3143_v62 = vmul.f32 1.442695, %v3142_v18  ;;  %3929 = vmatpush3.msra.mxu1 %v2880_v8  ;;  %v6266_v8 = vld [vmem:[#allocation20_spill] sm:$0xff]  ;;  %v6277_v18 = vld [vmem:[#allocation35_spill] sm:$0xff] }
 0x5fd   : > { %3930 = vmatprep.subr.mxu1 %v2910_v17  ;;  %v2908_v49 = vpop.permute.xlu0 %2907 }
 0x5fe   : > { %4381 = vpow2.f32 %v3143_v62  ;;  %3931 = vmatpush3.msra.mxu1 %v2878_v7  ;;  %v6275_v7 = vld [vmem:[#allocation41_spill] sm:$0xff]  ;;  %v6278_v62 = vld [vmem:[#allocation16_spill] sm:$0xff] }
 0x5ff   : > { %3932 = vmatprep.subr.mxu1 %v2908_v49  ;;  %v2890_v52 = vpop.permute.xlu1 %2889 }
 0x601   : > { %v2876_v48 = vpop.permute.xlu0 %2875 }
 0x602   : > { %3933 = vmatpush3.msra.mxu1 %v2876_v48 }
 0x603   : > { %v2888_v13 = vpop.permute.xlu1 %2887 }
 0x605   : > { %v2906_v32 = vpop.permute.xlu0 %2905 }
 0x606   : > { %3934 = vmatprep.subr.mxu1 %v2906_v32 }
 0x607   : > { %3935 = vmatpush3.msra.mxu1 %v2874_v30 }
 0x609   : > { %v2904_v41 = vpop.permute.xlu0 %2903 }
 0x60a   : > { %3936 = vmatprep.subr.mxu1 %v2904_v41 }
 0x60b   : > { %v5910_v21 = vpop.eup %4381 }
 0x60c   : > { %3145 = vadd.xlane.f32.xlu1 %v5910_v21 }
 0x60d   : > { %v2872_v33 = vpop.permute.xlu0 %2871 }
 0x60e   : > { %3937 = vmatpush3.msra.mxu1 %v2872_v33 }
 0x611   : > { %v2902_v37 = vpop.permute.xlu0 %2901 }
 0x612   : > { %3938 = vmatprep.subr.mxu1 %v2902_v37 }
 0x615   : > { %v2870_v29 = vpop.permute.xlu0 %2869 }
 0x616   : > { %3939 = vmatpush3.msra.mxu1 %v2870_v29 }
 0x617   : > { %3940 = vmatprep.subr.mxu1 %v2900_v2 }
 0x619   : > { %v2868_v53 = vpop.permute.xlu0 %2867 }
 0x61a   : > { %3941 = vmatpush3.msra.mxu1 %v2868_v53 }
 0x61b   : > { %3942 = vmatprep.subr.mxu1 %v2898_v20 }
 0x61d   : > { %3235 = vrot.lane.b32.xlu1 %v5743_v56, %s4535_s23  ;;  %v2866_v22 = vpop.permute.xlu0 %2865 }
 0x61e   : > { %3943 = vmatpush3.msra.mxu1 %v2866_v22 }
 0x61f   : > { %3944 = vmatprep.subr.mxu1 %v2896_v16 }
 0x621   : > { %3225 = vrot.lane.b32.xlu1 %v5794_v11, %s4535_s23  ;;  %v2864_v42 = vpop.permute.xlu0 %2863 }
 0x622   : > { %3945 = vmatpush3.msra.mxu1 %v2864_v42 }
 0x623   : > { %3946 = vmatprep.subr.mxu1 %v2894_v57 }
 0x625   : > { %3221 = vrot.lane.b32.xlu1 %v2461_v28, %s4535_s23  ;;  %v2862_v51 = vpop.permute.xlu0 %2861 }
 0x626   : > { %3947 = vmatpush3.msra.mxu1 %v2862_v51 }
 0x627   : > { %3948 = vmatprep.subr.mxu1 %v2892_v25 }
 0x629   : > { %3464 = vrot.lane.b32.xlu1 %v5819_v15, %s4535_s23  ;;  %v2860_v56 = vpop.permute.xlu0 %2859 }
 0x62a   : > { %3949 = vmatpush3.msra.mxu1 %v2860_v56 }
 0x62b   : > { %3950 = vmatprep.subr.mxu1 %v2890_v52 }
 0x62d   : > { %3462 = vrot.lane.b32.xlu1 %v5543_v10, %s4535_s23  ;;  %v2858_v11 = vpop.permute.xlu0 %2857 }
 0x62e   : > { %3951 = vmatpush3.msra.mxu1 %v2858_v11 }
 0x62f   : > { %3952 = vmatprep.subr.mxu1 %v2888_v13 }
 0x631   : > { %3428 = vrot.lane.b32.xlu1 %v6256_v43, %s4535_s23  ;;  %v2856_v28 = vpop.permute.xlu0 %2855 }
 0x632   : > { %3953 = vmatpush3.msra.mxu1 %v2856_v28 }
 0x635   : > { %3426 = vrot.lane.b32.xlu1 %v6257_v59, %s4535_s23  ;;  %v2854_v17 = vpop.permute.xlu0 %2853 }
 0x639   : > { %3424 = vrot.lane.b32.xlu1 %v6258_v6, %s4535_s23  ;;  %v3254_v49 = vpop.permute.xlu0 %3253 }
 0x63d   : > { %3422 = vrot.lane.b32.xlu1 %v6259_v27, %s4535_s23  ;;  %v3252_v32 = vpop.permute.xlu0 %3251 }
 0x641   : > { %3420 = vrot.lane.b32.xlu1 %v6260_v38, %s4535_s23  ;;  %v3250_v2 = vpop.permute.xlu0 %3249 }
 0x645   : > { %3418 = vrot.lane.b32.xlu1 %v6261_v54, %s4535_s23  ;;  %v3248_v57 = vpop.permute.xlu0 %3247 }
 0x649   : > { %3416 = vrot.lane.b32.xlu1 %v6262_v19, %s4535_s23  ;;  %v3246_v22 = vpop.permute.xlu0 %3245 }
 0x64d   : > { %3414 = vrot.lane.b32.xlu1 %v6263_v60, %s4535_s23 }
 0x651   : > { %3412 = vrot.lane.b32.xlu1 %v6264_v12, %s4535_s23 }
 0x655   : > { %v2816_v40 = vpop.xlane.xlu1 %2815  ;;  %3410 = vrot.lane.b32.xlu1 %v6265_v35, %s4535_s23 }
 0x656   : > { %4383 = vrcp.f32 %v2816_v40 }
 0x659   : > { %v2886_v46 = vpop.permute.xlu1 %2885  ;;  %3408 = vrot.lane.b32.xlu1 %v6266_v8, %s4535_s23 }
 0x65a   : > { %3954 = vmatprep.subr.mxu1 %v2886_v46 }
 0x65b   : > { %3955 = vmatpush3.msra.mxu1 %v2854_v17 }
 0x65c   : > { %3976 = vmatprep.subr.mxu1 %v5819_v15  ;;  %v6270_v15 = vld [vmem:[#allocation31_spill] sm:$0xff] }
 0x65d   : > { %3406 = vrot.lane.b32.xlu1 %v6267_v3, %s4535_s23 }
 0x661   : > { %3404 = vrot.lane.b32.xlu1 %v6268_v63, %s4535_s23 }
 0x663   : > { %v4384_v9 = vpop.eup %4383 }
 0x664   : > { %v2818_v23 = vmul.f32 %v4384_v9, %v5880_v45  ;;  %v6272_v45 = vld [vmem:[#allocation50_spill] sm:$0xff] }
 0x666   : > { %v2820_v1 = vmul.f32 %v2818_v23, %v6254_v44  ;;  %v2819_v50 = vmul.f32 %v2818_v23, %v6255_v39 }
 0x668   : > { %3013 = vmatprep.mubr.f32.mxu1 %v2820_v1 }
 0x669   : > { %3014 = vmatmul.mubr.f32.vlgmr.msra.gmra.mxu1 %v2819_v50 }
 0x66a   : > { %3977 = vmatpush3.msra.mxu1 %v6269_v58 }
 0x66b   : > { %3978 = vmatprep.subr.mxu1 %v5543_v10  ;;  %v6271_v10 = vld [vmem:[#allocation53_spill] sm:$0xff] }
 0x66c   : > { %3979 = vmatpush3.msra.mxu1 %v6270_v15 }
 0x66d   : > { %3980 = vmatprep.subr.mxu1 %v5528_v61 }
 0x66e   : > { %3981 = vmatpush3.msra.mxu1 %v6256_v43 }
 0x66f   : > { %3982 = vmatprep.subr.mxu1 %v5499_v0 }
 0x670   : > { %3983 = vmatpush3.msra.mxu1 %v6257_v59 }
 0x671   : > { %3984 = vmatprep.subr.mxu1 %v5460_v36 }
 0x672   : > { %3985 = vmatpush3.msra.mxu1 %v6258_v6 }
 0x673   : > { %3986 = vmatprep.subr.mxu1 %v5420_v47 }
 0x674   : > { %3987 = vmatpush3.msra.mxu1 %v6259_v27 }
 0x675   : > { %3988 = vmatprep.subr.mxu1 %v5403_v31 }
 0x676   : > { %3989 = vmatpush3.msra.mxu1 %v6260_v38 }
 0x677   : > { %3990 = vmatprep.subr.mxu1 %v5377_v5 }
 0x678   : > { %3991 = vmatpush3.msra.mxu1 %v6261_v54 }
 0x679   : > { %3992 = vmatprep.subr.mxu1 %v5343_v14 }
 0x67a   : > { %3993 = vmatpush3.msra.mxu1 %v6262_v19 }
 0x67b   : > { %3994 = vmatprep.subr.mxu1 %v6271_v10 }
 0x67c   : > { %3995 = vmatpush3.msra.mxu1 %v6263_v60 }
 0x67d   : > { %3996 = vmatprep.subr.mxu1 %v6272_v45 }
 0x67e   : > { %3997 = vmatpush3.msra.mxu1 %v6264_v12 }
 0x67f   : > { %3998 = vmatprep.subr.mxu1 %v6273_v55 }
 0x680   : > { %3999 = vmatpush3.msra.mxu1 %v6265_v35 }
 0x681   : > { %4000 = vmatprep.subr.mxu1 %v6274_v34 }
 0x682   : > { %4001 = vmatpush3.msra.mxu1 %v6266_v8 }
 0x683   : > { %4002 = vmatprep.subr.mxu1 %v6275_v7 }
 0x684   : > { %4003 = vmatpush3.msra.mxu1 %v6267_v3 }
 0x685   : > { %4004 = vmatprep.subr.mxu1 %v6276_v4 }
 0x686   : > { %4005 = vmatpush3.msra.mxu1 %v6268_v63 }
 0x687   : > { %4006 = vmatprep.subr.mxu1 %v6277_v18 }
 0x688   : > { %4007 = vmatpush3.msra.mxu1 %v6278_v62 }
 0x689   : > { %4168 = vmatprep.subr.mxu1 %v6222_v26 }
 0x695   : > { %v3146_v48 = vpop.xlane.xlu1 %3145 }
 0x696   : > { %4385 = vrcp.f32 %v3146_v48 }
 0x699   : > { %v3236_v30 = vpop.permute.xlu1 %3235 }
 0x69d   : > { %v3226_v41 = vpop.permute.xlu1 %3225 }
 0x6a1   : > { %v3222_v33 = vpop.permute.xlu1 %3221 }
 0x6a3   : > { %v4386_v20 = vpop.eup %4385 }
 0x6a4   : > { %v3148_v37 = vmul.f32 %v4386_v20, %v5910_v21  ;;  %v3244_v21 = vpop.permute.xlu0 %3243 }
 0x6a5   : > { %v3465_v29 = vpop.permute.xlu1 %3464 }
 0x6a6   : > { %4028 = vmatprep.subr.mxu0 %v3465_v29  ;;  %v3150_v16 = vmul.f32 %v3148_v37, %v6254_v44  ;;  %v3149_v53 = vmul.f32 %v3148_v37, %v6255_v39 }
 0x6a8   : > { %3215 = vmatprep.mubr.f32.mxu1 %v3150_v16  ;;  %v3242_v42 = vpop.permute.xlu0 %3241 }
 0x6a9   : > { %3216 = vmatmul.mubr.f32.vlgmr.msra.gmra.mxu1 %v3149_v53 }
 0x6aa   : > { %4169 = vmatpush3.xpose.msk.msra.mxu1 %vm2469_vm5, %v3254_v49  ;;  %4200 = vmatprep.mubr.msk.f32.mxu1 %vm4534_vm1, %v6222_v26 }
 0x6ab   : > { %4170 = vmatprep.subr.mxu1 %v6222_v26 }
 0x6ac   : > { %v3240_v25 = vpop.permute.xlu0 %3239 }
 0x6ae   : > { %4171 = vmatpush3.xpose.msk.msra.mxu1 %vm2469_vm5, %v3252_v32 }
 0x6af   : > { %4172 = vmatprep.subr.mxu1 %v6222_v26 }
 0x6b0   : > { %v3238_v51 = vpop.permute.xlu0 %3237 }
 0x6b2   : > { %4173 = vmatpush3.xpose.msk.msra.mxu1 %vm2469_vm5, %v3250_v2 }
 0x6b3   : > { %4174 = vmatprep.subr.mxu1 %v6222_v26 }
 0x6b4   : > { %v3234_v52 = vpop.permute.xlu0 %3233 }
 0x6b6   : > { %4175 = vmatpush3.xpose.msk.msra.mxu1 %vm2469_vm5, %v3248_v57 }
 0x6b7   : > { %4176 = vmatprep.subr.mxu1 %v6222_v26  ;;  %v6023_v28 = vpop.f32.mrf.mxu1 }
 0x6b8   : > { %v3232_v56 = vpop.permute.xlu0 %3231 }
 0x6b9   : > { %v6025_v59 = vpop.f32.mrf.mxu1 }
 0x6ba   : > { %4177 = vmatpush3.xpose.msk.msra.mxu1 %vm2469_vm5, %v3246_v22 }
 0x6bb   : > { %4178 = vmatprep.subr.mxu1 %v6222_v26 }
 0x6bc   : > { %v3230_v11 = vpop.permute.xlu0 %3229 }
 0x6be   : > { %4179 = vmatpush3.xpose.msk.msra.mxu1 %vm2469_vm5, %v3244_v21 }
 0x6bf   : > { %4180 = vmatprep.subr.mxu1 %v6222_v26 }
 0x6c0   : > { %v3228_v13 = vpop.permute.xlu0 %3227 }
 0x6c2   : > { %4181 = vmatpush3.xpose.msk.msra.mxu1 %vm2469_vm5, %v3242_v42 }
 0x6c3   : > { %4182 = vmatprep.subr.mxu1 %v6222_v26 }
 0x6c4   : > { %v3224_v43 = vpop.permute.xlu0 %3223 }
 0x6c6   : > { %4183 = vmatpush3.xpose.msk.msra.mxu1 %vm2469_vm5, %v3240_v25 }
 0x6c7   : > { %4184 = vmatprep.subr.mxu1 %v6222_v26 }
 0x6ca   : > { %4185 = vmatpush3.xpose.msk.msra.mxu1 %vm2469_vm5, %v3238_v51 }
 0x6cb   : > { %4186 = vmatprep.subr.mxu1 %v6222_v26 }
 0x6ce   : > { %4187 = vmatpush3.xpose.msk.msra.mxu1 %vm2469_vm5, %v3236_v30 }
 0x6cf   : > { %4188 = vmatprep.subr.mxu1 %v6222_v26 }
 0x6d2   : > { %4189 = vmatpush3.xpose.msk.msra.mxu1 %vm2469_vm5, %v3234_v52 }
 0x6d3   : > { %4190 = vmatprep.subr.mxu1 %v6222_v26 }
 0x6d6   : > { %4191 = vmatpush3.xpose.msk.msra.mxu1 %vm2469_vm5, %v3232_v56 }
 0x6d7   : > { %4192 = vmatprep.subr.mxu1 %v6222_v26 }
 0x6da   : > { %4193 = vmatpush3.xpose.msk.msra.mxu1 %vm2469_vm5, %v3230_v11 }
 0x6db   : > { %4194 = vmatprep.subr.mxu1 %v6222_v26 }
 0x6de   : > { %4195 = vmatpush3.xpose.msk.msra.mxu1 %vm2469_vm5, %v3228_v13 }
 0x6df   : > { %4196 = vmatprep.subr.mxu1 %v6222_v26 }
 0x6e2   : > { %4197 = vmatpush3.xpose.msk.msra.mxu1 %vm2469_vm5, %v3226_v41 }
 0x6e3   : > { %4198 = vmatprep.subr.mxu1 %v6222_v26 }
 0x6e6   : > { %4199 = vmatpush3.xpose.msk.msra.mxu1 %vm2469_vm5, %v3224_v43 }
 0x6e9   : > { %4201 = vmatmul.mubr.msk.f32.vlgmr.msra.gmra.mxu1 %vm2469_vm5, %v3222_v33  ;;  %v3906_v33 = vadd.f32 %v6025_v59, %v6023_v28 }
 0x729   : > { %v3956_v6 = vpop.f32.mrf.mxu1 }
 0x72b   : > { %v3957_v27 = vpop.f32.mrf.mxu1 }
 0x72c   : > { %v3958_v38 = vadd.f32 %v3957_v27, %v3956_v6 }
 0x769   : > { %v4008_v54 = vpop.f32.mrf.mxu1 }
 0x76b   : > { %v4009_v19 = vpop.f32.mrf.mxu1 }
 0x76c   : > { %v6027_v60 = vadd.f32 %v4009_v19, %v4008_v54 }
 0x7a9   : > { %v3355_v12 = vpop.f32.mrf.mxu1 }
 0x7aa   : > { %v3356_v40 = vadd.f32 %v5814_v24, %v3355_v12 }
 0x7ab   : > { %v4202_v26 = vpop.f32.mrf.mxu1 }
 0x7ac   : > { %3359 = vmax.xlane.f32.xlu0 %v3356_v40 }
 0x7c2   : > { %3432 = vrot.lane.b32.xlu0 %v6269_v58, %s4535_s23 }
 0x7c6   : > { %3430 = vrot.lane.b32.xlu0 %v6270_v15, %s4535_s23 }
 0x7ca   : > { %3460 = vrot.lane.b32.xlu0 %v5528_v61, %s4535_s23 }
 0x7ce   : > { %3458 = vrot.lane.b32.xlu0 %v5499_v0, %s4535_s23 }
 0x7d2   : > { %3456 = vrot.lane.b32.xlu0 %v5460_v36, %s4535_s23 }
 0x7d6   : > { %3454 = vrot.lane.b32.xlu0 %v5420_v47, %s4535_s23 }
 0x7da   : > { %3452 = vrot.lane.b32.xlu0 %v5403_v31, %s4535_s23 }
 0x7de   : > { %3450 = vrot.lane.b32.xlu0 %v5377_v5, %s4535_s23 }
 0x7e2   : > { %3448 = vrot.lane.b32.xlu0 %v5343_v14, %s4535_s23  ;;  %v3463_v14 = vpop.permute.xlu1 %3462 }
 0x7e6   : > { %3446 = vrot.lane.b32.xlu0 %v6271_v10, %s4535_s23  ;;  %v3429_v5 = vpop.permute.xlu1 %3428 }
 0x7ea   : > { %3444 = vrot.lane.b32.xlu0 %v6272_v45, %s4535_s23  ;;  %v3427_v31 = vpop.permute.xlu1 %3426 }
 0x7ee   : > { %3442 = vrot.lane.b32.xlu0 %v6273_v55, %s4535_s23  ;;  %v3425_v36 = vpop.permute.xlu1 %3424 }
 0x7f2   : > { %3440 = vrot.lane.b32.xlu0 %v6274_v34, %s4535_s23  ;;  %v3423_v35 = vpop.permute.xlu1 %3422 }
 0x7f6   : > { %3438 = vrot.lane.b32.xlu0 %v6275_v7, %s4535_s23  ;;  %v3421_v17 = vpop.permute.xlu1 %3420 }
 0x7fa   : > { %3436 = vrot.lane.b32.xlu0 %v6276_v4, %s4535_s23  ;;  %v3419_v9 = vpop.permute.xlu1 %3418 }
 0x7fe   : > { %3434 = vrot.lane.b32.xlu0 %v6277_v18, %s4535_s23  ;;  %v3417_v50 = vpop.permute.xlu1 %3416 }
 0x802   : > { %3569 = vrot.lane.b32.xlu0 %v3958_v38, %s4535_s23  ;;  %v3415_v15 = vpop.permute.xlu1 %3414 }
 0x806   : > { %v3413_v55 = vpop.permute.xlu1 %3412 }
 0x80a   : > { %v3411_v7 = vpop.permute.xlu1 %3410 }
 0x80e   : > { %v3409_v49 = vpop.permute.xlu1 %3408 }
 0x835   : > { %v3360_v47 = vpop.xlane.xlu0 %3359 }
 0x836   : > { %v3361_v0 = vsub.f32 %v3356_v40, %v3360_v47 }
 0x838   : > { %v3362_v61 = vmul.f32 1.442695, %v3361_v0 }
 0x839   : > { %v3433_v24 = vpop.permute.xlu0 %3432 }
 0x83a   : > { %4387 = vpow2.f32 %v3362_v61  ;;  %4029 = vmatpush3.msra.mxu0 %v3433_v24 }
 0x83b   : > { %4030 = vmatprep.subr.mxu0 %v3463_v14 }
 0x83d   : > { %v3431_v46 = vpop.permute.xlu0 %3430 }
 0x83e   : > { %4031 = vmatpush3.msra.mxu0 %v3431_v46 }
 0x841   : > { %v3461_v8 = vpop.permute.xlu0 %3460 }
 0x842   : > { %4032 = vmatprep.subr.mxu0 %v3461_v8 }
 0x843   : > { %4033 = vmatpush3.msra.mxu0 %v3429_v5 }
 0x845   : > { %v3459_v3 = vpop.permute.xlu0 %3458 }
 0x846   : > { %4034 = vmatprep.subr.mxu0 %v3459_v3 }
 0x847   : > { %v4388_v63 = vpop.eup %4387  ;;  %4035 = vmatpush3.msra.mxu0 %v3427_v31 }
 0x848   : > { %3364 = vadd.xlane.f32.xlu1 %v4388_v63 }
 0x849   : > { %v3457_v23 = vpop.permute.xlu0 %3456 }
 0x84a   : > { %4036 = vmatprep.subr.mxu0 %v3457_v23 }
 0x84b   : > { %4037 = vmatpush3.msra.mxu0 %v3425_v36 }
 0x84d   : > { %v3455_v1 = vpop.permute.xlu0 %3454 }
 0x84e   : > { %4038 = vmatprep.subr.mxu0 %v3455_v1 }
 0x84f   : > { %4039 = vmatpush3.msra.mxu0 %v3423_v35 }
 0x851   : > { %v3453_v58 = vpop.permute.xlu0 %3452 }
 0x852   : > { %4040 = vmatprep.subr.mxu0 %v3453_v58 }
 0x853   : > { %4041 = vmatpush3.msra.mxu0 %v3421_v17 }
 0x855   : > { %v3451_v10 = vpop.permute.xlu0 %3450 }
 0x856   : > { %4042 = vmatprep.subr.mxu0 %v3451_v10 }
 0x857   : > { %4043 = vmatpush3.msra.mxu0 %v3419_v9 }
 0x859   : > { %3402 = vrot.lane.b32.xlu1 %v6278_v62, %s4535_s23  ;;  %v3449_v45 = vpop.permute.xlu0 %3448  ;;  %v3407_v62 = vpop.permute.xlu1 %3406 }
 0x85a   : > { %4044 = vmatprep.subr.mxu0 %v3449_v45 }
 0x85b   : > { %4045 = vmatpush3.msra.mxu0 %v3417_v50 }
 0x85d   : > { %v3447_v34 = vpop.permute.xlu0 %3446  ;;  %v3405_v41 = vpop.permute.xlu1 %3404 }
 0x85e   : > { %4046 = vmatprep.subr.mxu0 %v3447_v34 }
 0x85f   : > { %4047 = vmatpush3.msra.mxu0 %v3415_v15 }
 0x861   : > { %v3445_v4 = vpop.permute.xlu0 %3444 }
 0x862   : > { %4048 = vmatprep.subr.mxu0 %v3445_v4 }
 0x863   : > { %4049 = vmatpush3.msra.mxu0 %v3413_v55 }
 0x865   : > { %v3443_v18 = vpop.permute.xlu0 %3442 }
 0x866   : > { %4050 = vmatprep.subr.mxu0 %v3443_v18 }
 0x867   : > { %4051 = vmatpush3.msra.mxu0 %v3411_v7 }
 0x869   : > { %v3441_v48 = vpop.permute.xlu0 %3440 }
 0x86a   : > { %4052 = vmatprep.subr.mxu0 %v3441_v48 }
 0x86b   : > { %4053 = vmatpush3.msra.mxu0 %v3409_v49 }
 0x86d   : > { %v3439_v30 = vpop.permute.xlu0 %3438 }
 0x86e   : > { %4054 = vmatprep.subr.mxu0 %v3439_v30 }
 0x86f   : > { %4055 = vmatpush3.msra.mxu0 %v3407_v62 }
 0x871   : > { %v3437_v32 = vpop.permute.xlu0 %3436 }
 0x872   : > { %4056 = vmatprep.subr.mxu0 %v3437_v32 }
 0x873   : > { %4057 = vmatpush3.msra.mxu0 %v3405_v41 }
 0x875   : > { %v3435_v2 = vpop.permute.xlu0 %3434 }
 0x876   : > { %4058 = vmatprep.subr.mxu0 %v3435_v2 }
 0x879   : > { %v3570_v20 = vpop.permute.xlu0 %3569 }
 0x87a   : > { %v3576_v37 = vsel %vm2469_vm5, %v3906_v33, %v3570_v20 }
 0x87b   : > { %3578 = vst [vmem:[%s322_s9] sm:$0xff] %v3576_v37 }
 0x8d1   : > { %v3365_v29 = vpop.xlane.xlu1 %3364 }
 0x8d2   : > { %4389 = vrcp.f32 %v3365_v29 }
 0x8d5   : > { %v3403_v16 = vpop.permute.xlu1 %3402 }
 0x8d6   : > { %4059 = vmatpush3.msra.mxu0 %v3403_v16 }
 0x8df   : > { %v4390_v53 = vpop.eup %4389 }
 0x8e0   : > { %v3367_v57 = vmul.f32 %v4390_v53, %v4388_v63 }
 0x8e2   : > { %v3369_v22 = vmul.f32 %v3367_v57, %v6254_v44  ;;  %v3368_v21 = vmul.f32 %v3367_v57, %v6255_v39 }
 0x8e4   : > { %3562 = vmatprep.mubr.f32.mxu0 %v3369_v22 }
 0x8e5   : > { %3563 = vmatmul.mubr.f32.vlgmr.msra.gmra.mxu0 %v3368_v21 }
 0x9a5   : > { %v4060_v42 = vpop.f32.mrf.mxu0 }
 0x9a7   : > { %v4061_v25 = vpop.f32.mrf.mxu0 }
 0x9a8   : > { %v4062_v51 = vadd.f32 %v4061_v25, %v4060_v42 }
 0x9aa   : > { %3573 = vrot.lane.b32.xlu1 %v4062_v51, %s4535_s23 }
 0xa1c   : > { %v3574_v52 = vpop.permute.xlu1 %3573 }
 0xa1d   : > { %v3577_v44 = vsel %vm2469_vm5, %v6027_v60, %v3574_v52 }
 0xa1e   : > { %3579 = vst [vmem:[%s322_s9 + $0x8] sm:$0xff] %v3577_v44 }
 0xa1f   : > { %4458 = shalt.err (!%p4455_p5)
}
 0xa20   : > { %s4459_s10 = scalar_lea.hbm %s6077_s30, 256  ;;  %s4463_s23 = scalar_lea.hbm %s6123_s7, 512 }
 0xa21   : > { %p4460_p9 = scmp.ne.s32.totalorder %s6077_s30, %s4459_s10  ;;  %p4464_p4 = scmp.lt.s32.totalorder %s6077_s30, %s6123_s7 }
 0xa22   : > { %p4465_p6 = scmp.lt.s32.totalorder %s4463_s23, %s4459_s10 }
 0xa23   : > { %p4461_p12 = pnand %p4460_p9, %p6279_p11 }
 0xa24   : > { %p4466_p8 = por %p4465_p6, %p4464_p4 }
 0xa25   : > { %p4462_p1 = pneg %p4461_p12 }
 0xa27   : > { %p4467_p3 = pnand %p4466_p8, %p4462_p1 }
 0xa29   : > { %4470 = shalt.err (!%p4467_p3)
}
 0xa2a   : > { %4217 = dma.vmem_to_hbm [thread:$0]  (%p6279_p11), %s3596_s20, 256, %s6077_s30, %s3581_s17  }
 0xa2b PF: > { %s3607_s9 = sand.u32 1, %s4501_s24   ;;  %p6280_p7 = scmp.ne.s32.totalorder %s6176_s8, 0 }
 0xa2c   : > { %p6281_p10 = scmp.ge.s32.totalorder %s4513_s27, 2  ;;  %s3608_s19 = scalar_lea.sflag [#allocation4], %s3607_s9 }
 0xa2e   : > { %p4228_p2 = pnand %p6281_p10, %p6280_p7 }
 0xa30   : > { %p4229_p13 = pneg %p4228_p2 }
 0xa32   : > { %4496 = dma.done.wait (%p4229_p13), %s3608_s19, 256  }
 0xa33   : > { %4498 = vsyncadd (%p4229_p13), %s3608_s19, 4294967040  ;;  %s6282_s14 = sld [smem:[#allocation11_spill]]  ;;  %p21_p0 = scmp.ge.s32.totalorder %s4631_s13, 4  }
 0xa34   : > { %s6283_s24 = smov %s4505_s25  ;;  %s6284_s25 = smov %s4509_s26 }
 0xa35   : > { %s6286_s27 = smov %s4631_s13  ;;  %23 = sbr.rel (!%p21_p0) target bundleno = 8 (0x8), region = 100 }
 0xa39   : > { %s6285_s26 = smov %s6282_s14 }
 0xa3a   :  { %3613 = vsyncpa [#allocation3], 1 }
 0xa3b   :  { %3615 = vsyncpa [#allocation3 + $0x1], 1 }
 0xa3c   :  { %3616 = vsyncpa [#allocation6], 1 }
 0xa3d   :  { %3617 = vsyncpa [#allocation4], 1 }
 0xa3e   :  { %3619 = vsyncpa [#allocation4 + $0x1], 1 }

</bundles_post_ra>
